<compile_context>
chip_gen: v7x
topology: tpu7x:2x2x1
jax: 0.10.0
libtpu: 0.0.40
codegen_flags: <defaults>
</compile_context>

<pallas_src>
import functools

import jax
import jax.numpy as jnp
from jax.experimental import pallas as pl
from jax.experimental.pallas import tpu as pltpu

# ---------------- model config (small DINOv2-style ViT) ----------------
CHANNELS = 3
IMG = 32
PATCH = 8
HIDDEN = 128
NUM_HEADS = 2                                   # head_dim = 64, like dinov2-base
NUM_LAYERS = 2
HEAD_DIM = HIDDEN // NUM_HEADS
NUM_PATCHES = (IMG // PATCH) ** 2               # 16
SEQ = NUM_PATCHES + 1                           # 17 (CLS + patches)
SEQ_PAD = ((SEQ + 7) // 8) * 8                  # 24 -> clean (8,128) tiling
LN_EPS = 1e-6


# ---------------- fused forward kernel (one grid step = BB images) ----------------
def _vit_fused_kernel(patches_ref, patch_w_ref, embed_ref,
                      ln1_g_ref, ln1_b_ref, wqkv_ref, bqkv_ref, wo_ref, bo_ref,
                      ln2_g_ref, ln2_b_ref, w1_ref, b1_ref, w2_ref, b2_ref,
                      fin_g_ref, fin_b_ref, out_ref, *, block_batch):
    f32, bf16 = jnp.float32, jnp.bfloat16
    D, DH, S = HIDDEN, HEAD_DIM, SEQ_PAD
    BB = block_batch

    def layer_norm(x, g, b):
        mu = jnp.mean(x, axis=-1, keepdims=True)
        c = x - mu
        var = jnp.mean(c * c, axis=-1, keepdims=True)
        return c * jax.lax.rsqrt(var + LN_EPS) * g + b

    def gelu(x):
        # TODO(synk): HF DINOv2 uses exact erf GELU; tanh approximation kept here.
        c = 0.7978845608028654  # sqrt(2/pi)
        return 0.5 * x * (1.0 + jnp.tanh(c * (x + 0.044715 * x * x * x)))

    # --- patch embedding: Conv2d(C, D, P, stride=P) == one MXU matmul over the
    #     zero-padded (BB*S, C*P*P) im2col slab. CLS token, pos-embed and the conv
    #     bias are pre-folded (and pre-tiled across BB) into embed_ref, so padded
    #     rows stay exactly 0 before the residual stream starts.
    tok = jnp.dot(patches_ref[...], patch_w_ref[...], preferred_element_type=f32)
    h = tok + embed_ref[...]                            # (BB*S, D) f32 residual stream

    # additive bias that removes padded key columns from every softmax
    col = jax.lax.broadcasted_iota(jnp.int32, (S, S), 1)
    kbias = jnp.where(col < SEQ, 0.0, -1e30).astype(f32)
    scale = DH ** -0.5

    for l in range(NUM_LAYERS):
        # ---- attention block: LN -> fused QKV -> per-image per-head SDPA -> proj -> residual ----
        xn = layer_norm(h, ln1_g_ref[l], ln1_b_ref[l])
        qkv = jnp.dot(xn.astype(bf16), wqkv_ref[l],
                      preferred_element_type=f32) + bqkv_ref[l]          # (BB*S, 3D)
        attn_rows = []
        for b2 in range(BB):                       # static, small; rows are 8-aligned slices
            r0 = b2 * S
            heads = []
            for hh in range(NUM_HEADS):
                q = qkv[r0:r0 + S, hh * DH:(hh + 1) * DH]
                k = qkv[r0:r0 + S, D + hh * DH:D + (hh + 1) * DH]
                v = qkv[r0:r0 + S, 2 * D + hh * DH:2 * D + (hh + 1) * DH]
                s = jax.lax.dot_general(q.astype(bf16), k.astype(bf16),
                                        (((1,), (1,)), ((), ())),
                                        preferred_element_type=f32) * scale + kbias
                m = jnp.max(s, axis=-1, keepdims=True)
                p = jnp.exp(s - m)
                p = p * pl.reciprocal(jnp.sum(p, axis=-1, keepdims=True), approx=True)
                heads.append(jnp.dot(p.astype(bf16), v.astype(bf16),
                                     preferred_element_type=f32))
            attn_rows.append(jnp.concatenate(heads, axis=-1))            # (S, D)
        attn = jnp.concatenate(attn_rows, axis=0)                        # (BB*S, D)
        # layer-scale is pre-folded into wo/bo
        h = h + jnp.dot(attn.astype(bf16), wo_ref[l],
                        preferred_element_type=f32) + bo_ref[l]

        # ---- MLP block: LN -> FC1 + GELU -> FC2 (layer-scale folded) -> residual ----
        xn = layer_norm(h, ln2_g_ref[l], ln2_b_ref[l])
        m1 = gelu(jnp.dot(xn.astype(bf16), w1_ref[l],
                          preferred_element_type=f32) + b1_ref[l])
        h = h + jnp.dot(m1.astype(bf16), w2_ref[l],
                        preferred_element_type=f32) + b2_ref[l]

    # ---- final LN + per-image concat([CLS, mean over the 16 real patch tokens]) ----
    y = layer_norm(h, fin_g_ref[...], fin_b_ref[...])
    row = jax.lax.broadcasted_iota(jnp.int32, (S, 1), 0)
    pmask = jnp.logical_and(row >= 1, row < SEQ).astype(f32)             # exclude CLS + pad rows
    rows = []
    for b2 in range(BB):
        yb = y[b2 * S:(b2 + 1) * S]
        cls_tok = yb[0:1, :]
        patch_mean = jnp.sum(yb * pmask, axis=0, keepdims=True) * (1.0 / NUM_PATCHES)
        rows.append(jnp.concatenate([cls_tok, patch_mean], axis=-1))     # (1, 2D)
    out_ref[...] = jnp.concatenate(rows, axis=0)[:, None, :].astype(out_ref.dtype)


# ---------------- wrapper ----------------
def _pick_block_batch(B, max_bb=4):
    """Largest divisor of B (<= max_bb) that still leaves >= 2 grid steps (megacore)."""
    for bb in range(min(max_bb, B), 0, -1):
        if B % bb == 0 and B // bb >= 2:
            return bb
    return B


def image_embedding_forward(packed, x, agg_mode="concat"):
    assert agg_mode == "concat", "only the default agg_mode='concat' is implemented"
    B, C, H, W = x.shape
    P, D, L = PATCH, HIDDEN, NUM_LAYERS
    Hp, Wp = H // P, W // P
    N = Hp * Wp
    assert N == NUM_PATCHES
    CPP = C * P * P
    BB = _pick_block_batch(B)
    T = BB * SEQ_PAD

    # im2col for the stride-P patch conv, placed at token rows 1..N of a zero-padded
    # (SEQ_PAD, CPP) slab, pre-cast to bf16 (MXU operand) and flattened to 2D so the
    # kernel consumes BB images per grid step without any in-kernel reshape.
    patches = (x.reshape(B, C, Hp, P, Wp, P)
                 .transpose(0, 2, 4, 1, 3, 5)
                 .reshape(B, N, CPP))
    slab = jnp.zeros((B, SEQ_PAD, CPP), jnp.bfloat16)
    slab = slab.at[:, 1:1 + N, :].set(patches.astype(jnp.bfloat16))
    slab = slab.reshape(B * SEQ_PAD, CPP)

    embed_t = jnp.tile(packed["embed"], (BB, 1))          # (T, D) f32

    def rep(shape):  # weight-style operand: same block for every grid step
        n = len(shape)
        return pl.BlockSpec(shape, lambda b, n=n: (0,) * n)

    kernel = functools.partial(_vit_fused_kernel, block_batch=BB)

    out = pl.pallas_call(
        kernel,
        out_shape=jax.ShapeDtypeStruct((B, 1, 2 * D), jnp.float32),
        grid=(B // BB,),
        in_specs=[
            pl.BlockSpec((T, CPP), lambda b: (b, 0)),               # BB images' patch slabs
            rep((CPP, D)),                                          # patch_w (bf16)
            rep((T, D)),                                            # embed (cls/pos/conv-bias folded, tiled)
            rep((L, 1, D)), rep((L, 1, D)),                         # ln1 gamma / beta
            rep((L, D, 3 * D)), rep((L, 1, 3 * D)),                 # fused wqkv / bqkv
            rep((L, D, D)), rep((L, 1, D)),                         # wo / bo (layer-scale folded)
            rep((L, 1, D)), rep((L, 1, D)),                         # ln2 gamma / beta
            rep((L, D, 4 * D)), rep((L, 1, 4 * D)),                 # w1 / b1
            rep((L, 4 * D, D)), rep((L, 1, D)),                     # w2 / b2 (layer-scale folded)
            rep((1, D)), rep((1, D)),                               # final LN gamma / beta
        ],
        out_specs=pl.BlockSpec((BB, 1, 2 * D), lambda b: (b, 0, 0)),
        compiler_params=pltpu.CompilerParams(
            dimension_semantics=("parallel",)),                     # image-blocks over TCs (v7x)
    )(slab, packed["patch_w"], embed_t,
      packed["ln1_g"], packed["ln1_b"], packed["wqkv"], packed["bqkv"],
      packed["wo"], packed["bo"],
      packed["ln2_g"], packed["ln2_b"], packed["w1"], packed["b1"],
      packed["w2"], packed["b2"],
      packed["fin_g"], packed["fin_b"])
    return out.reshape(B, 2 * D)


# ---------------- parameters ----------------
def init_params(key):
    D, P, C = HIDDEN, PATCH, CHANNELS
    keys = iter(jax.random.split(key, 128))

    def nrm(shape, scale=0.02):
        return scale * jax.random.normal(next(keys), shape, dtype=jnp.float32)

    params = {
        "patch_w": nrm((C * P * P, D)),
        "patch_b": jnp.zeros((D,), jnp.float32),
        "cls_token": nrm((1, 1, D)),
        "pos_embed": nrm((1, SEQ, D)),
        "final_ln_g": jnp.ones((D,), jnp.float32),
        "final_ln_b": jnp.zeros((D,), jnp.float32),
        "layers": [],
    }
    for _ in range(NUM_LAYERS):
        params["layers"].append({
            "ln1_g": jnp.ones((D,), jnp.float32), "ln1_b": jnp.zeros((D,), jnp.float32),
            "wq": nrm((D, D)), "bq": jnp.zeros((D,), jnp.float32),
            "wk": nrm((D, D)), "bk": jnp.zeros((D,), jnp.float32),
            "wv": nrm((D, D)), "bv": jnp.zeros((D,), jnp.float32),
            "wo": nrm((D, D)), "bo": jnp.zeros((D,), jnp.float32),
            "ls1": 1.0 + nrm((D,), 0.05),
            "ln2_g": jnp.ones((D,), jnp.float32), "ln2_b": jnp.zeros((D,), jnp.float32),
            "w1": nrm((D, 4 * D)), "b1": jnp.zeros((4 * D,), jnp.float32),
            "w2": nrm((4 * D, D)), "b2": jnp.zeros((D,), jnp.float32),
            "ls2": 1.0 + nrm((D,), 0.05),
        })
    return params


def pack_params(p):
    """Pack params for the fused kernel: stack per-layer tensors, fuse QKV, bf16 MXU weights,
    fold layer-scale into wo/bo and w2/b2, fold cls-token / pos-embed / patch-conv-bias
    into one padded (SEQ_PAD, D) embed table."""
    bf = jnp.bfloat16
    ls = p["layers"]

    def stack(name):
        return jnp.stack([l[name] for l in ls])

    def vec(name):                               # (L, 1, dim) for broadcasting in-kernel
        return stack(name)[:, None, :]

    embed = jnp.zeros((SEQ_PAD, HIDDEN), jnp.float32)
    embed = embed.at[0].set(p["cls_token"][0, 0] + p["pos_embed"][0, 0])
    embed = embed.at[1:SEQ].set(p["pos_embed"][0, 1:] + p["patch_b"][None, :])

    wqkv = jnp.stack([jnp.concatenate([l["wq"], l["wk"], l["wv"]], axis=1) for l in ls])
    bqkv = jnp.stack([jnp.concatenate([l["bq"], l["bk"], l["bv"]], axis=0) for l in ls])[:, None, :]
    # layer-scale fold (exact in f32): (x@W + b)*ls == x@(W*ls) + b*ls
    wo = jnp.stack([l["wo"] * l["ls1"][None, :] for l in ls])
    bo = jnp.stack([l["bo"] * l["ls1"] for l in ls])[:, None, :]
    w2 = jnp.stack([l["w2"] * l["ls2"][None, :] for l in ls])
    b2 = jnp.stack([l["b2"] * l["ls2"] for l in ls])[:, None, :]

    return {
        "patch_w": p["patch_w"].astype(bf),
        "embed": embed,
        "ln1_g": vec("ln1_g"), "ln1_b": vec("ln1_b"),
        "wqkv": wqkv.astype(bf), "bqkv": bqkv,
        "wo": wo.astype(bf), "bo": bo,
        "ln2_g": vec("ln2_g"), "ln2_b": vec("ln2_b"),
        "w1": stack("w1").astype(bf), "b1": vec("b1"),
        "w2": w2.astype(bf), "b2": b2,
        "fin_g": p["final_ln_g"][None, :], "fin_b": p["final_ln_b"][None, :],
    }


# ---------------- pure-JAX f32 reference (mirrors the PyTorch forward) ----------------
def reference_forward(params, x):
    B, C, H, W = x.shape
    P, D, NH = PATCH, HIDDEN, NUM_HEADS
    DH = D // NH
    Hp, Wp = H // P, W // P
    N = Hp * Wp
    patches = (x.reshape(B, C, Hp, P, Wp, P).transpose(0, 2, 4, 1, 3, 5)
                 .reshape(B, N, C * P * P))
    tok = patches @ params["patch_w"] + params["patch_b"]
    cls = jnp.broadcast_to(params["cls_token"], (B, 1, D))
    h = jnp.concatenate([cls, tok], axis=1) + params["pos_embed"]

    def ln(x, g, b):
        mu = x.mean(-1, keepdims=True)
        v = ((x - mu) ** 2).mean(-1, keepdims=True)
        return (x - mu) * jax.lax.rsqrt(v + LN_EPS) * g + b

    def gelu(x):
        c = 0.7978845608028654
        return 0.5 * x * (1.0 + jnp.tanh(c * (x + 0.044715 * x ** 3)))

    def heads(t):
        return t.reshape(B, -1, NH, DH).transpose(0, 2, 1, 3)

    for L in params["layers"]:
        xn = ln(h, L["ln1_g"], L["ln1_b"])
        q, k, v = (heads(xn @ L[w] + L[b]) for w, b in
                   (("wq", "bq"), ("wk", "bk"), ("wv", "bv")))
        s = jnp.einsum("bhqd,bhkd->bhqk", q, k) * DH ** -0.5
        p = jax.nn.softmax(s, axis=-1)
        a = jnp.einsum("bhqk,bhkd->bhqd", p, v).transpose(0, 2, 1, 3).reshape(B, -1, D)
        h = h + (a @ L["wo"] + L["bo"]) * L["ls1"]
        xn = ln(h, L["ln2_g"], L["ln2_b"])
        h = h + (gelu(xn @ L["w1"] + L["b1"]) @ L["w2"] + L["b2"]) * L["ls2"]

    y = ln(h, params["final_ln_g"], params["final_ln_b"])
    return jnp.concatenate([y[:, 0], y[:, 1:].mean(axis=1)], axis=1)


if __name__ == "__main__":
    key = jax.random.PRNGKey(0)
    pkey, xkey = jax.random.split(key)
    params = init_params(pkey)
    packed = pack_params(params)

    fwd = jax.jit(image_embedding_forward, static_argnames=("agg_mode",))

    # B=2 -> 1 image/step (grid=2, megacore); B=4 -> 2 images/step (exercises blocking)
    for B in (2, 4):
        x = jax.random.normal(jax.random.fold_in(xkey, B),
                              (B, CHANNELS, IMG, IMG), dtype=jnp.float32)
        emb = fwd(packed, x)
        jax.block_until_ready(emb)

        assert emb.shape == (B, 2 * HIDDEN), emb.shape
        assert bool(jnp.all(jnp.isfinite(emb)))

        # loose check vs f32 reference (kernel uses bf16 MXU operands + approx reciprocal)
        ref = reference_forward(params, x)
        err = float(jnp.max(jnp.abs(emb - ref)))
        assert err < 0.2, f"B={B}: max |kernel - reference| = {err}"

    print("KERNEL_OK")
</pallas_src>

<mosaic_0001>
module attributes {stable_mosaic.version = 11 : i64} {
  func.func @_vit_fused_kernel(%arg0: i32, %arg1: memref<24x192xbf16, #tpu.memory_space<vmem>>, %arg2: memref<192x128xbf16, #tpu.memory_space<vmem>>, %arg3: memref<24x128xf32, #tpu.memory_space<vmem>>, %arg4: memref<2x1x128xf32, #tpu.memory_space<vmem>>, %arg5: memref<2x1x128xf32, #tpu.memory_space<vmem>>, %arg6: memref<2x128x384xbf16, #tpu.memory_space<vmem>>, %arg7: memref<2x1x384xf32, #tpu.memory_space<vmem>>, %arg8: memref<2x128x128xbf16, #tpu.memory_space<vmem>>, %arg9: memref<2x1x128xf32, #tpu.memory_space<vmem>>, %arg10: memref<2x1x128xf32, #tpu.memory_space<vmem>>, %arg11: memref<2x1x128xf32, #tpu.memory_space<vmem>>, %arg12: memref<2x128x512xbf16, #tpu.memory_space<vmem>>, %arg13: memref<2x1x512xf32, #tpu.memory_space<vmem>>, %arg14: memref<2x512x128xbf16, #tpu.memory_space<vmem>>, %arg15: memref<2x1x128xf32, #tpu.memory_space<vmem>>, %arg16: memref<1x128xf32, #tpu.memory_space<vmem>>, %arg17: memref<1x128xf32, #tpu.memory_space<vmem>>, %arg18: memref<1x1x256xf32, #tpu.memory_space<vmem>>) attributes {dimension_semantics = [#tpu.dimension_semantics<parallel>], iteration_bounds = array<i64: 2>, scalar_prefetch = 0 : i64, scratch_operands = 0 : i64, tpu.core_type = #tpu.core_type<tc>, window_params = [{transform_indices = @transform_0, window_bounds = array<i64: 24, 192>}, {pipeline_mode = #tpu.pipeline_mode<synchronous>, transform_indices = @transform_1, window_bounds = array<i64: 192, 128>}, {pipeline_mode = #tpu.pipeline_mode<synchronous>, transform_indices = @transform_2, window_bounds = array<i64: 24, 128>}, {pipeline_mode = #tpu.pipeline_mode<synchronous>, transform_indices = @transform_3, window_bounds = array<i64: 2, 1, 128>}, {pipeline_mode = #tpu.pipeline_mode<synchronous>, transform_indices = @transform_4, window_bounds = array<i64: 2, 1, 128>}, {pipeline_mode = #tpu.pipeline_mode<synchronous>, transform_indices = @transform_5, window_bounds = array<i64: 2, 128, 384>}, {pipeline_mode = #tpu.pipeline_mode<synchronous>, transform_indices = @transform_6, window_bounds = array<i64: 2, 1, 384>}, {pipeline_mode = #tpu.pipeline_mode<synchronous>, transform_indices = @transform_7, window_bounds = array<i64: 2, 128, 128>}, {pipeline_mode = #tpu.pipeline_mode<synchronous>, transform_indices = @transform_8, window_bounds = array<i64: 2, 1, 128>}, {pipeline_mode = #tpu.pipeline_mode<synchronous>, transform_indices = @transform_9, window_bounds = array<i64: 2, 1, 128>}, {pipeline_mode = #tpu.pipeline_mode<synchronous>, transform_indices = @transform_10, window_bounds = array<i64: 2, 1, 128>}, {pipeline_mode = #tpu.pipeline_mode<synchronous>, transform_indices = @transform_11, window_bounds = array<i64: 2, 128, 512>}, {pipeline_mode = #tpu.pipeline_mode<synchronous>, transform_indices = @transform_12, window_bounds = array<i64: 2, 1, 512>}, {pipeline_mode = #tpu.pipeline_mode<synchronous>, transform_indices = @transform_13, window_bounds = array<i64: 2, 512, 128>}, {pipeline_mode = #tpu.pipeline_mode<synchronous>, transform_indices = @transform_14, window_bounds = array<i64: 2, 1, 128>}, {pipeline_mode = #tpu.pipeline_mode<synchronous>, transform_indices = @transform_15, window_bounds = array<i64: 1, 128>}, {pipeline_mode = #tpu.pipeline_mode<synchronous>, transform_indices = @transform_16, window_bounds = array<i64: 1, 128>}, {transform_indices = @transform_17, window_bounds = array<i64: 1, 1, 256>}]} {
    %c0 = arith.constant 0 : index
    %c0_0 = arith.constant 0 : index
    %0 = vector.load %arg1[%c0, %c0_0] : memref<24x192xbf16, #tpu.memory_space<vmem>>, vector<24x192xbf16>
    %c0_1 = arith.constant 0 : index
    %c0_2 = arith.constant 0 : index
    %1 = vector.load %arg2[%c0_1, %c0_2] : memref<192x128xbf16, #tpu.memory_space<vmem>>, vector<192x128xbf16>
    %cst = arith.constant dense<0.000000e+00> : vector<24x128xf32>
    %2 = tpu.matmul %0, %1, %cst {dimension_numbers = #tpu.dot_dimension_numbers<[1], [0], [0], [1], [0, 0, 1, 1], [], []>} : vector<24x192xbf16>, vector<192x128xbf16>, vector<24x128xf32> -> vector<24x128xf32>
    %c0_3 = arith.constant 0 : index
    %c0_4 = arith.constant 0 : index
    %3 = vector.load %arg3[%c0_3, %c0_4] : memref<24x128xf32, #tpu.memory_space<vmem>>, vector<24x128xf32>
    %4 = arith.addf %2, %3 : vector<24x128xf32>
    %5 = tpu.iota {dimensions = array<i32: 1>} : vector<24x24xi32>
    %c17_i32 = arith.constant 17 : i32
    %6 = vector.broadcast %c17_i32 : i32 to vector<24x24xi32>
    %7 = arith.cmpi slt, %5, %6 : vector<24x24xi32>
    %cst_5 = arith.constant 0.000000e+00 : f32
    %cst_6 = arith.constant -1.000000e+30 : f32
    %8 = vector.broadcast %cst_5 : f32 to vector<24x24xf32>
    %9 = vector.broadcast %cst_6 : f32 to vector<24x24xf32>
    %10 = arith.select %7, %8, %9 : vector<24x24xi1>, vector<24x24xf32>
    %c0_7 = arith.constant 0 : index
    %c0_8 = arith.constant 0 : index
    %c0_9 = arith.constant 0 : index
    %11 = vector.load %arg4[%c0_7, %c0_8, %c0_9] : memref<2x1x128xf32, #tpu.memory_space<vmem>>, vector<1x1x128xf32>
    %12 = vector.shape_cast %11 : vector<1x1x128xf32> to vector<1x128xf32>
    %c0_10 = arith.constant 0 : index
    %c0_11 = arith.constant 0 : index
    %c0_12 = arith.constant 0 : index
    %13 = vector.load %arg5[%c0_10, %c0_11, %c0_12] : memref<2x1x128xf32, #tpu.memory_space<vmem>>, vector<1x1x128xf32>
    %14 = vector.shape_cast %13 : vector<1x1x128xf32> to vector<1x128xf32>
    %cst_13 = arith.constant dense<0.000000e+00> : vector<24xf32>
    %15 = vector.multi_reduction <add>, %4, %cst_13 [1] : vector<24x128xf32> to vector<24xf32>
    %16 = vector.shape_cast %15 : vector<24xf32> to vector<24x1xf32>
    %cst_14 = arith.constant 1.280000e+02 : f32
    %17 = vector.broadcast %cst_14 : f32 to vector<24x1xf32>
    %18 = arith.divf %16, %17 : vector<24x1xf32>
    %19 = vector.broadcast %18 : vector<24x1xf32> to vector<24x128xf32>
    %20 = arith.subf %4, %19 : vector<24x128xf32>
    %21 = arith.mulf %20, %20 : vector<24x128xf32>
    %cst_15 = arith.constant dense<0.000000e+00> : vector<24xf32>
    %22 = vector.multi_reduction <add>, %21, %cst_15 [1] : vector<24x128xf32> to vector<24xf32>
    %23 = vector.shape_cast %22 : vector<24xf32> to vector<24x1xf32>
    %cst_16 = arith.constant 1.280000e+02 : f32
    %24 = vector.broadcast %cst_16 : f32 to vector<24x1xf32>
    %25 = arith.divf %23, %24 : vector<24x1xf32>
    %cst_17 = arith.constant 9.99999997E-7 : f32
    %26 = vector.broadcast %cst_17 : f32 to vector<24x1xf32>
    %27 = arith.addf %25, %26 : vector<24x1xf32>
    %28 = math.rsqrt %27 : vector<24x1xf32>
    %29 = vector.broadcast %28 : vector<24x1xf32> to vector<24x128xf32>
    %30 = arith.mulf %20, %29 : vector<24x128xf32>
    %31 = vector.broadcast %12 : vector<1x128xf32> to vector<24x128xf32>
    %32 = arith.mulf %30, %31 : vector<24x128xf32>
    %33 = vector.broadcast %14 : vector<1x128xf32> to vector<24x128xf32>
    %34 = arith.addf %32, %33 : vector<24x128xf32>
    %35 = arith.truncf %34 : vector<24x128xf32> to vector<24x128xbf16>
    %c0_18 = arith.constant 0 : index
    %c0_19 = arith.constant 0 : index
    %c0_20 = arith.constant 0 : index
    %36 = vector.load %arg6[%c0_18, %c0_19, %c0_20] : memref<2x128x384xbf16, #tpu.memory_space<vmem>>, vector<1x128x384xbf16>
    %37 = vector.shape_cast %36 : vector<1x128x384xbf16> to vector<128x384xbf16>
    %cst_21 = arith.constant dense<0.000000e+00> : vector<24x384xf32>
    %38 = tpu.matmul %35, %37, %cst_21 {dimension_numbers = #tpu.dot_dimension_numbers<[1], [0], [0], [1], [0, 0, 1, 1], [], []>} : vector<24x128xbf16>, vector<128x384xbf16>, vector<24x384xf32> -> vector<24x384xf32>
    %c0_22 = arith.constant 0 : index
    %c0_23 = arith.constant 0 : index
    %c0_24 = arith.constant 0 : index
    %39 = vector.load %arg7[%c0_22, %c0_23, %c0_24] : memref<2x1x384xf32, #tpu.memory_space<vmem>>, vector<1x1x384xf32>
    %40 = vector.shape_cast %39 : vector<1x1x384xf32> to vector<1x384xf32>
    %41 = vector.broadcast %40 : vector<1x384xf32> to vector<24x384xf32>
    %42 = arith.addf %38, %41 : vector<24x384xf32>
    %43 = vector.extract_strided_slice %42 {offsets = [0, 0], sizes = [24, 64], strides = [1, 1]} : vector<24x384xf32> to vector<24x64xf32>
    %44 = vector.extract_strided_slice %42 {offsets = [0, 128], sizes = [24, 64], strides = [1, 1]} : vector<24x384xf32> to vector<24x64xf32>
    %45 = vector.extract_strided_slice %42 {offsets = [0, 256], sizes = [24, 64], strides = [1, 1]} : vector<24x384xf32> to vector<24x64xf32>
    %46 = arith.truncf %43 : vector<24x64xf32> to vector<24x64xbf16>
    %47 = arith.truncf %44 : vector<24x64xf32> to vector<24x64xbf16>
    %cst_25 = arith.constant dense<0.000000e+00> : vector<24x24xf32>
    %48 = tpu.matmul %46, %47, %cst_25 {dimension_numbers = #tpu.dot_dimension_numbers<[1], [1], [0], [0], [0, 0, 1, 0], [], []>} : vector<24x64xbf16>, vector<24x64xbf16>, vector<24x24xf32> -> vector<24x24xf32>
    %cst_26 = arith.constant 1.250000e-01 : f32
    %49 = vector.broadcast %cst_26 : f32 to vector<24x24xf32>
    %50 = arith.mulf %48, %49 : vector<24x24xf32>
    %51 = arith.addf %50, %10 : vector<24x24xf32>
    %cst_27 = arith.constant dense<0xFF800000> : vector<24xf32>
    %52 = vector.multi_reduction <maximumf>, %51, %cst_27 [1] : vector<24x24xf32> to vector<24xf32>
    %53 = vector.shape_cast %52 : vector<24xf32> to vector<24x1xf32>
    %54 = vector.broadcast %53 : vector<24x1xf32> to vector<24x24xf32>
    %55 = arith.subf %51, %54 : vector<24x24xf32>
    %56 = math.exp %55 : vector<24x24xf32>
    %cst_28 = arith.constant dense<0.000000e+00> : vector<24xf32>
    %57 = vector.multi_reduction <add>, %56, %cst_28 [1] : vector<24x24xf32> to vector<24xf32>
    %58 = vector.shape_cast %57 : vector<24xf32> to vector<24x1xf32>
    %59 = tpu.reciprocal %58 {approx = true} : vector<24x1xf32> -> vector<24x1xf32>
    %60 = vector.broadcast %59 : vector<24x1xf32> to vector<24x24xf32>
    %61 = arith.mulf %56, %60 : vector<24x24xf32>
    %62 = arith.truncf %61 : vector<24x24xf32> to vector<24x24xbf16>
    %63 = arith.truncf %45 : vector<24x64xf32> to vector<24x64xbf16>
    %cst_29 = arith.constant dense<0.000000e+00> : vector<24x64xf32>
    %64 = tpu.matmul %62, %63, %cst_29 {dimension_numbers = #tpu.dot_dimension_numbers<[1], [0], [0], [1], [0, 0, 1, 1], [], []>} : vector<24x24xbf16>, vector<24x64xbf16>, vector<24x64xf32> -> vector<24x64xf32>
    %65 = vector.extract_strided_slice %42 {offsets = [0, 64], sizes = [24, 64], strides = [1, 1]} : vector<24x384xf32> to vector<24x64xf32>
    %66 = vector.extract_strided_slice %42 {offsets = [0, 192], sizes = [24, 64], strides = [1, 1]} : vector<24x384xf32> to vector<24x64xf32>
    %67 = vector.extract_strided_slice %42 {offsets = [0, 320], sizes = [24, 64], strides = [1, 1]} : vector<24x384xf32> to vector<24x64xf32>
    %68 = arith.truncf %65 : vector<24x64xf32> to vector<24x64xbf16>
    %69 = arith.truncf %66 : vector<24x64xf32> to vector<24x64xbf16>
    %cst_30 = arith.constant dense<0.000000e+00> : vector<24x24xf32>
    %70 = tpu.matmul %68, %69, %cst_30 {dimension_numbers = #tpu.dot_dimension_numbers<[1], [1], [0], [0], [0, 0, 1, 0], [], []>} : vector<24x64xbf16>, vector<24x64xbf16>, vector<24x24xf32> -> vector<24x24xf32>
    %cst_31 = arith.constant 1.250000e-01 : f32
    %71 = vector.broadcast %cst_31 : f32 to vector<24x24xf32>
    %72 = arith.mulf %70, %71 : vector<24x24xf32>
    %73 = arith.addf %72, %10 : vector<24x24xf32>
    %cst_32 = arith.constant dense<0xFF800000> : vector<24xf32>
    %74 = vector.multi_reduction <maximumf>, %73, %cst_32 [1] : vector<24x24xf32> to vector<24xf32>
    %75 = vector.shape_cast %74 : vector<24xf32> to vector<24x1xf32>
    %76 = vector.broadcast %75 : vector<24x1xf32> to vector<24x24xf32>
    %77 = arith.subf %73, %76 : vector<24x24xf32>
    %78 = math.exp %77 : vector<24x24xf32>
    %cst_33 = arith.constant dense<0.000000e+00> : vector<24xf32>
    %79 = vector.multi_reduction <add>, %78, %cst_33 [1] : vector<24x24xf32> to vector<24xf32>
    %80 = vector.shape_cast %79 : vector<24xf32> to vector<24x1xf32>
    %81 = tpu.reciprocal %80 {approx = true} : vector<24x1xf32> -> vector<24x1xf32>
    %82 = vector.broadcast %81 : vector<24x1xf32> to vector<24x24xf32>
    %83 = arith.mulf %78, %82 : vector<24x24xf32>
    %84 = arith.truncf %83 : vector<24x24xf32> to vector<24x24xbf16>
    %85 = arith.truncf %67 : vector<24x64xf32> to vector<24x64xbf16>
    %cst_34 = arith.constant dense<0.000000e+00> : vector<24x64xf32>
    %86 = tpu.matmul %84, %85, %cst_34 {dimension_numbers = #tpu.dot_dimension_numbers<[1], [0], [0], [1], [0, 0, 1, 1], [], []>} : vector<24x24xbf16>, vector<24x64xbf16>, vector<24x64xf32> -> vector<24x64xf32>
    %87 = tpu.concatenate %64, %86 in 1 : vector<24x64xf32>, vector<24x64xf32> -> vector<24x128xf32>
    %88 = arith.truncf %87 : vector<24x128xf32> to vector<24x128xbf16>
    %c0_35 = arith.constant 0 : index
    %c0_36 = arith.constant 0 : index
    %c0_37 = arith.constant 0 : index
    %89 = vector.load %arg8[%c0_35, %c0_36, %c0_37] : memref<2x128x128xbf16, #tpu.memory_space<vmem>>, vector<1x128x128xbf16>
    %90 = vector.shape_cast %89 : vector<1x128x128xbf16> to vector<128x128xbf16>
    %cst_38 = arith.constant dense<0.000000e+00> : vector<24x128xf32>
    %91 = tpu.matmul %88, %90, %cst_38 {dimension_numbers = #tpu.dot_dimension_numbers<[1], [0], [0], [1], [0, 0, 1, 1], [], []>} : vector<24x128xbf16>, vector<128x128xbf16>, vector<24x128xf32> -> vector<24x128xf32>
    %92 = arith.addf %4, %91 : vector<24x128xf32>
    %c0_39 = arith.constant 0 : index
    %c0_40 = arith.constant 0 : index
    %c0_41 = arith.constant 0 : index
    %93 = vector.load %arg9[%c0_39, %c0_40, %c0_41] : memref<2x1x128xf32, #tpu.memory_space<vmem>>, vector<1x1x128xf32>
    %94 = vector.shape_cast %93 : vector<1x1x128xf32> to vector<1x128xf32>
    %95 = vector.broadcast %94 : vector<1x128xf32> to vector<24x128xf32>
    %96 = arith.addf %92, %95 : vector<24x128xf32>
    %c0_42 = arith.constant 0 : index
    %c0_43 = arith.constant 0 : index
    %c0_44 = arith.constant 0 : index
    %97 = vector.load %arg10[%c0_42, %c0_43, %c0_44] : memref<2x1x128xf32, #tpu.memory_space<vmem>>, vector<1x1x128xf32>
    %98 = vector.shape_cast %97 : vector<1x1x128xf32> to vector<1x128xf32>
    %c0_45 = arith.constant 0 : index
    %c0_46 = arith.constant 0 : index
    %c0_47 = arith.constant 0 : index
    %99 = vector.load %arg11[%c0_45, %c0_46, %c0_47] : memref<2x1x128xf32, #tpu.memory_space<vmem>>, vector<1x1x128xf32>
    %100 = vector.shape_cast %99 : vector<1x1x128xf32> to vector<1x128xf32>
    %cst_48 = arith.constant dense<0.000000e+00> : vector<24xf32>
    %101 = vector.multi_reduction <add>, %96, %cst_48 [1] : vector<24x128xf32> to vector<24xf32>
    %102 = vector.shape_cast %101 : vector<24xf32> to vector<24x1xf32>
    %cst_49 = arith.constant 1.280000e+02 : f32
    %103 = vector.broadcast %cst_49 : f32 to vector<24x1xf32>
    %104 = arith.divf %102, %103 : vector<24x1xf32>
    %105 = vector.broadcast %104 : vector<24x1xf32> to vector<24x128xf32>
    %106 = arith.subf %96, %105 : vector<24x128xf32>
    %107 = arith.mulf %106, %106 : vector<24x128xf32>
    %cst_50 = arith.constant dense<0.000000e+00> : vector<24xf32>
    %108 = vector.multi_reduction <add>, %107, %cst_50 [1] : vector<24x128xf32> to vector<24xf32>
    %109 = vector.shape_cast %108 : vector<24xf32> to vector<24x1xf32>
    %cst_51 = arith.constant 1.280000e+02 : f32
    %110 = vector.broadcast %cst_51 : f32 to vector<24x1xf32>
    %111 = arith.divf %109, %110 : vector<24x1xf32>
    %cst_52 = arith.constant 9.99999997E-7 : f32
    %112 = vector.broadcast %cst_52 : f32 to vector<24x1xf32>
    %113 = arith.addf %111, %112 : vector<24x1xf32>
    %114 = math.rsqrt %113 : vector<24x1xf32>
    %115 = vector.broadcast %114 : vector<24x1xf32> to vector<24x128xf32>
    %116 = arith.mulf %106, %115 : vector<24x128xf32>
    %117 = vector.broadcast %98 : vector<1x128xf32> to vector<24x128xf32>
    %118 = arith.mulf %116, %117 : vector<24x128xf32>
    %119 = vector.broadcast %100 : vector<1x128xf32> to vector<24x128xf32>
    %120 = arith.addf %118, %119 : vector<24x128xf32>
    %121 = arith.truncf %120 : vector<24x128xf32> to vector<24x128xbf16>
    %c0_53 = arith.constant 0 : index
    %c0_54 = arith.constant 0 : index
    %c0_55 = arith.constant 0 : index
    %122 = vector.load %arg12[%c0_53, %c0_54, %c0_55] : memref<2x128x512xbf16, #tpu.memory_space<vmem>>, vector<1x128x512xbf16>
    %123 = vector.shape_cast %122 : vector<1x128x512xbf16> to vector<128x512xbf16>
    %cst_56 = arith.constant dense<0.000000e+00> : vector<24x512xf32>
    %124 = tpu.matmul %121, %123, %cst_56 {dimension_numbers = #tpu.dot_dimension_numbers<[1], [0], [0], [1], [0, 0, 1, 1], [], []>} : vector<24x128xbf16>, vector<128x512xbf16>, vector<24x512xf32> -> vector<24x512xf32>
    %c0_57 = arith.constant 0 : index
    %c0_58 = arith.constant 0 : index
    %c0_59 = arith.constant 0 : index
    %125 = vector.load %arg13[%c0_57, %c0_58, %c0_59] : memref<2x1x512xf32, #tpu.memory_space<vmem>>, vector<1x1x512xf32>
    %126 = vector.shape_cast %125 : vector<1x1x512xf32> to vector<1x512xf32>
    %127 = vector.broadcast %126 : vector<1x512xf32> to vector<24x512xf32>
    %128 = arith.addf %124, %127 : vector<24x512xf32>
    %cst_60 = arith.constant 5.000000e-01 : f32
    %129 = vector.broadcast %cst_60 : f32 to vector<24x512xf32>
    %130 = arith.mulf %129, %128 : vector<24x512xf32>
    %cst_61 = arith.constant 4.471500e-02 : f32
    %131 = vector.broadcast %cst_61 : f32 to vector<24x512xf32>
    %132 = arith.mulf %131, %128 : vector<24x512xf32>
    %133 = arith.mulf %132, %128 : vector<24x512xf32>
    %134 = arith.mulf %133, %128 : vector<24x512xf32>
    %135 = arith.addf %128, %134 : vector<24x512xf32>
    %cst_62 = arith.constant 0.797884583 : f32
    %136 = vector.broadcast %cst_62 : f32 to vector<24x512xf32>
    %137 = arith.mulf %136, %135 : vector<24x512xf32>
    %138 = math.tanh %137 : vector<24x512xf32>
    %cst_63 = arith.constant 1.000000e+00 : f32
    %139 = vector.broadcast %cst_63 : f32 to vector<24x512xf32>
    %140 = arith.addf %139, %138 : vector<24x512xf32>
    %141 = arith.mulf %130, %140 : vector<24x512xf32>
    %142 = arith.truncf %141 : vector<24x512xf32> to vector<24x512xbf16>
    %c0_64 = arith.constant 0 : index
    %c0_65 = arith.constant 0 : index
    %c0_66 = arith.constant 0 : index
    %143 = vector.load %arg14[%c0_64, %c0_65, %c0_66] : memref<2x512x128xbf16, #tpu.memory_space<vmem>>, vector<1x512x128xbf16>
    %144 = vector.shape_cast %143 : vector<1x512x128xbf16> to vector<512x128xbf16>
    %cst_67 = arith.constant dense<0.000000e+00> : vector<24x128xf32>
    %145 = tpu.matmul %142, %144, %cst_67 {dimension_numbers = #tpu.dot_dimension_numbers<[1], [0], [0], [1], [0, 0, 1, 1], [], []>} : vector<24x512xbf16>, vector<512x128xbf16>, vector<24x128xf32> -> vector<24x128xf32>
    %146 = arith.addf %96, %145 : vector<24x128xf32>
    %c0_68 = arith.constant 0 : index
    %c0_69 = arith.constant 0 : index
    %c0_70 = arith.constant 0 : index
    %147 = vector.load %arg15[%c0_68, %c0_69, %c0_70] : memref<2x1x128xf32, #tpu.memory_space<vmem>>, vector<1x1x128xf32>
    %148 = vector.shape_cast %147 : vector<1x1x128xf32> to vector<1x128xf32>
    %149 = vector.broadcast %148 : vector<1x128xf32> to vector<24x128xf32>
    %150 = arith.addf %146, %149 : vector<24x128xf32>
    %c1 = arith.constant 1 : index
    %c0_71 = arith.constant 0 : index
    %c0_72 = arith.constant 0 : index
    %151 = vector.load %arg4[%c1, %c0_71, %c0_72] : memref<2x1x128xf32, #tpu.memory_space<vmem>>, vector<1x1x128xf32>
    %152 = vector.shape_cast %151 : vector<1x1x128xf32> to vector<1x128xf32>
    %c1_73 = arith.constant 1 : index
    %c0_74 = arith.constant 0 : index
    %c0_75 = arith.constant 0 : index
    %153 = vector.load %arg5[%c1_73, %c0_74, %c0_75] : memref<2x1x128xf32, #tpu.memory_space<vmem>>, vector<1x1x128xf32>
    %154 = vector.shape_cast %153 : vector<1x1x128xf32> to vector<1x128xf32>
    %cst_76 = arith.constant dense<0.000000e+00> : vector<24xf32>
    %155 = vector.multi_reduction <add>, %150, %cst_76 [1] : vector<24x128xf32> to vector<24xf32>
    %156 = vector.shape_cast %155 : vector<24xf32> to vector<24x1xf32>
    %cst_77 = arith.constant 1.280000e+02 : f32
    %157 = vector.broadcast %cst_77 : f32 to vector<24x1xf32>
    %158 = arith.divf %156, %157 : vector<24x1xf32>
    %159 = vector.broadcast %158 : vector<24x1xf32> to vector<24x128xf32>
    %160 = arith.subf %150, %159 : vector<24x128xf32>
    %161 = arith.mulf %160, %160 : vector<24x128xf32>
    %cst_78 = arith.constant dense<0.000000e+00> : vector<24xf32>
    %162 = vector.multi_reduction <add>, %161, %cst_78 [1] : vector<24x128xf32> to vector<24xf32>
    %163 = vector.shape_cast %162 : vector<24xf32> to vector<24x1xf32>
    %cst_79 = arith.constant 1.280000e+02 : f32
    %164 = vector.broadcast %cst_79 : f32 to vector<24x1xf32>
    %165 = arith.divf %163, %164 : vector<24x1xf32>
    %cst_80 = arith.constant 9.99999997E-7 : f32
    %166 = vector.broadcast %cst_80 : f32 to vector<24x1xf32>
    %167 = arith.addf %165, %166 : vector<24x1xf32>
    %168 = math.rsqrt %167 : vector<24x1xf32>
    %169 = vector.broadcast %168 : vector<24x1xf32> to vector<24x128xf32>
    %170 = arith.mulf %160, %169 : vector<24x128xf32>
    %171 = vector.broadcast %152 : vector<1x128xf32> to vector<24x128xf32>
    %172 = arith.mulf %170, %171 : vector<24x128xf32>
    %173 = vector.broadcast %154 : vector<1x128xf32> to vector<24x128xf32>
    %174 = arith.addf %172, %173 : vector<24x128xf32>
    %175 = arith.truncf %174 : vector<24x128xf32> to vector<24x128xbf16>
    %c1_81 = arith.constant 1 : index
    %c0_82 = arith.constant 0 : index
    %c0_83 = arith.constant 0 : index
    %176 = vector.load %arg6[%c1_81, %c0_82, %c0_83] : memref<2x128x384xbf16, #tpu.memory_space<vmem>>, vector<1x128x384xbf16>
    %177 = vector.shape_cast %176 : vector<1x128x384xbf16> to vector<128x384xbf16>
    %cst_84 = arith.constant dense<0.000000e+00> : vector<24x384xf32>
    %178 = tpu.matmul %175, %177, %cst_84 {dimension_numbers = #tpu.dot_dimension_numbers<[1], [0], [0], [1], [0, 0, 1, 1], [], []>} : vector<24x128xbf16>, vector<128x384xbf16>, vector<24x384xf32> -> vector<24x384xf32>
    %c1_85 = arith.constant 1 : index
    %c0_86 = arith.constant 0 : index
    %c0_87 = arith.constant 0 : index
    %179 = vector.load %arg7[%c1_85, %c0_86, %c0_87] : memref<2x1x384xf32, #tpu.memory_space<vmem>>, vector<1x1x384xf32>
    %180 = vector.shape_cast %179 : vector<1x1x384xf32> to vector<1x384xf32>
    %181 = vector.broadcast %180 : vector<1x384xf32> to vector<24x384xf32>
    %182 = arith.addf %178, %181 : vector<24x384xf32>
    %183 = vector.extract_strided_slice %182 {offsets = [0, 0], sizes = [24, 64], strides = [1, 1]} : vector<24x384xf32> to vector<24x64xf32>
    %184 = vector.extract_strided_slice %182 {offsets = [0, 128], sizes = [24, 64], strides = [1, 1]} : vector<24x384xf32> to vector<24x64xf32>
    %185 = vector.extract_strided_slice %182 {offsets = [0, 256], sizes = [24, 64], strides = [1, 1]} : vector<24x384xf32> to vector<24x64xf32>
    %186 = arith.truncf %183 : vector<24x64xf32> to vector<24x64xbf16>
    %187 = arith.truncf %184 : vector<24x64xf32> to vector<24x64xbf16>
    %cst_88 = arith.constant dense<0.000000e+00> : vector<24x24xf32>
    %188 = tpu.matmul %186, %187, %cst_88 {dimension_numbers = #tpu.dot_dimension_numbers<[1], [1], [0], [0], [0, 0, 1, 0], [], []>} : vector<24x64xbf16>, vector<24x64xbf16>, vector<24x24xf32> -> vector<24x24xf32>
    %cst_89 = arith.constant 1.250000e-01 : f32
    %189 = vector.broadcast %cst_89 : f32 to vector<24x24xf32>
    %190 = arith.mulf %188, %189 : vector<24x24xf32>
    %191 = arith.addf %190, %10 : vector<24x24xf32>
    %cst_90 = arith.constant dense<0xFF800000> : vector<24xf32>
    %192 = vector.multi_reduction <maximumf>, %191, %cst_90 [1] : vector<24x24xf32> to vector<24xf32>
    %193 = vector.shape_cast %192 : vector<24xf32> to vector<24x1xf32>
    %194 = vector.broadcast %193 : vector<24x1xf32> to vector<24x24xf32>
    %195 = arith.subf %191, %194 : vector<24x24xf32>
    %196 = math.exp %195 : vector<24x24xf32>
    %cst_91 = arith.constant dense<0.000000e+00> : vector<24xf32>
    %197 = vector.multi_reduction <add>, %196, %cst_91 [1] : vector<24x24xf32> to vector<24xf32>
    %198 = vector.shape_cast %197 : vector<24xf32> to vector<24x1xf32>
    %199 = tpu.reciprocal %198 {approx = true} : vector<24x1xf32> -> vector<24x1xf32>
    %200 = vector.broadcast %199 : vector<24x1xf32> to vector<24x24xf32>
    %201 = arith.mulf %196, %200 : vector<24x24xf32>
    %202 = arith.truncf %201 : vector<24x24xf32> to vector<24x24xbf16>
    %203 = arith.truncf %185 : vector<24x64xf32> to vector<24x64xbf16>
    %cst_92 = arith.constant dense<0.000000e+00> : vector<24x64xf32>
    %204 = tpu.matmul %202, %203, %cst_92 {dimension_numbers = #tpu.dot_dimension_numbers<[1], [0], [0], [1], [0, 0, 1, 1], [], []>} : vector<24x24xbf16>, vector<24x64xbf16>, vector<24x64xf32> -> vector<24x64xf32>
    %205 = vector.extract_strided_slice %182 {offsets = [0, 64], sizes = [24, 64], strides = [1, 1]} : vector<24x384xf32> to vector<24x64xf32>
    %206 = vector.extract_strided_slice %182 {offsets = [0, 192], sizes = [24, 64], strides = [1, 1]} : vector<24x384xf32> to vector<24x64xf32>
    %207 = vector.extract_strided_slice %182 {offsets = [0, 320], sizes = [24, 64], strides = [1, 1]} : vector<24x384xf32> to vector<24x64xf32>
    %208 = arith.truncf %205 : vector<24x64xf32> to vector<24x64xbf16>
    %209 = arith.truncf %206 : vector<24x64xf32> to vector<24x64xbf16>
    %cst_93 = arith.constant dense<0.000000e+00> : vector<24x24xf32>
    %210 = tpu.matmul %208, %209, %cst_93 {dimension_numbers = #tpu.dot_dimension_numbers<[1], [1], [0], [0], [0, 0, 1, 0], [], []>} : vector<24x64xbf16>, vector<24x64xbf16>, vector<24x24xf32> -> vector<24x24xf32>
    %cst_94 = arith.constant 1.250000e-01 : f32
    %211 = vector.broadcast %cst_94 : f32 to vector<24x24xf32>
    %212 = arith.mulf %210, %211 : vector<24x24xf32>
    %213 = arith.addf %212, %10 : vector<24x24xf32>
    %cst_95 = arith.constant dense<0xFF800000> : vector<24xf32>
    %214 = vector.multi_reduction <maximumf>, %213, %cst_95 [1] : vector<24x24xf32> to vector<24xf32>
    %215 = vector.shape_cast %214 : vector<24xf32> to vector<24x1xf32>
    %216 = vector.broadcast %215 : vector<24x1xf32> to vector<24x24xf32>
    %217 = arith.subf %213, %216 : vector<24x24xf32>
    %218 = math.exp %217 : vector<24x24xf32>
    %cst_96 = arith.constant dense<0.000000e+00> : vector<24xf32>
    %219 = vector.multi_reduction <add>, %218, %cst_96 [1] : vector<24x24xf32> to vector<24xf32>
    %220 = vector.shape_cast %219 : vector<24xf32> to vector<24x1xf32>
    %221 = tpu.reciprocal %220 {approx = true} : vector<24x1xf32> -> vector<24x1xf32>
    %222 = vector.broadcast %221 : vector<24x1xf32> to vector<24x24xf32>
    %223 = arith.mulf %218, %222 : vector<24x24xf32>
    %224 = arith.truncf %223 : vector<24x24xf32> to vector<24x24xbf16>
    %225 = arith.truncf %207 : vector<24x64xf32> to vector<24x64xbf16>
    %cst_97 = arith.constant dense<0.000000e+00> : vector<24x64xf32>
    %226 = tpu.matmul %224, %225, %cst_97 {dimension_numbers = #tpu.dot_dimension_numbers<[1], [0], [0], [1], [0, 0, 1, 1], [], []>} : vector<24x24xbf16>, vector<24x64xbf16>, vector<24x64xf32> -> vector<24x64xf32>
    %227 = tpu.concatenate %204, %226 in 1 : vector<24x64xf32>, vector<24x64xf32> -> vector<24x128xf32>
    %228 = arith.truncf %227 : vector<24x128xf32> to vector<24x128xbf16>
    %c1_98 = arith.constant 1 : index
    %c0_99 = arith.constant 0 : index
    %c0_100 = arith.constant 0 : index
    %229 = vector.load %arg8[%c1_98, %c0_99, %c0_100] : memref<2x128x128xbf16, #tpu.memory_space<vmem>>, vector<1x128x128xbf16>
    %230 = vector.shape_cast %229 : vector<1x128x128xbf16> to vector<128x128xbf16>
    %cst_101 = arith.constant dense<0.000000e+00> : vector<24x128xf32>
    %231 = tpu.matmul %228, %230, %cst_101 {dimension_numbers = #tpu.dot_dimension_numbers<[1], [0], [0], [1], [0, 0, 1, 1], [], []>} : vector<24x128xbf16>, vector<128x128xbf16>, vector<24x128xf32> -> vector<24x128xf32>
    %232 = arith.addf %150, %231 : vector<24x128xf32>
    %c1_102 = arith.constant 1 : index
    %c0_103 = arith.constant 0 : index
    %c0_104 = arith.constant 0 : index
    %233 = vector.load %arg9[%c1_102, %c0_103, %c0_104] : memref<2x1x128xf32, #tpu.memory_space<vmem>>, vector<1x1x128xf32>
    %234 = vector.shape_cast %233 : vector<1x1x128xf32> to vector<1x128xf32>
    %235 = vector.broadcast %234 : vector<1x128xf32> to vector<24x128xf32>
    %236 = arith.addf %232, %235 : vector<24x128xf32>
    %c1_105 = arith.constant 1 : index
    %c0_106 = arith.constant 0 : index
    %c0_107 = arith.constant 0 : index
    %237 = vector.load %arg10[%c1_105, %c0_106, %c0_107] : memref<2x1x128xf32, #tpu.memory_space<vmem>>, vector<1x1x128xf32>
    %238 = vector.shape_cast %237 : vector<1x1x128xf32> to vector<1x128xf32>
    %c1_108 = arith.constant 1 : index
    %c0_109 = arith.constant 0 : index
    %c0_110 = arith.constant 0 : index
    %239 = vector.load %arg11[%c1_108, %c0_109, %c0_110] : memref<2x1x128xf32, #tpu.memory_space<vmem>>, vector<1x1x128xf32>
    %240 = vector.shape_cast %239 : vector<1x1x128xf32> to vector<1x128xf32>
    %cst_111 = arith.constant dense<0.000000e+00> : vector<24xf32>
    %241 = vector.multi_reduction <add>, %236, %cst_111 [1] : vector<24x128xf32> to vector<24xf32>
    %242 = vector.shape_cast %241 : vector<24xf32> to vector<24x1xf32>
    %cst_112 = arith.constant 1.280000e+02 : f32
    %243 = vector.broadcast %cst_112 : f32 to vector<24x1xf32>
    %244 = arith.divf %242, %243 : vector<24x1xf32>
    %245 = vector.broadcast %244 : vector<24x1xf32> to vector<24x128xf32>
    %246 = arith.subf %236, %245 : vector<24x128xf32>
    %247 = arith.mulf %246, %246 : vector<24x128xf32>
    %cst_113 = arith.constant dense<0.000000e+00> : vector<24xf32>
    %248 = vector.multi_reduction <add>, %247, %cst_113 [1] : vector<24x128xf32> to vector<24xf32>
    %249 = vector.shape_cast %248 : vector<24xf32> to vector<24x1xf32>
    %cst_114 = arith.constant 1.280000e+02 : f32
    %250 = vector.broadcast %cst_114 : f32 to vector<24x1xf32>
    %251 = arith.divf %249, %250 : vector<24x1xf32>
    %cst_115 = arith.constant 9.99999997E-7 : f32
    %252 = vector.broadcast %cst_115 : f32 to vector<24x1xf32>
    %253 = arith.addf %251, %252 : vector<24x1xf32>
    %254 = math.rsqrt %253 : vector<24x1xf32>
    %255 = vector.broadcast %254 : vector<24x1xf32> to vector<24x128xf32>
    %256 = arith.mulf %246, %255 : vector<24x128xf32>
    %257 = vector.broadcast %238 : vector<1x128xf32> to vector<24x128xf32>
    %258 = arith.mulf %256, %257 : vector<24x128xf32>
    %259 = vector.broadcast %240 : vector<1x128xf32> to vector<24x128xf32>
    %260 = arith.addf %258, %259 : vector<24x128xf32>
    %261 = arith.truncf %260 : vector<24x128xf32> to vector<24x128xbf16>
    %c1_116 = arith.constant 1 : index
    %c0_117 = arith.constant 0 : index
    %c0_118 = arith.constant 0 : index
    %262 = vector.load %arg12[%c1_116, %c0_117, %c0_118] : memref<2x128x512xbf16, #tpu.memory_space<vmem>>, vector<1x128x512xbf16>
    %263 = vector.shape_cast %262 : vector<1x128x512xbf16> to vector<128x512xbf16>
    %cst_119 = arith.constant dense<0.000000e+00> : vector<24x512xf32>
    %264 = tpu.matmul %261, %263, %cst_119 {dimension_numbers = #tpu.dot_dimension_numbers<[1], [0], [0], [1], [0, 0, 1, 1], [], []>} : vector<24x128xbf16>, vector<128x512xbf16>, vector<24x512xf32> -> vector<24x512xf32>
    %c1_120 = arith.constant 1 : index
    %c0_121 = arith.constant 0 : index
    %c0_122 = arith.constant 0 : index
    %265 = vector.load %arg13[%c1_120, %c0_121, %c0_122] : memref<2x1x512xf32, #tpu.memory_space<vmem>>, vector<1x1x512xf32>
    %266 = vector.shape_cast %265 : vector<1x1x512xf32> to vector<1x512xf32>
    %267 = vector.broadcast %266 : vector<1x512xf32> to vector<24x512xf32>
    %268 = arith.addf %264, %267 : vector<24x512xf32>
    %cst_123 = arith.constant 5.000000e-01 : f32
    %269 = vector.broadcast %cst_123 : f32 to vector<24x512xf32>
    %270 = arith.mulf %269, %268 : vector<24x512xf32>
    %cst_124 = arith.constant 4.471500e-02 : f32
    %271 = vector.broadcast %cst_124 : f32 to vector<24x512xf32>
    %272 = arith.mulf %271, %268 : vector<24x512xf32>
    %273 = arith.mulf %272, %268 : vector<24x512xf32>
    %274 = arith.mulf %273, %268 : vector<24x512xf32>
    %275 = arith.addf %268, %274 : vector<24x512xf32>
    %cst_125 = arith.constant 0.797884583 : f32
    %276 = vector.broadcast %cst_125 : f32 to vector<24x512xf32>
    %277 = arith.mulf %276, %275 : vector<24x512xf32>
    %278 = math.tanh %277 : vector<24x512xf32>
    %cst_126 = arith.constant 1.000000e+00 : f32
    %279 = vector.broadcast %cst_126 : f32 to vector<24x512xf32>
    %280 = arith.addf %279, %278 : vector<24x512xf32>
    %281 = arith.mulf %270, %280 : vector<24x512xf32>
    %282 = arith.truncf %281 : vector<24x512xf32> to vector<24x512xbf16>
    %c1_127 = arith.constant 1 : index
    %c0_128 = arith.constant 0 : index
    %c0_129 = arith.constant 0 : index
    %283 = vector.load %arg14[%c1_127, %c0_128, %c0_129] : memref<2x512x128xbf16, #tpu.memory_space<vmem>>, vector<1x512x128xbf16>
    %284 = vector.shape_cast %283 : vector<1x512x128xbf16> to vector<512x128xbf16>
    %cst_130 = arith.constant dense<0.000000e+00> : vector<24x128xf32>
    %285 = tpu.matmul %282, %284, %cst_130 {dimension_numbers = #tpu.dot_dimension_numbers<[1], [0], [0], [1], [0, 0, 1, 1], [], []>} : vector<24x512xbf16>, vector<512x128xbf16>, vector<24x128xf32> -> vector<24x128xf32>
    %286 = arith.addf %236, %285 : vector<24x128xf32>
    %c1_131 = arith.constant 1 : index
    %c0_132 = arith.constant 0 : index
    %c0_133 = arith.constant 0 : index
    %287 = vector.load %arg15[%c1_131, %c0_132, %c0_133] : memref<2x1x128xf32, #tpu.memory_space<vmem>>, vector<1x1x128xf32>
    %288 = vector.shape_cast %287 : vector<1x1x128xf32> to vector<1x128xf32>
    %289 = vector.broadcast %288 : vector<1x128xf32> to vector<24x128xf32>
    %290 = arith.addf %286, %289 : vector<24x128xf32>
    %c0_134 = arith.constant 0 : index
    %c0_135 = arith.constant 0 : index
    %291 = vector.load %arg16[%c0_134, %c0_135] : memref<1x128xf32, #tpu.memory_space<vmem>>, vector<1x128xf32>
    %c0_136 = arith.constant 0 : index
    %c0_137 = arith.constant 0 : index
    %292 = vector.load %arg17[%c0_136, %c0_137] : memref<1x128xf32, #tpu.memory_space<vmem>>, vector<1x128xf32>
    %cst_138 = arith.constant dense<0.000000e+00> : vector<24xf32>
    %293 = vector.multi_reduction <add>, %290, %cst_138 [1] : vector<24x128xf32> to vector<24xf32>
    %294 = vector.shape_cast %293 : vector<24xf32> to vector<24x1xf32>
    %cst_139 = arith.constant 1.280000e+02 : f32
    %295 = vector.broadcast %cst_139 : f32 to vector<24x1xf32>
    %296 = arith.divf %294, %295 : vector<24x1xf32>
    %297 = vector.broadcast %296 : vector<24x1xf32> to vector<24x128xf32>
    %298 = arith.subf %290, %297 : vector<24x128xf32>
    %299 = arith.mulf %298, %298 : vector<24x128xf32>
    %cst_140 = arith.constant dense<0.000000e+00> : vector<24xf32>
    %300 = vector.multi_reduction <add>, %299, %cst_140 [1] : vector<24x128xf32> to vector<24xf32>
    %301 = vector.shape_cast %300 : vector<24xf32> to vector<24x1xf32>
    %cst_141 = arith.constant 1.280000e+02 : f32
    %302 = vector.broadcast %cst_141 : f32 to vector<24x1xf32>
    %303 = arith.divf %301, %302 : vector<24x1xf32>
    %cst_142 = arith.constant 9.99999997E-7 : f32
    %304 = vector.broadcast %cst_142 : f32 to vector<24x1xf32>
    %305 = arith.addf %303, %304 : vector<24x1xf32>
    %306 = math.rsqrt %305 : vector<24x1xf32>
    %307 = vector.broadcast %306 : vector<24x1xf32> to vector<24x128xf32>
    %308 = arith.mulf %298, %307 : vector<24x128xf32>
    %309 = vector.broadcast %291 : vector<1x128xf32> to vector<24x128xf32>
    %310 = arith.mulf %308, %309 : vector<24x128xf32>
    %311 = vector.broadcast %292 : vector<1x128xf32> to vector<24x128xf32>
    %312 = arith.addf %310, %311 : vector<24x128xf32>
    %313 = tpu.iota {dimensions = array<i32: 0>} : vector<24x1xi32>
    %c1_i32 = arith.constant 1 : i32
    %314 = vector.broadcast %c1_i32 : i32 to vector<24x1xi32>
    %315 = arith.cmpi sge, %313, %314 : vector<24x1xi32>
    %c17_i32_143 = arith.constant 17 : i32
    %316 = vector.broadcast %c17_i32_143 : i32 to vector<24x1xi32>
    %317 = arith.cmpi slt, %313, %316 : vector<24x1xi32>
    %318 = arith.andi %315, %317 : vector<24x1xi1>
    %319 = arith.extui %318 : vector<24x1xi1> to vector<24x1xi32>
    %320 = arith.sitofp %319 : vector<24x1xi32> to vector<24x1xf32>
    %321 = vector.extract_strided_slice %312 {offsets = [0, 0], sizes = [1, 128], strides = [1, 1]} : vector<24x128xf32> to vector<1x128xf32>
    %322 = vector.broadcast %320 : vector<24x1xf32> to vector<24x128xf32>
    %323 = arith.mulf %312, %322 : vector<24x128xf32>
    %cst_144 = arith.constant dense<0.000000e+00> : vector<128xf32>
    %324 = vector.multi_reduction <add>, %323, %cst_144 [0] : vector<24x128xf32> to vector<128xf32>
    %325 = vector.shape_cast %324 : vector<128xf32> to vector<1x128xf32>
    %cst_145 = arith.constant 6.250000e-02 : f32
    %326 = vector.broadcast %cst_145 : f32 to vector<1x128xf32>
    %327 = arith.mulf %325, %326 : vector<1x128xf32>
    %328 = tpu.concatenate %321, %327 in 1 : vector<1x128xf32>, vector<1x128xf32> -> vector<1x256xf32>
    %329 = vector.shape_cast %328 : vector<1x256xf32> to vector<1x1x256xf32>
    %c0_146 = arith.constant 0 : index
    %c0_147 = arith.constant 0 : index
    %c0_148 = arith.constant 0 : index
    %330 = vector.load %arg18[%c0_146, %c0_147, %c0_148] : memref<1x1x256xf32, #tpu.memory_space<vmem>>, vector<1x1x256xf32>
    tpu.vector_store %arg18[%c0_146, %c0_147, %c0_148], %329 {strides = array<i32>} : memref<1x1x256xf32, #tpu.memory_space<vmem>>, vector<1x1x256xf32>,
    return
  }
  func.func @transform_0(%arg0: i32) -> (i32, i32) {
    %c0_i32 = arith.constant 0 : i32
    %c0_i32_0 = arith.constant 0 : i32
    return %arg0, %c0_i32 : i32, i32
  }
  func.func @transform_1(%arg0: i32) -> (i32, i32) {
    %c0_i32 = arith.constant 0 : i32
    %c0_i32_0 = arith.constant 0 : i32
    %c0_i32_1 = arith.constant 0 : i32
    return %c0_i32, %c0_i32_0 : i32, i32
  }
  func.func @transform_2(%arg0: i32) -> (i32, i32) {
    %c0_i32 = arith.constant 0 : i32
    %c0_i32_0 = arith.constant 0 : i32
    %c0_i32_1 = arith.constant 0 : i32
    return %c0_i32, %c0_i32_0 : i32, i32
  }
  func.func @transform_3(%arg0: i32) -> (i32, i32, i32) {
    %c0_i32 = arith.constant 0 : i32
    %c0_i32_0 = arith.constant 0 : i32
    %c0_i32_1 = arith.constant 0 : i32
    %c0_i32_2 = arith.constant 0 : i32
    return %c0_i32, %c0_i32_0, %c0_i32_1 : i32, i32, i32
  }
  func.func @transform_4(%arg0: i32) -> (i32, i32, i32) {
    %c0_i32 = arith.constant 0 : i32
    %c0_i32_0 = arith.constant 0 : i32
    %c0_i32_1 = arith.constant 0 : i32
    %c0_i32_2 = arith.constant 0 : i32
    return %c0_i32, %c0_i32_0, %c0_i32_1 : i32, i32, i32
  }
  func.func @transform_5(%arg0: i32) -> (i32, i32, i32) {
    %c0_i32 = arith.constant 0 : i32
    %c0_i32_0 = arith.constant 0 : i32
    %c0_i32_1 = arith.constant 0 : i32
    %c0_i32_2 = arith.constant 0 : i32
    return %c0_i32, %c0_i32_0, %c0_i32_1 : i32, i32, i32
  }
  func.func @transform_6(%arg0: i32) -> (i32, i32, i32) {
    %c0_i32 = arith.constant 0 : i32
    %c0_i32_0 = arith.constant 0 : i32
    %c0_i32_1 = arith.constant 0 : i32
    %c0_i32_2 = arith.constant 0 : i32
    return %c0_i32, %c0_i32_0, %c0_i32_1 : i32, i32, i32
  }
  func.func @transform_7(%arg0: i32) -> (i32, i32, i32) {
    %c0_i32 = arith.constant 0 : i32
    %c0_i32_0 = arith.constant 0 : i32
    %c0_i32_1 = arith.constant 0 : i32
    %c0_i32_2 = arith.constant 0 : i32
    return %c0_i32, %c0_i32_0, %c0_i32_1 : i32, i32, i32
  }
  func.func @transform_8(%arg0: i32) -> (i32, i32, i32) {
    %c0_i32 = arith.constant 0 : i32
    %c0_i32_0 = arith.constant 0 : i32
    %c0_i32_1 = arith.constant 0 : i32
    %c0_i32_2 = arith.constant 0 : i32
    return %c0_i32, %c0_i32_0, %c0_i32_1 : i32, i32, i32
  }
  func.func @transform_9(%arg0: i32) -> (i32, i32, i32) {
    %c0_i32 = arith.constant 0 : i32
    %c0_i32_0 = arith.constant 0 : i32
    %c0_i32_1 = arith.constant 0 : i32
    %c0_i32_2 = arith.constant 0 : i32
    return %c0_i32, %c0_i32_0, %c0_i32_1 : i32, i32, i32
  }
  func.func @transform_10(%arg0: i32) -> (i32, i32, i32) {
    %c0_i32 = arith.constant 0 : i32
    %c0_i32_0 = arith.constant 0 : i32
    %c0_i32_1 = arith.constant 0 : i32
    %c0_i32_2 = arith.constant 0 : i32
    return %c0_i32, %c0_i32_0, %c0_i32_1 : i32, i32, i32
  }
  func.func @transform_11(%arg0: i32) -> (i32, i32, i32) {
    %c0_i32 = arith.constant 0 : i32
    %c0_i32_0 = arith.constant 0 : i32
    %c0_i32_1 = arith.constant 0 : i32
    %c0_i32_2 = arith.constant 0 : i32
    return %c0_i32, %c0_i32_0, %c0_i32_1 : i32, i32, i32
  }
  func.func @transform_12(%arg0: i32) -> (i32, i32, i32) {
    %c0_i32 = arith.constant 0 : i32
    %c0_i32_0 = arith.constant 0 : i32
    %c0_i32_1 = arith.constant 0 : i32
    %c0_i32_2 = arith.constant 0 : i32
    return %c0_i32, %c0_i32_0, %c0_i32_1 : i32, i32, i32
  }
  func.func @transform_13(%arg0: i32) -> (i32, i32, i32) {
    %c0_i32 = arith.constant 0 : i32
    %c0_i32_0 = arith.constant 0 : i32
    %c0_i32_1 = arith.constant 0 : i32
    %c0_i32_2 = arith.constant 0 : i32
    return %c0_i32, %c0_i32_0, %c0_i32_1 : i32, i32, i32
  }
  func.func @transform_14(%arg0: i32) -> (i32, i32, i32) {
    %c0_i32 = arith.constant 0 : i32
    %c0_i32_0 = arith.constant 0 : i32
    %c0_i32_1 = arith.constant 0 : i32
    %c0_i32_2 = arith.constant 0 : i32
    return %c0_i32, %c0_i32_0, %c0_i32_1 : i32, i32, i32
  }
  func.func @transform_15(%arg0: i32) -> (i32, i32) {
    %c0_i32 = arith.constant 0 : i32
    %c0_i32_0 = arith.constant 0 : i32
    %c0_i32_1 = arith.constant 0 : i32
    return %c0_i32, %c0_i32_0 : i32, i32
  }
  func.func @transform_16(%arg0: i32) -> (i32, i32) {
    %c0_i32 = arith.constant 0 : i32
    %c0_i32_0 = arith.constant 0 : i32
    %c0_i32_1 = arith.constant 0 : i32
    return %c0_i32, %c0_i32_0 : i32, i32
  }
  func.func @transform_17(%arg0: i32) -> (i32, i32, i32) {
    %c0_i32 = arith.constant 0 : i32
    %c0_i32_0 = arith.constant 0 : i32
    %c0_i32_1 = arith.constant 0 : i32
    return %arg0, %c0_i32, %c0_i32_0 : i32, i32, i32
  }
}

</mosaic_0001>

<bundles_post_ra>
// kernel: image_embedding_forward.1
= control target key start
LH: loop header
LB: loop body
LE: loop exit
PB: predicated region body
PF: predicated region fallthrough
CT: control target
= control target key end

     0   :  { %s5490_s24 = smov 0   ;;  %s6668_s0 = inlined_call_operand.vmem [shape: bf16[48,192], index: 0, kind: input, shape index: {}]   ;;  %s6669_s1 = inlined_call_operand.vmem [shape: bf16[192,128], index: 1, kind: input, shape index: {}]   ;;  %s6670_s2 = inlined_call_operand.vmem [shape: f32[24,128], index: 2, kind: input, shape index: {}]   ;;  %s6671_s3 = inlined_call_operand.vmem [shape: f32[2,1,128], index: 3, kind: input, shape index: {}]   ;;  %s6672_s4 = inlined_call_operand.vmem [shape: f32[2,1,128], index: 4, kind: input, shape index: {}]   ;;  %s6673_s5 = inlined_call_operand.vmem [shape: bf16[2,128,384], index: 5, kind: input, shape index: {}]   ;;  %s6674_s6 = inlined_call_operand.vmem [shape: f32[2,1,384], index: 6, kind: input, shape index: {}]   ;;  %s6675_s7 = inlined_call_operand.vmem [shape: bf16[2,128,128], index: 7, kind: input, shape index: {}]   ;;  %s6676_s8 = inlined_call_operand.vmem [shape: f32[2,1,128], index: 8, kind: input, shape index: {}]   ;;  %s6677_s9 = inlined_call_operand.vmem [shape: f32[2,1,128], index: 9, kind: input, shape index: {}]   ;;  %s6678_s10 = inlined_call_operand.vmem [shape: f32[2,1,128], index: 10, kind: input, shape index: {}]   ;;  %s6679_s11 = inlined_call_operand.vmem [shape: bf16[2,128,512], index: 11, kind: input, shape index: {}]   ;;  %s6680_s12 = inlined_call_operand.vmem [shape: f32[2,1,512], index: 12, kind: input, shape index: {}]   ;;  %s6681_s13 = inlined_call_operand.vmem [shape: bf16[2,512,128], index: 13, kind: input, shape index: {}]   ;;  %s6682_s14 = inlined_call_operand.vmem [shape: f32[2,1,128], index: 14, kind: input, shape index: {}]   ;;  %s6683_s15 = inlined_call_operand.vmem [shape: f32[1,128], index: 15, kind: input, shape index: {}]   ;;  %s6684_s16 = inlined_call_operand.vmem [shape: f32[1,128], index: 16, kind: input, shape index: {}]   ;;  %s6685_s17 = inlined_call_operand.vmem [shape: f32[2,1,256], index: 17, kind: output, shape index: {}]  }
   0x1   :  { %6687 = sst [smem:[#allocation2_spill]] %s6668_s0 }
   0x2   :  { %6688 = sst [smem:[#allocation3_spill]] %s6669_s1 }
   0x3 LB: > { %s5496_s25 = sadd.s32 4294967295, %s5393_s24   ;;  %p4240_p0 = scmp.ge.s32.totalorder %s5393_s24, 1  ;;  %s5393_s24 = sphi %s5490_s24, %s27_s24  }
   0x4   : > { %p489_p1 = scmp.lt.s32.totalorder %s5393_s24, 3 }
   0x6   : > { %p490_p2 = pnand %p4240_p0, %p489_p1 }
   0x7   : > { %s6689_s28 = sld [smem:[#allocation3_spill]] (!%p490_p2)  ;;  %v5395_v1 = vmov (!%p490_p2), 0   ;;  %s541_s29 = smul.u32 (!%p490_p2), 3, %s5496_s25  ;;  %vm670_vm0 = vcmask (!%p490_p2), 523264   ;;  %v580_v18 = vld [vmem:[%s6670_s2] sm:$0xff] (!%p490_p2)  ;;  %v581_v22 = vld [vmem:[%s6670_s2 + $0x8] sm:$0xff] (!%p490_p2) }
   0x8   : > { %493 = sbr.rel (%p490_p2) target bundleno = 6154 (0x180a), region = 88  ;;  %677 = vmatprep.subr.bf16.mxu0 (!%p490_p2), %v5395_v1  ;;  %994 = vmatprep.mubr.bf16.mxu1 (!%p490_p2), %v5395_v1  ;;  %s6690_s26 = sld [smem:[#allocation2_spill]] (!%p490_p2)  ;;  %v582_v26 = vld [vmem:[%s6670_s2 + $0x10] sm:$0xff] (!%p490_p2)  ;;  %v5023_v33 = vld [vmem:[%s6673_s5] ss:$12 sps:$4 sm:$0xff] (!%p490_p2)   ;;  %vm1175_vm1 = vcmask (!%p490_p2), 1043456  }
   0x9   : > { %p542_p3 = scmp.lt.s32.totalorder (!%p490_p2), %s541_s29, 5  ;;  %v5021_v32 = vld [vmem:[%s6673_s5 + $0x4] ss:$12 sps:$4 sm:$0xff] (!%p490_p2)   ;;  %v5024_v34 = vld [vmem:[%s6673_s5 + $0x1c] ss:$12 sps:$4 sm:$0xff] (!%p490_p2)   ;;  %vm1131_vm3 = vcmask (!%p490_p2), 195584  }
   0xa   : > { %962 = vmatprep.subr.bf16.mxu1 (!%p490_p2), %v5021_v32  ;;  %v5026_v35 = vld [vmem:[%s6673_s5 + $0x18] ss:$12 sps:$4 sm:$0xff] (!%p490_p2)   ;;  %v5027_v48 = vld [vmem:[%s6673_s5 + $0x34] ss:$12 sps:$4 sm:$0xff] (!%p490_p2)   ;;  %v5029_v49 = vld [vmem:[%s6673_s5 + $0x30] ss:$12 sps:$4 sm:$0xff] (!%p490_p2)  }
   0xb   : > { %963 = vmatpush1.bf16.msra.mxu1 (!%p490_p2), %v5023_v33  ;;  %v5030_v50 = vld [vmem:[%s6673_s5 + $0x4c] ss:$12 sps:$4 sm:$0xff] (!%p490_p2)   ;;  %v5032_v51 = vld [vmem:[%s6673_s5 + $0x48] ss:$12 sps:$4 sm:$0xff] (!%p490_p2)   ;;  %v5033_v52 = vld [vmem:[%s6673_s5 + $0x64] ss:$12 sps:$4 sm:$0xff] (!%p490_p2)   ;;  %v725_v33 = vlaneseq (!%p490_p2) }
   0xc   : > { %964 = vmatprep.subr.bf16.mxu1 (!%p490_p2), %v5024_v34  ;;  %v5035_v53 = vld [vmem:[%s6673_s5 + $0x60] ss:$12 sps:$4 sm:$0xff] (!%p490_p2)   ;;  %v5036_v54 = vld [vmem:[%s6673_s5 + $0x7c] ss:$12 sps:$4 sm:$0xff] (!%p490_p2)   ;;  %v5038_v55 = vld [vmem:[%s6673_s5 + $0x78] ss:$12 sps:$4 sm:$0xff] (!%p490_p2)  }
   0xd   : > { %v5004_v0 = vld [vmem:[%s6689_s28] sm:$0xff] (!%p490_p2)   ;;  %v5005_v2 = vld [vmem:[%s6689_s28 + $0x8] sm:$0xff] (!%p490_p2)   ;;  %v5006_v3 = vld [vmem:[%s6689_s28 + $0x10] sm:$0xff] (!%p490_p2)   ;;  %v5656_v34 = vshrl.u32 (!%p490_p2), %v725_v33, 7  ;;  %p548_p4 = scmp.lt.s32.totalorder (!%p490_p2), %s5496_s25, 1  ;;  %vm4180_vm6 = vcmp.lt.s32.totalorder (!%p490_p2), %v725_v33, 256 }
   0xe   : > { %678 = vmatpush1.bf16.msra.mxu0 (!%p490_p2), %v5004_v0  ;;  %v5007_v4 = vld [vmem:[%s6689_s28 + $0x18] sm:$0xff] (!%p490_p2)   ;;  %v5008_v5 = vld [vmem:[%s6689_s28 + $0x20] sm:$0xff] (!%p490_p2)   ;;  %v5009_v7 = vld [vmem:[%s6689_s28 + $0x28] sm:$0xff] (!%p490_p2)  }
   0xf   : > { %679 = vmatprep.subr.bf16.mxu0 %v5395_v1  ;;  %s6692_s29 = smov (!%p542_p3, %s541_s29), 5  ;;  %v5010_v8 = vld [vmem:[%s6689_s28 + $0x30] sm:$0xff]   ;;  %v5011_v9 = vld [vmem:[%s6689_s28 + $0x38] sm:$0xff]   ;;  %v5012_v10 = vld [vmem:[%s6689_s28 + $0x40] sm:$0xff]   ;;  %965 = vmatpush1.bf16.msra.mxu1 %v5026_v35  ;;  %v5659_v35 = vsub.s32 0, %v5656_v34  ;;  %vm4133_vm4 = vcmp.ge.s32.totalorder %v5656_v34, 1 }
  0x10   : > { %s4640_s1 = sshll.u32 %s6692_s29, 3  ;;  %v5013_v11 = vld [vmem:[%s6689_s28 + $0x48] sm:$0xff]   ;;  %v5014_v12 = vld [vmem:[%s6689_s28 + $0x50] sm:$0xff]   ;;  %v5015_v13 = vld [vmem:[%s6689_s28 + $0x58] sm:$0xff]   ;;  %966 = vmatprep.subr.bf16.mxu1 %v5027_v48  ;;  %s6694_s25 = smov (!%p548_p4, %s5496_s25), 1 }
  0x11   : > { %s546_s27 = scalar_lea.vmem %s6690_s26, %s4640_s1  ;;  %v5039_v56 = vld [vmem:[%s6673_s5 + $0x94] ss:$12 sps:$4 sm:$0xff]   ;;  %v5041_v57 = vld [vmem:[%s6673_s5 + $0x90] ss:$12 sps:$4 sm:$0xff]   ;;  %v5042_v58 = vld [vmem:[%s6673_s5 + $0xac] ss:$12 sps:$4 sm:$0xff]  }
  0x12   : > { %680 = vmatpush1.bf16.msra.mxu0 %v5005_v2  ;;  %v5018_v6 = vld [vmem:[%s546_s27 + $0x4] ss:$8 sps:$4 sm:$0xff]   ;;  %v555_v14 = vld [vmem:[%s546_s27 + $0x10] sm:$0xff]  ;;  %v5016_v15 = vld [vmem:[%s546_s27] ss:$8 sps:$4 sm:$0xff]   ;;  %s5396_s1 = smov 64  }
  0x13   : > { %681 = vmatprep.subr.bf16.mxu0 %v5395_v1  ;;  %4260 = vmatprep.mubr.msk.bf16.mxu0 %vm670_vm0, %v5018_v6  ;;  %v4247_v16 = vcombine.high %v555_v14, %v555_v14  ;;  %v4246_v17 = vcombine.low %v555_v14, %v555_v14  ;;  %v5044_v59 = vld [vmem:[%s6673_s5 + $0xa8] ss:$12 sps:$4 sm:$0xff]   ;;  %v5052_v32 = vld [vmem:[%s6673_s5 + $0xb0] ss:$12 sps:$4 sm:$0xff]   ;;  %s4243_s22 = sshll.u32 %s6694_s25, 1 }
  0x14   : > { %967 = vmatpush1.bf16.msra.mxu1 %v5029_v49  ;;  %v5045_v60 = vld [vmem:[%s6673_s5 + $0x8] ss:$12 sps:$4 sm:$0xff]   ;;  %s551_s23 = scalar_lea.vmem %s6685_s17, %s4243_s22 }
  0x15   : > { %968 = vmatprep.subr.bf16.mxu1 %v5030_v50 }
  0x16   : > { %682 = vmatpush1.bf16.msra.mxu0 %v5006_v3 }
  0x17   : > { %683 = vmatprep.subr.bf16.mxu0 %v5395_v1 }
  0x18   : > { %969 = vmatpush1.bf16.msra.mxu1 %v5032_v51 }
  0x19   : > { %970 = vmatprep.subr.bf16.mxu1 %v5033_v52 }
  0x1a   : > { %684 = vmatpush1.bf16.msra.mxu0 %v5007_v4 }
  0x1b   : > { %685 = vmatprep.subr.bf16.mxu0 %v5395_v1 }
  0x1c   : > { %971 = vmatpush1.bf16.msra.mxu1 %v5035_v53 }
  0x1d   : > { %972 = vmatprep.subr.bf16.mxu1 %v5036_v54 }
  0x1e   : > { %686 = vmatpush1.bf16.msra.mxu0 %v5008_v5 }
  0x1f   : > { %687 = vmatprep.subr.bf16.mxu0 %v5395_v1 }
  0x20   : > { %973 = vmatpush1.bf16.msra.mxu1 %v5038_v55 }
  0x21   : > { %974 = vmatprep.subr.bf16.mxu1 %v5039_v56 }
  0x22   : > { %688 = vmatpush1.bf16.msra.mxu0 %v5009_v7 }
  0x23   : > { %689 = vmatprep.subr.bf16.mxu0 %v5395_v1 }
  0x24   : > { %975 = vmatpush1.bf16.msra.mxu1 %v5041_v57 }
  0x25   : > { %976 = vmatprep.subr.bf16.mxu1 %v5042_v58 }
  0x26   : > { %690 = vmatpush1.bf16.msra.mxu0 %v5010_v8 }
  0x27   : > { %691 = vmatprep.subr.bf16.mxu0 %v5395_v1 }
  0x28   : > { %977 = vmatpush1.bf16.msra.mxu1 %v5044_v59 }
  0x29   : > { %4825 = vmatprep.subr.bf16.mxu1 %v5045_v60 }
  0x2a   : > { %692 = vmatpush1.bf16.msra.mxu0 %v5011_v9  ;;  %v4262_v9 = vld [vmem:[%s6671_s3] ss:$0 sm:$0xff] }
  0x2b   : > { %693 = vmatprep.subr.bf16.mxu0 %v5395_v1 }
  0x2e   : > { %694 = vmatpush1.bf16.msra.mxu0 %v5012_v10 }
  0x2f   : > { %695 = vmatprep.subr.bf16.mxu0 %v5395_v1 }
  0x32   : > { %696 = vmatpush1.bf16.msra.mxu0 %v5013_v11 }
  0x33   : > { %697 = vmatprep.subr.bf16.mxu0 %v5395_v1 }
  0x36   : > { %698 = vmatpush1.bf16.msra.mxu0 %v5014_v12 }
  0x37   : > { %699 = vmatprep.subr.bf16.mxu0 %v5395_v1 }
  0x3a   : > { %700 = vmatpush1.bf16.msra.mxu0 %v5015_v13  ;;  %v4263_v13 = vld [vmem:[%s6672_s4] ss:$0 sm:$0xff] }
  0x3d   : > { %710 = vmatmul.mubr.bf16.vlgmr.msra.gmra.mrb[0].mxu0 %v5016_v15 }
  0x3e   : > { %4261 = vmatprep.mubr.msk.bf16.mxu0 %vm670_vm0, %v4247_v16 }
  0x45   : > { %718 = vmatmul.mubr.bf16.gmra.mrb[4].mxu0 %v4246_v17 }
 0x110   : > { %v711_v19 = vpop.f32.mrb[0].mxu0 }
 0x111   : > { %v5558_v20 = vadd.f32 %v711_v19, %v580_v18  ;;  %v713_v21 = vpop.f32.mrb[1].mxu0 }
 0x112   : > { %v714_v23 = vpop.f32.mrb[2].mxu0  ;;  %v5046_v21 = vld [vmem:[%s6673_s5 + $0x20] ss:$12 sps:$4 sm:$0xff]  }
 0x113   : > { %v716_v24 = vpop.f32.mrb[3].mxu0  ;;  %731 = vadd.xlane.f32.xlu0 %v5558_v20  ;;  %v5564_v25 = vadd.f32 %v714_v23, %v581_v22  ;;  %v5047_v23 = vld [vmem:[%s6673_s5 + $0x38] ss:$12 sps:$4 sm:$0xff]  }
 0x117   : > { %733 = vadd.xlane.f32.xlu0 %v5564_v25 }
 0x118   : > { %v719_v27 = vpop.f32.mrb[4].mxu0 }
 0x119   : > { %v5570_v28 = vadd.f32 %v719_v27, %v582_v26  ;;  %v721_v29 = vpop.f32.mrb[5].mxu0  ;;  %v5048_v27 = vld [vmem:[%s6673_s5 + $0x50] ss:$12 sps:$4 sm:$0xff]  }
 0x11a   : > { %v722_v30 = vpop.f32.mrb[6].mxu0  ;;  %v5049_v29 = vld [vmem:[%s6673_s5 + $0x68] ss:$12 sps:$4 sm:$0xff]  }
 0x11b   : > { %735 = vadd.xlane.f32.xlu1 %v5570_v28  ;;  %v723_v31 = vpop.f32.mrb[7].mxu0  ;;  %v5050_v30 = vld [vmem:[%s6673_s5 + $0x80] ss:$12 sps:$4 sm:$0xff]  }
 0x11c   : > { %v5051_v31 = vld [vmem:[%s6673_s5 + $0x98] ss:$12 sps:$4 sm:$0xff]  }
 0x1a0   : > { %v732_v36 = vpop.xlane.xlu0 %731 }
 0x1a1   : > { %v738_v37 = vmul.f32 0.0078125, %v732_v36  ;;  %v817_v36 = vld [vmem:[%s6674_s6] sm:$0x7] }
 0x1a3   : > { %v741_v38 = vsub.f32 %v5558_v20, %v738_v37  ;;  %v5665_v37 = vsub.s32 1, %v5656_v34 }
 0x1a4   : > { %v734_v39 = vpop.xlane.xlu0 %733 }
 0x1a5   : > { %v739_v40 = vmul.f32 0.0078125, %v734_v39  ;;  %v744_v41 = vmul.f32 %v741_v38, %v741_v38 }
 0x1a7   : > { %v742_v42 = vsub.f32 %v5564_v25, %v739_v40  ;;  %747 = vadd.xlane.f32.xlu1 %v744_v41  ;;  %v826_v40 = vrot.slane %v817_v36, %v5665_v37 }
 0x1a8   : > { %v736_v43 = vpop.xlane.xlu1 %735 }
 0x1a9   : > { %v740_v44 = vmul.f32 0.0078125, %v736_v43  ;;  %v745_v45 = vmul.f32 %v742_v42, %v742_v42 }
 0x1ab   : > { %v743_v46 = vsub.f32 %v5570_v28, %v740_v44  ;;  %749 = vadd.xlane.f32.xlu0 %v745_v45 }
 0x1ad   : > { %v746_v47 = vmul.f32 %v743_v46, %v743_v46 }
 0x1af   : > { %751 = vadd.xlane.f32.xlu1 %v746_v47 }
 0x234   : > { %v748_v61 = vpop.xlane.xlu1 %747 }
 0x235   : > { %v753_v62 = vmul.f32 0.0078125, %v748_v61 }
 0x237   : > { %v756_v63 = vadd.f32 1e-06, %v753_v62 }
 0x238   : > { %v750_v0 = vpop.xlane.xlu0 %749 }
 0x239   : > { %5261 = vrsqrt.f32 %v756_v63  ;;  %v754_v2 = vmul.f32 0.0078125, %v750_v0 }
 0x23b   : > { %v757_v3 = vadd.f32 1e-06, %v754_v2 }
 0x23c   : > { %v752_v4 = vpop.xlane.xlu1 %751 }
 0x23d   : > { %5263 = vrsqrt.f32 %v757_v3  ;;  %v755_v5 = vmul.f32 0.0078125, %v752_v4 }
 0x23f   : > { %v758_v6 = vadd.f32 1e-06, %v755_v5 }
 0x241   : > { %5265 = vrsqrt.f32 %v758_v6 }
 0x243   : > { %v5262_v7 = vpop.eup %5261 }
 0x244   : > { %v762_v8 = vmul.f32 %v5262_v7, %v741_v38  ;;  %v822_v38 = vrot.slane %v817_v36, %v5659_v35 }
 0x246   : > { %v771_v12 = vmul.f32 %v4262_v9, %v762_v8 }
 0x247   : > { %v5264_v10 = vpop.eup %5263 }
 0x248   : > { %v763_v11 = vmul.f32 %v5264_v10, %v742_v42  ;;  %v780_v16 = vadd.f32 %v4263_v13, %v771_v12 }
 0x24a   : > { %v772_v14 = vmul.f32 %v4262_v9, %v763_v11 }
 0x24b   : > { %v5266_v15 = vpop.eup %5265 }
 0x24c   : > { %v781_v17 = vadd.f32 %v4263_v13, %v772_v14  ;;  %v764_v18 = vmul.f32 %v5266_v15, %v743_v46  ;;  %v726_v15 = vand.u32 127, %v725_v33 }
 0x24e   : > { %v783_v19 = vpack.c.bf16 %v781_v17, %v780_v16  ;;  %v773_v22 = vmul.f32 %v4262_v9, %v764_v18  ;;  %vm727_vm2 = vcmp.lt.s32.totalorder %v726_v15, 17  ;;  %v5397_v18 = vmov -1e+30  }
 0x250   : > { %995 = vmatmul.mubr.bf16.vlgmr.msra.gmra.mrb[0].mxu1 %v783_v19  ;;  %v782_v24 = vadd.f32 %v4263_v13, %v773_v22 }
 0x251   : > { %4826 = vmatpush3.bf16.msra.mxu1 %v5045_v60  ;;  %1004 = vmatprep.mubr.bf16.mxu1 %v5395_v1  ;;  %v5680_v60 = vsub.s32 2, %v5656_v34 }
 0x252   : > { %4827 = vmatprep.subr.bf16.mxu1 %v5046_v21  ;;  %v784_v26 = vpack.c.bf16 %v782_v24, %v782_v24 }
 0x253   : > { %v830_v61 = vrot.slane %v817_v36, %v5680_v60 }
 0x255   : > { %4828 = vmatpush3.bf16.msra.mxu1 %v5046_v21 }
 0x256   : > { %4829 = vmatprep.subr.bf16.mxu1 %v5047_v23 }
 0x258   : > { %1005 = vmatmul.mubr.bf16.gmra.mrb[4].mxu1 %v784_v26 }
 0x259   : > { %4830 = vmatpush3.bf16.msra.mxu1 %v5047_v23  ;;  %4841 = vmatprep.mubr.bf16.mxu1 %v783_v19  ;;  %v5701_v19 = vsel %vm727_vm2, 0.0, %v5397_v18 }
 0x25a   : > { %4831 = vmatprep.subr.bf16.mxu1 %v5048_v27 }
 0x25d   : > { %4832 = vmatpush3.bf16.msra.mxu1 %v5048_v27 }
 0x25e   : > { %4833 = vmatprep.subr.bf16.mxu1 %v5049_v29 }
 0x261   : > { %4834 = vmatpush3.bf16.msra.mxu1 %v5049_v29 }
 0x262   : > { %4835 = vmatprep.subr.bf16.mxu1 %v5050_v30 }
 0x265   : > { %4836 = vmatpush3.bf16.msra.mxu1 %v5050_v30 }
 0x266   : > { %4837 = vmatprep.subr.bf16.mxu1 %v5051_v31 }
 0x269   : > { %4838 = vmatpush3.bf16.msra.mxu1 %v5051_v31 }
 0x26a   : > { %4839 = vmatprep.subr.bf16.mxu1 %v5052_v32 }
 0x26d   : > { %4840 = vmatpush3.bf16.msra.mxu1 %v5052_v32 }
 0x270   : > { %4842 = vmatmul.mubr.bf16.vlgmr.msra.gmra.mrb[8].mxu1 %v784_v26 }
 0x323   : > { %v996_v39 = vpop.f32.mrb[0].mxu1 }
 0x324   : > { %v998_v41 = vpop.f32.mrb[1].mxu1  ;;  %v997_v43 = vadd.f32 %v996_v39, %v822_v38 }
 0x325   : > { %v1000_v42 = vpop.f32.mrb[2].mxu1  ;;  %v999_v46 = vadd.f32 %v998_v41, %v826_v40 }
 0x326   : > { %v1001_v44 = vadd.f32 %v1000_v42, %v822_v38  ;;  %v1002_v45 = vpop.f32.mrb[3].mxu1 }
 0x327   : > { %v1003_v47 = vadd.f32 %v1002_v45, %v826_v40 }
 0x328   : > { %v1061_v48 = vpack.c.bf16 %v1001_v44, %v997_v43 }
 0x329   : > { %v1063_v49 = vpack.c.bf16 %v1003_v47, %v999_v46 }
 0x32a   : > { %4849 = vmatprep.mubr.msk.bf16.mxu1 %vm670_vm0, %v1061_v48 }
 0x32b   : > { %v1006_v50 = vpop.f32.mrb[4].mxu1  ;;  %1235 = vrot.lane.b32.xlu0 %v1063_v49, %s5396_s1  ;;  %4969 = vmatprep.subr.msk.bf16.mxu1 %vm670_vm0, %v1063_v49  ;;  %v1072_v51 = vsel %vm670_vm0, %v1063_v49, 0 }
 0x32c   : > { %v1008_v52 = vpop.f32.mrb[5].mxu1  ;;  %4846 = vmatpush3.bf16.xpose.msra.mxu1 %v1072_v51  ;;  %v1007_v57 = vadd.f32 %v1006_v50, %v822_v38 }
 0x32d   : > { %v1009_v53 = vadd.f32 %v1008_v52, %v826_v40  ;;  %v1010_v54 = vpop.f32.mrb[6].mxu1 }
 0x32e   : > { %v1011_v55 = vpop.f32.mrb[7].mxu1  ;;  %v1062_v59 = vpack.c.bf16 %v1007_v57, %v1007_v57 }
 0x32f   : > { %v1064_v56 = vpack.c.bf16 %v1009_v53, %v1009_v53 }
 0x331   : > { %1237 = vrot.lane.b32.xlu1 %v1064_v56, %s5396_s1  ;;  %4970 = vmatprep.subr.msk.bf16.mxu1 %vm670_vm0, %v1064_v56  ;;  %v1075_v58 = vsel %vm670_vm0, %v1064_v56, 0 }
 0x334   : > { %4848 = vmatpush3.bf16.xpose.msra.mxu1 %v1075_v58 }
 0x335   : > { %1229 = vrot.lane.b32.xlu1 %v1061_v48, %s5396_s1 }
 0x339   : > { %1231 = vrot.lane.b32.xlu1 %v1062_v59, %s5396_s1 }
 0x33b   : > { %4850 = vmatmul.mubr.msk.bf16.vlgmr.msra.gmra.mrb[12].mxu1 %vm670_vm0, %v1062_v59 }
 0x343   : > { %v4843_v62 = vpop.f32.mrb[8].mxu1 }
 0x344   : > { %v1047_v63 = vpop.f32.mrb[9].mxu1  ;;  %v1056_v3 = vadd.f32 %v4843_v62, %v830_v61 }
 0x345   : > { %v4844_v0 = vpop.f32.mrb[10].mxu1  ;;  %v1048_v4 = vadd.f32 %v1047_v63, %v830_v61 }
 0x346   : > { %v1050_v2 = vpop.f32.mrb[11].mxu1  ;;  %v5685_v7 = vpack.c.bf16 %v1056_v3, %v1056_v3 }
 0x347   : > { %v1051_v5 = vadd.f32 %v1050_v2, %v830_v61 }
 0x348   : > { %v1177_v8 = vsel %vm1175_vm1, %v5685_v7, 0 }
 0x349   : > { %v5683_v6 = vpack.c.bf16 %v1051_v5, %v1048_v4 }
 0x34b   : > { %4853 = vmatprep.subr.bf16.mxu0 %v5683_v6 }
 0x34c   : > { %4854 = vmatpush3.bf16.msra.mxu0 %v5683_v6 }
 0x34d   : > { %4971 = vmatprep.subr.msk.bf16.mxu0 %vm1175_vm1, %v5685_v7 }
 0x350   : > { %4856 = vmatpush3.bf16.msra.mxu0 %v1177_v8 }
 0x39d   : > { %v1236_v9 = vpop.permute.xlu0 %1235 }
 0x39e   : > { %v1246_v10 = vsel %vm670_vm0, %v1236_v9, 0  ;;  %4972 = vmatprep.subr.msk.bf16.mxu1 %vm670_vm0, %v1236_v9 }
 0x39f   : > { %4862 = vmatpush3.bf16.xpose.msra.mxu1 %v1246_v10 }
 0x3a3   : > { %v1238_v11 = vpop.permute.xlu1 %1237 }
 0x3a4   : > { %4973 = vmatprep.subr.msk.bf16.mxu1 %vm670_vm0, %v1238_v11  ;;  %v1249_v12 = vsel %vm670_vm0, %v1238_v11, 0 }
 0x3a7   : > { %v1230_v13 = vpop.permute.xlu1 %1229  ;;  %4864 = vmatpush3.bf16.xpose.msra.mxu1 %v1249_v12 }
 0x3a8   : > { %4865 = vmatprep.mubr.msk.bf16.mxu1 %vm670_vm0, %v1230_v13 }
 0x3ab   : > { %v1232_v14 = vpop.permute.xlu1 %1231 }
 0x3ae   : > { %4866 = vmatmul.mubr.msk.bf16.vlgmr.msra.gmra.mrb[16].mxu1 %vm670_vm0, %v1232_v14 }
 0x3af   : > { %1847 = vmatprep.mubr.bf16.mxu1 %v5395_v1 }
 0x40e   : > { %v4851_v16 = vpop.f32.mrb[12].mxu1 }
 0x40f   : > { %v1111_v17 = vpop.f32.mrb[13].mxu1  ;;  %v1127_v21 = vmul.f32 0.125, %v4851_v16 }
 0x410   : > { %v1125_v22 = vmul.f32 0.125, %v1111_v17  ;;  %v4852_v23 = vpop.f32.mrb[14].mxu1 }
 0x411   : > { %v1114_v24 = vpop.f32.mrb[15].mxu1  ;;  %v1130_v31 = vadd.f32 %v1127_v21, %v5701_v19 }
 0x412   : > { %v1126_v26 = vmul.f32 0.125, %v1114_v24  ;;  %v1128_v27 = vadd.f32 %v1125_v22, %v5701_v19 }
 0x413   : > { %v1138_v36 = vsel %vm1131_vm3, %v1130_v31, -inf }
 0x414   : > { %v1132_v29 = vsel %vm1131_vm3, %v1128_v27, -inf  ;;  %v1129_v30 = vadd.f32 %v1126_v26, %v5701_v19 }
 0x415   : > { %1133 = vmax.xlane.f32.xlu0 %v1132_v29 }
 0x416   : > { %v1135_v32 = vsel %vm1131_vm3, %v1129_v30, -inf }
 0x417   : > { %1136 = vmax.xlane.f32.xlu1 %v1135_v32 }
 0x419   : > { %1139 = vmax.xlane.f32.xlu0 %v1138_v36 }
 0x481   : > { %v4867_v38 = vpop.f32.mrb[16].mxu1 }
 0x482   : > { %v1301_v39 = vmul.f32 0.125, %v4867_v38  ;;  %v1285_v40 = vpop.f32.mrb[17].mxu1 }
 0x483   : > { %v1299_v41 = vmul.f32 0.125, %v1285_v40  ;;  %v4868_v42 = vpop.f32.mrb[18].mxu1 }
 0x484   : > { %v1288_v43 = vpop.f32.mrb[19].mxu1  ;;  %v1304_v44 = vadd.f32 %v1301_v39, %v5701_v19 }
 0x485   : > { %v1300_v45 = vmul.f32 0.125, %v1288_v43  ;;  %v1302_v46 = vadd.f32 %v1299_v41, %v5701_v19 }
 0x486   : > { %v1311_v47 = vsel %vm1131_vm3, %v1304_v44, -inf }
 0x487   : > { %1312 = vmax.xlane.f32.xlu1 %v1311_v47  ;;  %v1305_v48 = vsel %vm1131_vm3, %v1302_v46, -inf  ;;  %v1303_v49 = vadd.f32 %v1300_v45, %v5701_v19 }
 0x488   : > { %1306 = vmax.xlane.f32.xlu0 %v1305_v48 }
 0x489   : > { %v1308_v50 = vsel %vm1131_vm3, %v1303_v49, -inf }
 0x48c   : > { %1309 = vmax.xlane.f32.xlu0 %v1308_v50 }
 0x4a2   : > { %v1134_v51 = vpop.xlane.xlu0 %1133 }
 0x4a3   : > { %v1141_v53 = vsub.f32 %v1128_v27, %v1134_v51 }
 0x4a4   : > { %v1137_v52 = vpop.xlane.xlu1 %1136 }
 0x4a5   : > { %v1142_v54 = vsub.f32 %v1129_v30, %v1137_v52  ;;  %v1144_v58 = vmul.f32 1.442695, %v1141_v53  ;;  %v5053_v52 = vld [vmem:[%s6675_s7] sm:$0xff]   ;;  %v5054_v53 = vld [vmem:[%s6675_s7 + $0x8] sm:$0xff]  }
 0x4a6   : > { %v1140_v55 = vpop.xlane.xlu0 %1139 }
 0x4a7   : > { %v1146_v56 = vmul.f32 1.442695, %v1142_v54  ;;  %v1143_v57 = vsub.f32 %v1130_v31, %v1140_v55  ;;  %v5055_v54 = vld [vmem:[%s6675_s7 + $0x10] sm:$0xff]  }
 0x4a9   : > { %5267 = vpow2.f32 %v1146_v56  ;;  %v1148_v59 = vmul.f32 1.442695, %v1143_v57  ;;  %v5056_v57 = vld [vmem:[%s6675_s7 + $0x18] sm:$0xff]  }
 0x4ab   : > { %5269 = vpow2.f32 %v1148_v59 }
 0x4ac   : > { %5271 = vpow2.f32 %v1144_v58 }
 0x4b3   : > { %v5268_v61 = vpop.eup %5267 }
 0x4b4   : > { %v1153_v62 = vsel %vm1131_vm3, %v5268_v61, 0.0 }
 0x4b5   : > { %v5270_v63 = vpop.eup %5269  ;;  %1154 = vadd.xlane.f32.xlu1 %v1153_v62  ;;  %v5058_v62 = vld [vmem:[%s6675_s7 + $0x28] sm:$0xff]  }
 0x4b6   : > { %v1156_v0 = vsel %vm1131_vm3, %v5270_v63, 0.0  ;;  %v5272_v2 = vpop.eup %5271 }
 0x4b7   : > { %1157 = vadd.xlane.f32.xlu0 %v1156_v0  ;;  %v1150_v3 = vsel %vm1131_vm3, %v5272_v2, 0.0  ;;  %v5060_v0 = vld [vmem:[%s6675_s7 + $0x38] sm:$0xff]  }
 0x4bb   : > { %1151 = vadd.xlane.f32.xlu0 %v1150_v3 }
 0x514   : > { %v1313_v4 = vpop.xlane.xlu1 %1312 }
 0x515   : > { %v1316_v5 = vsub.f32 %v1304_v44, %v1313_v4  ;;  %v1307_v8 = vpop.xlane.xlu0 %1306 }
 0x516   : > { %v1314_v9 = vsub.f32 %v1302_v46, %v1307_v8 }
 0x517   : > { %v1321_v10 = vmul.f32 1.442695, %v1316_v5 }
 0x518   : > { %v1317_v11 = vmul.f32 1.442695, %v1314_v9 }
 0x519   : > { %5273 = vpow2.f32 %v1321_v10  ;;  %v1310_v12 = vpop.xlane.xlu0 %1309 }
 0x51a   : > { %v1315_v13 = vsub.f32 %v1303_v49, %v1310_v12  ;;  %5275 = vpow2.f32 %v1317_v11 }
 0x51c   : > { %v1319_v14 = vmul.f32 1.442695, %v1315_v13 }
 0x51e   : > { %5277 = vpow2.f32 %v1319_v14 }
 0x523   : > { %v5274_v15 = vpop.eup %5273 }
 0x524   : > { %v1329_v16 = vsel %vm1131_vm3, %v5274_v15, 0.0  ;;  %v5276_v17 = vpop.eup %5275 }
 0x525   : > { %1330 = vadd.xlane.f32.xlu1 %v1329_v16  ;;  %v1323_v21 = vsel %vm1131_vm3, %v5276_v17, 0.0 }
 0x528   : > { %v5278_v18 = vpop.eup %5277 }
 0x529   : > { %1324 = vadd.xlane.f32.xlu1 %v1323_v21  ;;  %v1326_v22 = vsel %vm1131_vm3, %v5278_v18, 0.0  ;;  %v4304_v21 = vld [vmem:[%s6676_s8] ss:$0 sm:$0xff] }
 0x52a   : > { %1327 = vadd.xlane.f32.xlu0 %v1326_v22 }
 0x53a   : > { %1344 = vrot.lane.b32.xlu1 %v5685_v7, %s5396_s1 }
 0x540   : > { %1342 = vrot.lane.b32.xlu0 %v5683_v6, %s5396_s1 }
 0x542   : > { %v1155_v23 = vpop.xlane.xlu1 %1154 }
 0x544   : > { %v1158_v24 = vpop.xlane.xlu0 %1157 }
 0x545   : > { %5279 = vrcp.f32 %v1158_v24 }
 0x546   : > { %5281 = vrcp.f32 %v1155_v23 }
 0x548   : > { %v1152_v26 = vpop.xlane.xlu0 %1151 }
 0x549   : > { %5283 = vrcp.f32 %v1152_v26 }
 0x54f   : > { %v5280_v27 = vpop.eup %5279 }
 0x550   : > { %v5282_v29 = vpop.eup %5281  ;;  %v1164_v31 = vmul.f32 %v5280_v27, %v5270_v63  ;;  %v5059_v63 = vld [vmem:[%s6675_s7 + $0x30] sm:$0xff]  }
 0x551   : > { %v1163_v36 = vmul.f32 %v5282_v29, %v5268_v61  ;;  %v5057_v61 = vld [vmem:[%s6675_s7 + $0x20] sm:$0xff]  }
 0x552   : > { %v1166_v39 = vpack.c.bf16 %v1164_v31, %v1164_v31 }
 0x553   : > { %v5284_v30 = vpop.eup %5283 }
 0x554   : > { %v1162_v32 = vmul.f32 %v5284_v30, %v5272_v2 }
 0x556   : > { %v1165_v38 = vpack.c.bf16 %v1163_v36, %v1162_v32  ;;  %v5066_v36 = vld [vmem:[%s6679_s11 + $0xc] ss:$16 sps:$4 sm:$0xff]  }
 0x558   : > { %4857 = vmatprep.mubr.msk.bf16.mxu0 %vm1131_vm3, %v1165_v38  ;;  %v5069_v38 = vld [vmem:[%s6679_s11 + $0x24] ss:$16 sps:$4 sm:$0xff]  }
 0x559   : > { %4858 = vmatmul.mubr.msk.bf16.vlgmr.msra.gmra.mrb[8].mxu0 %vm1131_vm3, %v1166_v39  ;;  %v5072_v39 = vld [vmem:[%s6679_s11 + $0x2c] ss:$16 sps:$4 sm:$0xff]  }
 0x5b2   : > { %v1331_v7 = vpop.xlane.xlu1 %1330 }
 0x5b3   : > { %5285 = vrcp.f32 %v1331_v7  ;;  %v5067_v7 = vld [vmem:[%s6679_s11 + $0x20] ss:$16 sps:$4 sm:$0xff]  }
 0x5b6   : > { %v1325_v6 = vpop.xlane.xlu1 %1324 }
 0x5b7   : > { %5287 = vrcp.f32 %v1325_v6  ;;  %v1328_v40 = vpop.xlane.xlu0 %1327  ;;  %v5070_v6 = vld [vmem:[%s6679_s11 + $0x28] ss:$16 sps:$4 sm:$0xff]  }
 0x5b8   : > { %5289 = vrcp.f32 %v1328_v40 }
 0x5ba   : > { %v1345_v42 = vpop.permute.xlu1 %1344 }
 0x5bb   : > { %v1343_v41 = vpop.permute.xlu0 %1342  ;;  %v1354_v44 = vsel %vm1175_vm1, %v1345_v42, 0 }
 0x5bc   : > { %4869 = vmatprep.subr.bf16.mxu0 %v1343_v41 }
 0x5bd   : > { %4870 = vmatpush3.bf16.msra.mxu0 %v1343_v41  ;;  %v5286_v43 = vpop.eup %5285 }
 0x5be   : > { %4974 = vmatprep.subr.msk.bf16.mxu0 %vm1175_vm1, %v1345_v42  ;;  %v1337_v47 = vmul.f32 %v5286_v43, %v5274_v15 }
 0x5c0   : > { %v1339_v51 = vpack.c.bf16 %v1337_v47, %v1337_v47 }
 0x5c1   : > { %v5288_v45 = vpop.eup %5287  ;;  %4872 = vmatpush3.bf16.msra.mxu0 %v1354_v44 }
 0x5c2   : > { %v5290_v46 = vpop.eup %5289  ;;  %v1335_v48 = vmul.f32 %v5288_v45, %v5276_v17  ;;  %4877 = vmatprep.subr.bf16.mxu0 %v5053_v52 }
 0x5c3   : > { %v1336_v49 = vmul.f32 %v5290_v46, %v5278_v18 }
 0x5c5   : > { %v1338_v50 = vpack.c.bf16 %v1336_v49, %v1335_v48 }
 0x5c7   : > { %4873 = vmatprep.mubr.msk.bf16.mxu0 %vm1131_vm3, %v1338_v50 }
 0x5c8   : > { %4874 = vmatmul.mubr.msk.bf16.vlgmr.msra.gmra.mrb[12].mxu0 %vm1131_vm3, %v1339_v51 }
 0x5c9   : > { %4878 = vmatpush3.bf16.msra.mxu0 %v5053_v52  ;;  %v5075_v52 = vld [vmem:[%s6679_s11 + $0x44] ss:$16 sps:$4 sm:$0xff]  }
 0x5ca   : > { %4879 = vmatprep.subr.bf16.mxu0 %v5054_v53 }
 0x5cd   : > { %4880 = vmatpush3.bf16.msra.mxu0 %v5054_v53  ;;  %v5078_v53 = vld [vmem:[%s6679_s11 + $0x4c] ss:$16 sps:$4 sm:$0xff]  }
 0x5ce   : > { %4881 = vmatprep.subr.bf16.mxu0 %v5055_v54 }
 0x5d1   : > { %4882 = vmatpush3.bf16.msra.mxu0 %v5055_v54  ;;  %v5073_v54 = vld [vmem:[%s6679_s11 + $0x40] ss:$16 sps:$4 sm:$0xff]  }
 0x5d2   : > { %4883 = vmatprep.subr.bf16.mxu0 %v5056_v57 }
 0x5d5   : > { %4884 = vmatpush3.bf16.msra.mxu0 %v5056_v57  ;;  %v5084_v57 = vld [vmem:[%s6679_s11 + $0x6c] ss:$16 sps:$4 sm:$0xff]  }
 0x5d6   : > { %4885 = vmatprep.subr.bf16.mxu0 %v5057_v61 }
 0x5d9   : > { %4886 = vmatpush3.bf16.msra.mxu0 %v5057_v61  ;;  %v5087_v61 = vld [vmem:[%s6679_s11 + $0x84] ss:$16 sps:$4 sm:$0xff]  }
 0x5da   : > { %4887 = vmatprep.subr.bf16.mxu0 %v5058_v62 }
 0x5dd   : > { %4888 = vmatpush3.bf16.msra.mxu0 %v5058_v62  ;;  %v5090_v62 = vld [vmem:[%s6679_s11 + $0x8c] ss:$16 sps:$4 sm:$0xff]  }
 0x5de   : > { %4889 = vmatprep.subr.bf16.mxu0 %v5059_v63 }
 0x5e1   : > { %4890 = vmatpush3.bf16.msra.mxu0 %v5059_v63  ;;  %v5085_v63 = vld [vmem:[%s6679_s11 + $0x80] ss:$16 sps:$4 sm:$0xff]  }
 0x5e2   : > { %4891 = vmatprep.subr.bf16.mxu0 %v5060_v0 }
 0x5e5   : > { %4892 = vmatpush3.bf16.msra.mxu0 %v5060_v0  ;;  %v5088_v0 = vld [vmem:[%s6679_s11 + $0x88] ss:$16 sps:$4 sm:$0xff]  }
 0x5e6   : > { %1866 = vmatprep.subr.bf16.mxu0 %v5066_v36 }
 0x62c   : > { %v4859_v55 = vpop.f32.mrb[8].mxu0 }
 0x62d   : > { %v1213_v56 = vpop.f32.mrb[9].mxu0 }
 0x62e   : > { %v4860_v58 = vpop.f32.mrb[10].mxu0 }
 0x62f   : > { %v1216_v59 = vpop.f32.mrb[11].mxu0  ;;  %v5079_v58 = vld [vmem:[%s6679_s11 + $0x60] ss:$16 sps:$4 sm:$0xff]  }
 0x69b   : > { %v4875_v2 = vpop.f32.mrb[12].mxu0 }
 0x69c   : > { %v1390_v3 = vpop.f32.mrb[13].mxu0 }
 0x69d   : > { %v4876_v4 = vpop.f32.mrb[14].mxu0 }
 0x69e   : > { %v1393_v5 = vpop.f32.mrb[15].mxu0  ;;  %v5091_v4 = vld [vmem:[%s6679_s11 + $0xa0] ss:$16 sps:$4 sm:$0xff]  }
 0x69f   : > { %v4994_v8 = vpack.i.bf16 %v1393_v5, %v1390_v3  ;;  %v5096_v3 = vld [vmem:[%s6679_s11 + $0xac] ss:$16 sps:$4 sm:$0xff]   ;;  %v5094_v5 = vld [vmem:[%s6679_s11 + $0xa8] ss:$16 sps:$4 sm:$0xff]  }
 0x6a1   : > { %4995 = vrot.lane.b32.xlu1 %v4994_v8, %s5396_s1  ;;  %v5099_v8 = vld [vmem:[%s6679_s11 + $0xc4] ss:$16 sps:$4 sm:$0xff]  }
 0x6a5   : > { %1411 = vrot.lane.b32.xlu1 %v4875_v2, %s5396_s1  ;;  %v5093_v2 = vld [vmem:[%s6679_s11 + $0xa4] ss:$16 sps:$4 sm:$0xff]  }
 0x713   : > { %v4996_v9 = vpop.permute.xlu1 %4995 }
 0x714   : > { %v4998_v10 = vunpack.i.h.bf16 %v4996_v9  ;;  %v4997_v11 = vunpack.i.l.bf16 %v4996_v9  ;;  %v5102_v9 = vld [vmem:[%s6679_s11 + $0xcc] ss:$16 sps:$4 sm:$0xff]  }
 0x716   : > { %v1416_v12 = vsel %vm670_vm0, %v1213_v56, %v4997_v11  ;;  %v1417_v13 = vsel %vm670_vm0, %v1216_v59, %v4998_v10  ;;  %v5081_v56 = vld [vmem:[%s6679_s11 + $0x64] ss:$16 sps:$4 sm:$0xff]   ;;  %v5082_v59 = vld [vmem:[%s6679_s11 + $0x68] ss:$16 sps:$4 sm:$0xff]   ;;  %v5097_v10 = vld [vmem:[%s6679_s11 + $0xc0] ss:$16 sps:$4 sm:$0xff]  }
 0x717   : > { %v1412_v14 = vpop.permute.xlu1 %1411  ;;  %v1419_v15 = vpack.c.bf16 %v1417_v13, %v1416_v12  ;;  %v5100_v11 = vld [vmem:[%s6679_s11 + $0xc8] ss:$16 sps:$4 sm:$0xff]   ;;  %v5105_v12 = vld [vmem:[%s6679_s11 + $0xe4] ss:$16 sps:$4 sm:$0xff]   ;;  %v5108_v13 = vld [vmem:[%s6679_s11 + $0xec] ss:$16 sps:$4 sm:$0xff]  }
 0x718   : > { %v1418_v16 = vsel %vm670_vm0, %v4859_v55, %v1412_v14  ;;  %v5076_v55 = vld [vmem:[%s6679_s11 + $0x48] ss:$16 sps:$4 sm:$0xff]   ;;  %v5103_v14 = vld [vmem:[%s6679_s11 + $0xe0] ss:$16 sps:$4 sm:$0xff]  }
 0x719   : > { %v1420_v17 = vpack.c.bf16 %v1418_v16, %v1418_v16  ;;  %4893 = vmatprep.mubr.bf16.mxu0 %v1419_v15  ;;  %v5106_v15 = vld [vmem:[%s6679_s11 + $0xe8] ss:$16 sps:$4 sm:$0xff]  }
 0x71b   : > { %4894 = vmatmul.mubr.bf16.vlgmr.msra.gmra.mrb[16].mxu0 %v1420_v17 }
 0x71c   : > { %1898 = vmatprep.mubr.bf16.mxu0 %v5395_v1 }
 0x7ee   : > { %v4895_v18 = vpop.f32.mrb[16].mxu0 }
 0x7ef   : > { %v1519_v22 = vpop.f32.mrb[17].mxu0  ;;  %v1535_v27 = vadd.f32 %v4895_v18, %v5570_v28  ;;  %v5063_v28 = vld [vmem:[%s6679_s11 + $0x4] ss:$16 sps:$4 sm:$0xff]  }
 0x7f0   : > { %v1533_v23 = vadd.f32 %v1519_v22, %v5558_v20  ;;  %v4896_v24 = vpop.f32.mrb[18].mxu0  ;;  %v5061_v20 = vld [vmem:[%s6679_s11] ss:$16 sps:$4 sm:$0xff]   ;;  %1815 = vmatprep.subr.bf16.mxu1 %v5063_v28 }
 0x7f1   : > { %v1522_v26 = vpop.f32.mrb[19].mxu0  ;;  %v5772_v32 = vadd.f32 %v4304_v21, %v1535_v27  ;;  %1816 = vmatpush1.bf16.msra.mxu1 %v5061_v20  ;;  %v4305_v28 = vld [vmem:[%s6677_s9] ss:$0 sm:$0xff] }
 0x7f2   : > { %v5766_v29 = vadd.f32 %v4304_v21, %v1533_v23  ;;  %v1534_v30 = vadd.f32 %v1522_v26, %v5564_v25  ;;  %v5064_v25 = vld [vmem:[%s6679_s11 + $0x8] ss:$16 sps:$4 sm:$0xff]   ;;  %1817 = vmatprep.subr.bf16.mxu1 %v5069_v38 }
 0x7f3   : > { %1867 = vmatpush1.bf16.msra.mxu0 %v5064_v25 }
 0x7f4   : > { %v5769_v31 = vadd.f32 %v4304_v21, %v1534_v30  ;;  %1548 = vadd.xlane.f32.xlu0 %v5766_v29  ;;  %1868 = vmatprep.subr.bf16.mxu0 %v5072_v39 }
 0x7f5   : > { %1818 = vmatpush1.bf16.msra.mxu1 %v5067_v7  ;;  %v4306_v7 = vld [vmem:[%s6678_s10] ss:$0 sm:$0xff] }
 0x7f6   : > { %1550 = vadd.xlane.f32.xlu1 %v5769_v31  ;;  %1819 = vmatprep.subr.bf16.mxu1 %v5075_v52  ;;  %v5114_v52 = vld [vmem:[%s6681_s13 + $0xc8] sm:$0xff]  }
 0x7f7   : > { %1869 = vmatpush1.bf16.msra.mxu0 %v5070_v6 }
 0x7f8   : > { %1552 = vadd.xlane.f32.xlu0 %v5772_v32  ;;  %1870 = vmatprep.subr.bf16.mxu0 %v5078_v53  ;;  %v5115_v53 = vld [vmem:[%s6681_s13 + $0x8] sm:$0xff]  }
 0x7f9   : > { %1820 = vmatpush1.bf16.msra.mxu1 %v5073_v54  ;;  %v5116_v54 = vld [vmem:[%s6681_s13 + $0x88] sm:$0xff]  }
 0x7fa   : > { %1821 = vmatprep.subr.bf16.mxu1 %v5081_v56  ;;  %v5118_v56 = vld [vmem:[%s6681_s13 + $0xd0] sm:$0xff]  }
 0x7fb   : > { %1871 = vmatpush1.bf16.msra.mxu0 %v5076_v55  ;;  %v5117_v55 = vld [vmem:[%s6681_s13 + $0x50] sm:$0xff]  }
 0x7fc   : > { %1872 = vmatprep.subr.bf16.mxu0 %v5084_v57  ;;  %v5119_v57 = vld [vmem:[%s6681_s13 + $0x10] sm:$0xff]  }
 0x7fd   : > { %1822 = vmatpush1.bf16.msra.mxu1 %v5079_v58  ;;  %v5120_v58 = vld [vmem:[%s6681_s13 + $0x90] sm:$0xff]  }
 0x7fe   : > { %1823 = vmatprep.subr.bf16.mxu1 %v5087_v61  ;;  %v5122_v61 = vld [vmem:[%s6681_s13 + $0xd8] sm:$0xff]  }
 0x7ff   : > { %1873 = vmatpush1.bf16.msra.mxu0 %v5082_v59  ;;  %v5121_v59 = vld [vmem:[%s6681_s13 + $0x58] sm:$0xff]  }
 0x800   : > { %1874 = vmatprep.subr.bf16.mxu0 %v5090_v62  ;;  %v5123_v62 = vld [vmem:[%s6681_s13 + $0x18] sm:$0xff]  }
 0x801   : > { %1824 = vmatpush1.bf16.msra.mxu1 %v5085_v63  ;;  %v5124_v63 = vld [vmem:[%s6681_s13 + $0x98] sm:$0xff]  }
 0x802   : > { %1825 = vmatprep.subr.bf16.mxu1 %v5093_v2  ;;  %v5126_v2 = vld [vmem:[%s6681_s13 + $0xe0] sm:$0xff]  }
 0x803   : > { %1875 = vmatpush1.bf16.msra.mxu0 %v5088_v0  ;;  %v5125_v0 = vld [vmem:[%s6681_s13 + $0x60] sm:$0xff]  }
 0x804   : > { %1876 = vmatprep.subr.bf16.mxu0 %v5096_v3  ;;  %v5127_v3 = vld [vmem:[%s6681_s13 + $0x20] sm:$0xff]  }
 0x805   : > { %1826 = vmatpush1.bf16.msra.mxu1 %v5091_v4  ;;  %v5128_v4 = vld [vmem:[%s6681_s13 + $0xa0] sm:$0xff]  }
 0x806   : > { %1827 = vmatprep.subr.bf16.mxu1 %v5099_v8  ;;  %v5130_v8 = vld [vmem:[%s6681_s13 + $0xe8] sm:$0xff]  }
 0x807   : > { %1877 = vmatpush1.bf16.msra.mxu0 %v5094_v5  ;;  %v5129_v5 = vld [vmem:[%s6681_s13 + $0x68] sm:$0xff]  }
 0x808   : > { %1878 = vmatprep.subr.bf16.mxu0 %v5102_v9  ;;  %v5131_v9 = vld [vmem:[%s6681_s13 + $0x28] sm:$0xff]  }
 0x809   : > { %1828 = vmatpush1.bf16.msra.mxu1 %v5097_v10  ;;  %v5132_v10 = vld [vmem:[%s6681_s13 + $0xa8] sm:$0xff]  }
 0x80a   : > { %1829 = vmatprep.subr.bf16.mxu1 %v5105_v12  ;;  %v5134_v12 = vld [vmem:[%s6681_s13 + $0xf0] sm:$0xff]  }
 0x80b   : > { %1879 = vmatpush1.bf16.msra.mxu0 %v5100_v11  ;;  %v5133_v11 = vld [vmem:[%s6681_s13 + $0x70] sm:$0xff]  }
 0x80c   : > { %1880 = vmatprep.subr.bf16.mxu0 %v5108_v13  ;;  %v5135_v13 = vld [vmem:[%s6681_s13 + $0x30] sm:$0xff]  }
 0x80d   : > { %1830 = vmatpush1.bf16.msra.mxu1 %v5103_v14  ;;  %v5136_v14 = vld [vmem:[%s6681_s13 + $0xb0] sm:$0xff]  }
 0x80f   : > { %1881 = vmatpush1.bf16.msra.mxu0 %v5106_v15  ;;  %v5137_v15 = vld [vmem:[%s6681_s13 + $0x78] sm:$0xff]  }
 0x881   : > { %v1549_v40 = vpop.xlane.xlu0 %1548 }
 0x882   : > { %v1554_v41 = vmul.f32 0.0078125, %v1549_v40 }
 0x883   : > { %v1551_v42 = vpop.xlane.xlu1 %1550 }
 0x884   : > { %v5801_v43 = vsub.f32 %v5766_v29, %v1554_v41  ;;  %v1555_v44 = vmul.f32 0.0078125, %v1551_v42 }
 0x885   : > { %v1553_v45 = vpop.xlane.xlu0 %1552 }
 0x886   : > { %v5804_v46 = vsub.f32 %v5769_v31, %v1555_v44  ;;  %v1556_v47 = vmul.f32 0.0078125, %v1553_v45  ;;  %v1560_v48 = vmul.f32 %v5801_v43, %v5801_v43 }
 0x888   : > { %v5809_v49 = vsub.f32 %v5772_v32, %v1556_v47  ;;  %1563 = vadd.xlane.f32.xlu0 %v1560_v48  ;;  %v1561_v51 = vmul.f32 %v5804_v46, %v5804_v46  ;;  %v5109_v47 = vld [vmem:[%s6681_s13 + $0x40] sm:$0xff]  }
 0x889   : > { %v5110_v48 = vld [vmem:[%s6681_s13 + $0xc0] sm:$0xff]   ;;  %4677 = vmatprep.subr.bf16.mxu1 %v5109_v47 }
 0x88a   : > { %v1562_v50 = vmul.f32 %v5809_v49, %v5809_v49  ;;  %4705 = vmatprep.subr.bf16.mxu0 %v5110_v48 }
 0x88c   : > { %1567 = vadd.xlane.f32.xlu1 %v1562_v50  ;;  %1565 = vadd.xlane.f32.xlu0 %v1561_v51  ;;  %v5112_v50 = vld [vmem:[%s6681_s13 + $0x80] sm:$0xff]   ;;  %v5113_v51 = vld [vmem:[%s6681_s13 + $0x48] sm:$0xff]  }
 0x915   : > { %v1564_v16 = vpop.xlane.xlu0 %1563 }
 0x916   : > { %v1569_v17 = vmul.f32 0.0078125, %v1564_v16  ;;  %v5138_v16 = vld [vmem:[%s6681_s13 + $0xf8] sm:$0xff]  }
 0x918   : > { %v1572_v18 = vadd.f32 1e-06, %v1569_v17  ;;  %v5139_v17 = vld [vmem:[%s6681_s13 + $0x38] sm:$0xff]  }
 0x919   : > { %v1566_v21 = vpop.xlane.xlu0 %1565  ;;  %v1568_v22 = vpop.xlane.xlu1 %1567 }
 0x91a   : > { %5291 = vrsqrt.f32 %v1572_v18  ;;  %v1570_v23 = vmul.f32 0.0078125, %v1566_v21  ;;  %v1571_v24 = vmul.f32 0.0078125, %v1568_v22  ;;  %v5140_v18 = vld [vmem:[%s6681_s13 + $0xb8] sm:$0xff]   ;;  %v1633_v21 = vld [vmem:[%s6680_s12] sm:$0xf]  ;;  %v1649_v22 = vsub.s32 3, %v5656_v34 }
 0x91c   : > { %v1573_v26 = vadd.f32 1e-06, %v1570_v23  ;;  %v1574_v27 = vadd.f32 1e-06, %v1571_v24  ;;  %v1638_v23 = vrot.slane %v1633_v21, %v5659_v35  ;;  %v1646_v24 = vrot.slane %v1633_v21, %v5680_v60 }
 0x91e   : > { %5293 = vrsqrt.f32 %v1573_v26  ;;  %v1642_v26 = vrot.slane %v1633_v21, %v5665_v37 }
 0x91f   : > { %5295 = vrsqrt.f32 %v1574_v27  ;;  %v6003_v27 = vrot.slane %v1633_v21, %v1649_v22 }
 0x924   : > { %v5292_v30 = vpop.eup %5291 }
 0x925   : > { %v1578_v20 = vmul.f32 %v5292_v30, %v5801_v43 }
 0x927   : > { %v1587_v39 = vmul.f32 %v4305_v28, %v1578_v20 }
 0x928   : > { %v5294_v25 = vpop.eup %5293 }
 0x929   : > { %v5296_v36 = vpop.eup %5295  ;;  %v1579_v38 = vmul.f32 %v5294_v25, %v5804_v46  ;;  %v1596_v41 = vadd.f32 %v4306_v7, %v1587_v39 }
 0x92a   : > { %v1580_v40 = vmul.f32 %v5296_v36, %v5809_v49  ;;  %v5111_v49 = vld [vmem:[%s6681_s13] sm:$0xff]  }
 0x92b   : > { %v1588_v6 = vmul.f32 %v4305_v28, %v1579_v38 }
 0x92c   : > { %v1589_v43 = vmul.f32 %v4305_v28, %v1580_v40 }
 0x92d   : > { %v1597_v42 = vadd.f32 %v4306_v7, %v1588_v6 }
 0x92e   : > { %v1598_v45 = vadd.f32 %v4306_v7, %v1589_v43 }
 0x92f   : > { %v1599_v44 = vpack.c.bf16 %v1597_v42, %v1596_v41 }
 0x930   : > { %v1600_v46 = vpack.c.bf16 %v1598_v45, %v1598_v45 }
 0x931   : > { %1848 = vmatmul.mubr.bf16.vlgmr.msra.gmra.mrb[20].mxu1 %v1599_v44  ;;  %1899 = vmatmul.mubr.bf16.vlgmr.msra.gmra.mrb[20].mxu0 %v1599_v44 }
 0x932   : > { %1857 = vmatprep.mubr.bf16.mxu1 %v5395_v1  ;;  %1908 = vmatprep.mubr.bf16.mxu0 %v5395_v1 }
 0x933   : > { %4678 = vmatpush3.bf16.msra.mxu1 %v5111_v49  ;;  %4706 = vmatpush3.bf16.msra.mxu0 %v5112_v50 }
 0x934   : > { %4679 = vmatprep.subr.bf16.mxu1 %v5113_v51  ;;  %4707 = vmatprep.subr.bf16.mxu0 %v5114_v52 }
 0x937   : > { %4680 = vmatpush3.bf16.msra.mxu1 %v5115_v53  ;;  %4708 = vmatpush3.bf16.msra.mxu0 %v5116_v54 }
 0x938   : > { %4681 = vmatprep.subr.bf16.mxu1 %v5117_v55  ;;  %4709 = vmatprep.subr.bf16.mxu0 %v5118_v56 }
 0x939   : > { %1858 = vmatmul.mubr.bf16.gmra.mrb[24].mxu1 %v1600_v46  ;;  %1909 = vmatmul.mubr.bf16.gmra.mrb[24].mxu0 %v1600_v46 }
 0x93b   : > { %4682 = vmatpush3.bf16.msra.mxu1 %v5119_v57  ;;  %4710 = vmatpush3.bf16.msra.mxu0 %v5120_v58 }
 0x93c   : > { %4683 = vmatprep.subr.bf16.mxu1 %v5121_v59  ;;  %4711 = vmatprep.subr.bf16.mxu0 %v5122_v61 }
 0x93f   : > { %4684 = vmatpush3.bf16.msra.mxu1 %v5123_v62  ;;  %4712 = vmatpush3.bf16.msra.mxu0 %v5124_v63 }
 0x940   : > { %4685 = vmatprep.subr.bf16.mxu1 %v5125_v0  ;;  %4713 = vmatprep.subr.bf16.mxu0 %v5126_v2 }
 0x943   : > { %4686 = vmatpush3.bf16.msra.mxu1 %v5127_v3  ;;  %4714 = vmatpush3.bf16.msra.mxu0 %v5128_v4 }
 0x944   : > { %4687 = vmatprep.subr.bf16.mxu1 %v5129_v5  ;;  %4715 = vmatprep.subr.bf16.mxu0 %v5130_v8 }
 0x947   : > { %4688 = vmatpush3.bf16.msra.mxu1 %v5131_v9  ;;  %4716 = vmatpush3.bf16.msra.mxu0 %v5132_v10 }
 0x948   : > { %4689 = vmatprep.subr.bf16.mxu1 %v5133_v11  ;;  %4717 = vmatprep.subr.bf16.mxu0 %v5134_v12 }
 0x94b   : > { %4690 = vmatpush3.bf16.msra.mxu1 %v5135_v13  ;;  %4718 = vmatpush3.bf16.msra.mxu0 %v5136_v14 }
 0x94c   : > { %4691 = vmatprep.subr.bf16.mxu1 %v5137_v15  ;;  %4719 = vmatprep.subr.bf16.mxu0 %v5138_v16 }
 0x94f   : > { %4692 = vmatpush3.bf16.msra.mxu1 %v5139_v17  ;;  %4720 = vmatpush3.bf16.msra.mxu0 %v5140_v18 }
 0xa04   : > { %v1849_v30 = vpop.f32.mrb[20].mxu1  ;;  %v1900_v20 = vpop.f32.mrb[20].mxu0 }
 0xa05   : > { %v6005_v28 = vadd.f32 %v1849_v30, %v1638_v23  ;;  %v6007_v25 = vadd.f32 %v1900_v20, %v1646_v24  ;;  %v1851_v36 = vpop.f32.mrb[21].mxu1  ;;  %v1902_v38 = vpop.f32.mrb[21].mxu0 }
 0xa06   : > { %v6009_v39 = vadd.f32 %v1851_v36, %v1642_v26  ;;  %v6012_v7 = vadd.f32 %v1902_v38, %v6003_v27  ;;  %v1853_v6 = vpop.f32.mrb[22].mxu1  ;;  %v1904_v40 = vpop.f32.mrb[22].mxu0 }
 0xa07   : > { %v1929_v41 = vmul.f32 0.044715, %v6005_v28  ;;  %v1931_v42 = vmul.f32 0.044715, %v6007_v25  ;;  %v6018_v45 = vadd.f32 %v1853_v6, %v1638_v23  ;;  %v6020_v46 = vadd.f32 %v1904_v40, %v1646_v24  ;;  %v1855_v47 = vpop.f32.mrb[23].mxu1  ;;  %v1906_v48 = vpop.f32.mrb[23].mxu0 }
 0xa08   : > { %v1930_v44 = vmul.f32 0.044715, %v6009_v39  ;;  %v1932_v43 = vmul.f32 0.044715, %v6012_v7  ;;  %v6024_v51 = vadd.f32 %v1855_v47, %v1642_v26  ;;  %v6027_v52 = vadd.f32 %v1906_v48, %v6003_v27 }
 0xa09   : > { %v1941_v49 = vmul.f32 %v1929_v41, %v6005_v28  ;;  %v1943_v50 = vmul.f32 %v1931_v42, %v6007_v25  ;;  %v1933_v53 = vmul.f32 0.044715, %v6018_v45  ;;  %v1935_v56 = vmul.f32 0.044715, %v6020_v46 }
 0xa0a   : > { %v1942_v57 = vmul.f32 %v1930_v44, %v6009_v39  ;;  %v1944_v58 = vmul.f32 %v1932_v43, %v6012_v7  ;;  %v1934_v61 = vmul.f32 0.044715, %v6024_v51  ;;  %v1936_v4 = vmul.f32 0.044715, %v6027_v52 }
 0xa0b   : > { %v1953_v54 = vmul.f32 %v1941_v49, %v6005_v28  ;;  %v1955_v55 = vmul.f32 %v1943_v50, %v6007_v25  ;;  %v1945_v59 = vmul.f32 %v1933_v53, %v6018_v45  ;;  %v1947_v3 = vmul.f32 %v1935_v56, %v6020_v46 }
 0xa0c   : > { %v1859_v62 = vpop.f32.mrb[24].mxu1  ;;  %v1910_v63 = vpop.f32.mrb[24].mxu0  ;;  %v1946_v10 = vmul.f32 %v1934_v61, %v6024_v51  ;;  %v1948_v18 = vmul.f32 %v1936_v4, %v6027_v52  ;;  %v1954_v20 = vmul.f32 %v1942_v57, %v6009_v39  ;;  %v1956_v40 = vmul.f32 %v1944_v58, %v6012_v7 }
 0xa0d   : > { %v1965_v0 = vadd.f32 %v1953_v54, %v6005_v28  ;;  %v1967_v2 = vadd.f32 %v1955_v55, %v6007_v25  ;;  %v1861_v5 = vpop.f32.mrb[25].mxu1  ;;  %v1912_v8 = vpop.f32.mrb[25].mxu0  ;;  %v1957_v9 = vmul.f32 %v1945_v59, %v6018_v45  ;;  %v6043_v11 = vadd.f32 %v1859_v62, %v1638_v23 }
 0xa0e   : > { %v6045_v12 = vadd.f32 %v1910_v63, %v1646_v24  ;;  %v1863_v13 = vpop.f32.mrb[26].mxu1  ;;  %v1914_v14 = vpop.f32.mrb[26].mxu0  ;;  %v1959_v17 = vmul.f32 %v1947_v3, %v6020_v46  ;;  %v1958_v38 = vmul.f32 %v1946_v10, %v6024_v51  ;;  %v6054_v6 = vadd.f32 %v1861_v5, %v1642_v26 }
 0xa0f   : > { %v1977_v15 = vmul.f32 0.7978846, %v1965_v0  ;;  %v1979_v16 = vmul.f32 0.7978846, %v1967_v2  ;;  %v1864_v21 = vpop.f32.mrb[27].mxu1  ;;  %v1915_v30 = vpop.f32.mrb[27].mxu0  ;;  %v1969_v36 = vadd.f32 %v1957_v9, %v6018_v45  ;;  %v1960_v43 = vmul.f32 %v1948_v18, %v6027_v52 }
 0xa10   : > { %v1971_v23 = vadd.f32 %v1959_v17, %v6020_v46  ;;  %v1937_v24 = vmul.f32 0.044715, %v6043_v11  ;;  %v1939_v42 = vmul.f32 0.044715, %v6045_v12  ;;  %v1938_v47 = vmul.f32 0.044715, %v6054_v6 }
 0xa11   : > { %5297 = vtanh.f32 %v1977_v15  ;;  %v1981_v41 = vmul.f32 0.7978846, %v1969_v36  ;;  %v6061_v48 = vadd.f32 %v1912_v8, %v6003_v27  ;;  %v1966_v49 = vadd.f32 %v1954_v20, %v6009_v39 }
 0xa12   : > { %5299 = vtanh.f32 %v1979_v16  ;;  %v1983_v44 = vmul.f32 0.7978846, %v1971_v23  ;;  %v1970_v26 = vadd.f32 %v1958_v38, %v6024_v51  ;;  %v1949_v50 = vmul.f32 %v1937_v24, %v6043_v11 }
 0xa13   : > { %5301 = vtanh.f32 %v1981_v41  ;;  %v1950_v53 = vmul.f32 %v1938_v47, %v6054_v6  ;;  %v1940_v54 = vmul.f32 0.044715, %v6061_v48  ;;  %v1951_v55 = vmul.f32 %v1939_v42, %v6045_v12 }
 0xa14   : > { %5303 = vtanh.f32 %v1983_v44  ;;  %v1978_v56 = vmul.f32 0.7978846, %v1966_v49  ;;  %v1982_v57 = vmul.f32 0.7978846, %v1970_v26  ;;  %v1968_v58 = vadd.f32 %v1956_v40, %v6012_v7 }
 0xa15   : > { %v1952_v27 = vmul.f32 %v1940_v54, %v6061_v48  ;;  %v1972_v59 = vadd.f32 %v1960_v43, %v6027_v52  ;;  %v1962_v61 = vmul.f32 %v1950_v53, %v6054_v6  ;;  %v1961_v3 = vmul.f32 %v1949_v50, %v6043_v11 }
 0xa16   : > { %5305 = vtanh.f32 %v1978_v56  ;;  %v1980_v62 = vmul.f32 0.7978846, %v1968_v58  ;;  %v1963_v4 = vmul.f32 %v1951_v55, %v6045_v12  ;;  %v1917_v36 = vmul.f32 0.5, %v6005_v28 }
 0xa17   : > { %5307 = vtanh.f32 %v1982_v57  ;;  %v1984_v63 = vmul.f32 0.7978846, %v1972_v59  ;;  %v1974_v0 = vadd.f32 %v1962_v61, %v6054_v6  ;;  %v1964_v2 = vmul.f32 %v1952_v27, %v6061_v48 }
 0xa18   : > { %5309 = vtanh.f32 %v1980_v62  ;;  %v1973_v13 = vadd.f32 %v1961_v3, %v6043_v11  ;;  %v1975_v14 = vadd.f32 %v1963_v4, %v6045_v12  ;;  %v1921_v38 = vmul.f32 0.5, %v6018_v45 }
 0xa19   : > { %5311 = vtanh.f32 %v1984_v63  ;;  %v1986_v8 = vmul.f32 0.7978846, %v1974_v0  ;;  %v1976_v9 = vadd.f32 %v1964_v2, %v6061_v48  ;;  %v1919_v24 = vmul.f32 0.5, %v6007_v25 }
 0xa1a   : > { %v1985_v21 = vmul.f32 0.7978846, %v1973_v13  ;;  %v1987_v30 = vmul.f32 0.7978846, %v1975_v14  ;;  %v1923_v40 = vmul.f32 0.5, %v6020_v46  ;;  %v1918_v45 = vmul.f32 0.5, %v6009_v39 }
 0xa1b   : > { %v5298_v5 = vpop.eup %5297  ;;  %5313 = vtanh.f32 %v1986_v8  ;;  %v1988_v16 = vmul.f32 0.7978846, %v1976_v9  ;;  %v1922_v54 = vmul.f32 0.5, %v6024_v51  ;;  %v1920_v46 = vmul.f32 0.5, %v6012_v7 }
 0xa1c   : > { %v5300_v10 = vpop.eup %5299  ;;  %v2001_v15 = vadd.f32 1.0, %v5298_v5  ;;  %v1924_v59 = vmul.f32 0.5, %v6027_v52  ;;  %v1926_v63 = vmul.f32 0.5, %v6054_v6  ;;  %v1928_v7 = vmul.f32 0.5, %v6061_v48 }
 0xa1d   : > { %v5302_v17 = vpop.eup %5301  ;;  %v2003_v18 = vadd.f32 1.0, %v5300_v10  ;;  %5315 = vtanh.f32 %v1988_v16  ;;  %v1925_v52 = vmul.f32 0.5, %v6043_v11 }
 0xa1e   : > { %v5304_v20 = vpop.eup %5303  ;;  %v2005_v23 = vadd.f32 1.0, %v5302_v17  ;;  %5317 = vtanh.f32 %v1985_v21  ;;  %v2013_v42 = vmul.f32 %v2001_v15, %v1917_v36  ;;  %v1927_v17 = vmul.f32 0.5, %v6045_v12 }
 0xa1f   : > { %v2007_v41 = vadd.f32 1.0, %v5304_v20  ;;  %5319 = vtanh.f32 %v1987_v30  ;;  %v2015_v47 = vmul.f32 %v2003_v18, %v1919_v24 }
 0xa20   : > { %v2017_v44 = vmul.f32 %v2005_v23, %v1921_v38  ;;  %v5306_v43 = vpop.eup %5305 }
 0xa21   : > { %v2019_v49 = vmul.f32 %v2007_v41, %v1923_v40  ;;  %v5308_v26 = vpop.eup %5307  ;;  %v2002_v50 = vadd.f32 1.0, %v5306_v43 }
 0xa22   : > { %v2025_v53 = vpack.c.bf16 %v2017_v44, %v2013_v42  ;;  %v5310_v28 = vpop.eup %5309  ;;  %v2006_v55 = vadd.f32 1.0, %v5308_v26 }
 0xa23   : > { %v2027_v25 = vpack.c.bf16 %v2019_v49, %v2015_v47  ;;  %v5312_v56 = vpop.eup %5311  ;;  %v2004_v57 = vadd.f32 1.0, %v5310_v28  ;;  %v2014_v58 = vmul.f32 %v2002_v50, %v1918_v45  ;;  %v4371_v49 = vld [vmem:[%s6682_s14] ss:$0 sm:$0xff] }
 0xa24   : > { %v2018_v27 = vmul.f32 %v2006_v55, %v1922_v54  ;;  %v2008_v61 = vadd.f32 1.0, %v5312_v56 }
 0xa25   : > { %v5314_v62 = vpop.eup %5313  ;;  %v2016_v2 = vmul.f32 %v2004_v57, %v1920_v46 }
 0xa26   : > { %v2026_v0 = vpack.c.bf16 %v2018_v27, %v2014_v58  ;;  %v2020_v3 = vmul.f32 %v2008_v61, %v1924_v59  ;;  %v2010_v39 = vadd.f32 1.0, %v5314_v62 }
 0xa27   : > { %v5316_v4 = vpop.eup %5315 }
 0xa28   : > { %v5318_v51 = vpop.eup %5317  ;;  %2321 = vmatprep.mubr.bf16.mxu1 %v2026_v0  ;;  %v2028_v5 = vpack.c.bf16 %v2020_v3, %v2016_v2  ;;  %v2022_v8 = vmul.f32 %v2010_v39, %v1926_v63  ;;  %v2012_v9 = vadd.f32 1.0, %v5316_v4  ;;  %v5141_v63 = vld [vmem:[%s6673_s5 + $0xc0] ss:$12 sps:$4 sm:$0xff]   ;;  %v5143_v0 = vld [vmem:[%s6673_s5 + $0xc4] ss:$12 sps:$4 sm:$0xff]  }
 0xa29   : > { %v5320_v10 = vpop.eup %5319  ;;  %2322 = vmatmul.mubr.bf16.vlgmr.msra.gmra.mrb[28].mxu1 %v2025_v53  ;;  %v2009_v13 = vadd.f32 1.0, %v5318_v51  ;;  %v5146_v2 = vld [vmem:[%s6673_s5 + $0xdc] ss:$12 sps:$4 sm:$0xff]   ;;  %2634 = vmatprep.subr.bf16.mxu1 %v5143_v0  ;;  %v5144_v3 = vld [vmem:[%s6673_s5 + $0xd8] ss:$12 sps:$4 sm:$0xff]  }
 0xa2a   : > { %2369 = vmatprep.mubr.bf16.mxu0 %v2028_v5  ;;  %v2030_v14 = vpack.c.bf16 %v2022_v8, %v2022_v8  ;;  %v2024_v6 = vmul.f32 %v2012_v9, %v1928_v7  ;;  %v2011_v15 = vadd.f32 1.0, %v5320_v10  ;;  %2635 = vmatpush1.bf16.msra.mxu1 %v5141_v63 }
 0xa2b   : > { %2370 = vmatmul.mubr.bf16.vlgmr.msra.gmra.mrb[28].mxu0 %v2027_v25  ;;  %v2021_v16 = vmul.f32 %v2009_v13, %v1925_v52  ;;  %2636 = vmatprep.subr.bf16.mxu1 %v5146_v2 }
 0xa2c   : > { %2329 = vmatprep.mubr.bf16.mxu1 %v2030_v14  ;;  %v2032_v18 = vpack.c.bf16 %v2024_v6, %v2024_v6  ;;  %v2023_v21 = vmul.f32 %v2011_v15, %v1927_v17  ;;  %v5150_v15 = vld [vmem:[%s6673_s5 + $0xf4] ss:$12 sps:$4 sm:$0xff]  }
 0xa2d   : > { %v2029_v30 = vpack.c.bf16 %v2021_v16, %v2021_v16  ;;  %v5148_v16 = vld [vmem:[%s6673_s5 + $0xf0] ss:$12 sps:$4 sm:$0xff]   ;;  %v5151_v17 = vld [vmem:[%s6673_s5 + $0xe0] ss:$12 sps:$4 sm:$0xff]  }
 0xa2e   : > { %2377 = vmatprep.mubr.bf16.mxu0 %v2032_v18  ;;  %v2031_v48 = vpack.c.bf16 %v2023_v21, %v2023_v21  ;;  %2637 = vmatpush1.bf16.msra.mxu1 %v5144_v3  ;;  %v5154_v18 = vld [vmem:[%s6673_s5 + $0x10c] ss:$12 sps:$4 sm:$0xff]   ;;  %v5152_v21 = vld [vmem:[%s6673_s5 + $0x108] ss:$12 sps:$4 sm:$0xff]  }
 0xa2f   : > { %2638 = vmatprep.subr.bf16.mxu1 %v5150_v15 }
 0xa31   : > { %2330 = vmatmul.mubr.bf16.gmra.mrb[32].mxu1 %v2029_v30  ;;  %v5155_v30 = vld [vmem:[%s6673_s5 + $0xf8] ss:$12 sps:$4 sm:$0xff]  }
 0xa32   : > { %2666 = vmatprep.mubr.bf16.mxu1 %v5395_v1  ;;  %2639 = vmatpush1.bf16.msra.mxu1 %v5148_v16 }
 0xa33   : > { %2378 = vmatmul.mubr.bf16.gmra.mrb[32].mxu0 %v2031_v48  ;;  %2640 = vmatprep.subr.bf16.mxu1 %v5154_v18  ;;  %v5158_v48 = vld [vmem:[%s6673_s5 + $0x124] ss:$12 sps:$4 sm:$0xff]  }
 0xa36   : > { %2641 = vmatpush1.bf16.msra.mxu1 %v5152_v21 }
 0xa37   : > { %2642 = vmatprep.subr.bf16.mxu1 %v5158_v48 }
 0xafc   : > { %v4693_v11 = vpop.f32.mrb[28].mxu1 }
 0xafd   : > { %v4694_v20 = vpop.f32.mrb[29].mxu1 }
 0xafe   : > { %v4721_v36 = vpop.f32.mrb[28].mxu0  ;;  %v4695_v38 = vadd.f32 %v4694_v20, %v4693_v11  ;;  %v4696_v23 = vpop.f32.mrb[30].mxu1  ;;  %v5156_v11 = vld [vmem:[%s6673_s5 + $0x120] ss:$12 sps:$4 sm:$0xff]   ;;  %v5159_v20 = vld [vmem:[%s6673_s5 + $0x110] ss:$12 sps:$4 sm:$0xff]  }
 0xaff   : > { %v4722_v24 = vpop.f32.mrb[29].mxu0  ;;  %v4697_v40 = vpop.f32.mrb[31].mxu1  ;;  %2643 = vmatpush1.bf16.msra.mxu1 %v5156_v11 }
 0xb00   : > { %v4723_v41 = vadd.f32 %v4722_v24, %v4721_v36  ;;  %v4724_v42 = vpop.f32.mrb[30].mxu0  ;;  %v4698_v12 = vadd.f32 %v4697_v40, %v4696_v23  ;;  %v5162_v36 = vld [vmem:[%s6673_s5 + $0x13c] ss:$12 sps:$4 sm:$0xff]   ;;  %v5166_v24 = vld [vmem:[%s6673_s5 + $0x154] ss:$12 sps:$4 sm:$0xff]  }
 0xb01   : > { %v4725_v44 = vpop.f32.mrb[31].mxu0  ;;  %2644 = vmatprep.subr.bf16.mxu1 %v5162_v36  ;;  %v5163_v23 = vld [vmem:[%s6673_s5 + $0x128] ss:$12 sps:$4 sm:$0xff]   ;;  %v5164_v40 = vld [vmem:[%s6673_s5 + $0x150] ss:$12 sps:$4 sm:$0xff]  }
 0xb02   : > { %v2372_v43 = vadd.f32 %v4723_v41, %v4695_v38  ;;  %v4726_v47 = vadd.f32 %v4725_v44, %v4724_v42  ;;  %v5160_v38 = vld [vmem:[%s6673_s5 + $0x138] ss:$12 sps:$4 sm:$0xff]   ;;  %v5167_v41 = vld [vmem:[%s6673_s5 + $0x140] ss:$12 sps:$4 sm:$0xff]  }
 0xb03   : > { %2645 = vmatpush1.bf16.msra.mxu1 %v5160_v38  ;;  %v5170_v42 = vld [vmem:[%s6673_s5 + $0x16c] ss:$12 sps:$4 sm:$0xff]  }
 0xb04   : > { %v2385_v26 = vadd.f32 %v2372_v43, %v5766_v29  ;;  %v2375_v50 = vadd.f32 %v4726_v47, %v4698_v12  ;;  %v4699_v53 = vpop.f32.mrb[32].mxu1  ;;  %2646 = vmatprep.subr.bf16.mxu1 %v5166_v24  ;;  %v5168_v12 = vld [vmem:[%s6673_s5 + $0x168] ss:$12 sps:$4 sm:$0xff]   ;;  %v5171_v44 = vld [vmem:[%s6673_s5 + $0x158] ss:$12 sps:$4 sm:$0xff]  }
 0xb05   : > { %v4700_v28 = vpop.f32.mrb[33].mxu1  ;;  %v5172_v43 = vld [vmem:[%s6673_s5 + $0x170] ss:$12 sps:$4 sm:$0xff]  }
 0xb06   : > { %v2386_v45 = vadd.f32 %v2375_v50, %v5769_v31  ;;  %v4727_v54 = vpop.f32.mrb[32].mxu0  ;;  %v4701_v55 = vadd.f32 %v4700_v28, %v4699_v53  ;;  %v6098_v25 = vadd.f32 %v4371_v49, %v2385_v26  ;;  %v4702_v56 = vpop.f32.mrb[34].mxu1 }
 0xb07   : > { %v4728_v46 = vpop.f32.mrb[33].mxu0  ;;  %v4703_v57 = vpop.f32.mrb[35].mxu1  ;;  %2647 = vmatpush1.bf16.msra.mxu1 %v5164_v40 }
 0xb08   : > { %v4729_v58 = vadd.f32 %v4728_v46, %v4727_v54  ;;  %v4730_v27 = vpop.f32.mrb[34].mxu0  ;;  %2402 = vadd.xlane.f32.xlu0 %v6098_v25  ;;  %v6101_v59 = vadd.f32 %v4371_v49, %v2386_v45  ;;  %2648 = vmatprep.subr.bf16.mxu1 %v5170_v42  ;;  %v4374_v46 = vld [vmem:[%s6671_s3 + $0x1] ss:$0 sm:$0xff] }
 0xb09   : > { %v4731_v61 = vpop.f32.mrb[35].mxu0 }
 0xb0a   : > { %v2380_v29 = vadd.f32 %v4729_v58, %v4701_v55  ;;  %2404 = vadd.xlane.f32.xlu1 %v6101_v59 }
 0xb0b   : > { %2649 = vmatpush1.bf16.msra.mxu1 %v5168_v12 }
 0xb0c   : > { %v2387_v62 = vadd.f32 %v2380_v29, %v5772_v32  ;;  %v5147_v32 = vld [vmem:[%s6673_s5 + $0xc8] ss:$12 sps:$4 sm:$0xff]   ;;  %v4375_v29 = vld [vmem:[%s6672_s4 + $0x1] ss:$0 sm:$0xff] }
 0xb0d   : > { %4897 = vmatprep.subr.bf16.mxu0 %v5147_v32 }
 0xb0e   : > { %v6105_v31 = vadd.f32 %v4371_v49, %v2387_v62  ;;  %4898 = vmatpush3.bf16.msra.mxu0 %v5147_v32 }
 0xb0f   : > { %4899 = vmatprep.subr.bf16.mxu0 %v5151_v17 }
 0xb10   : > { %2406 = vadd.xlane.f32.xlu0 %v6105_v31 }
 0xb12   : > { %4900 = vmatpush3.bf16.msra.mxu0 %v5151_v17 }
 0xb13   : > { %4901 = vmatprep.subr.bf16.mxu0 %v5155_v30 }
 0xb16   : > { %4902 = vmatpush3.bf16.msra.mxu0 %v5155_v30 }
 0xb17   : > { %4903 = vmatprep.subr.bf16.mxu0 %v5159_v20 }
 0xb1a   : > { %4904 = vmatpush3.bf16.msra.mxu0 %v5159_v20 }
 0xb1b   : > { %4905 = vmatprep.subr.bf16.mxu0 %v5163_v23 }
 0xb1e   : > { %4906 = vmatpush3.bf16.msra.mxu0 %v5163_v23 }
 0xb1f   : > { %4907 = vmatprep.subr.bf16.mxu0 %v5167_v41 }
 0xb22   : > { %4908 = vmatpush3.bf16.msra.mxu0 %v5167_v41 }
 0xb23   : > { %4909 = vmatprep.subr.bf16.mxu0 %v5171_v44 }
 0xb26   : > { %4910 = vmatpush3.bf16.msra.mxu0 %v5171_v44 }
 0xb27   : > { %4911 = vmatprep.subr.bf16.mxu0 %v5172_v43 }
 0xb2a   : > { %4912 = vmatpush3.bf16.msra.mxu0 %v5172_v43 }
 0xb95   : > { %v2403_v39 = vpop.xlane.xlu0 %2402 }
 0xb96   : > { %v2408_v4 = vmul.f32 0.0078125, %v2403_v39 }
 0xb97   : > { %v2405_v51 = vpop.xlane.xlu1 %2404 }
 0xb98   : > { %v6124_v5 = vsub.f32 %v6098_v25, %v2408_v4  ;;  %v2409_v8 = vmul.f32 0.0078125, %v2405_v51 }
 0xb9a   : > { %v6127_v7 = vsub.f32 %v6101_v59, %v2409_v8  ;;  %v2414_v9 = vmul.f32 %v6124_v5, %v6124_v5 }
 0xb9c   : > { %2417 = vadd.xlane.f32.xlu1 %v2414_v9  ;;  %v2415_v10 = vmul.f32 %v6127_v7, %v6127_v7 }
 0xb9d   : > { %v2407_v52 = vpop.xlane.xlu0 %2406 }
 0xb9e   : > { %v2410_v13 = vmul.f32 0.0078125, %v2407_v52  ;;  %2419 = vadd.xlane.f32.xlu0 %v2415_v10 }
 0xba0   : > { %v6134_v14 = vsub.f32 %v6105_v31, %v2410_v13 }
 0xba2   : > { %v2416_v6 = vmul.f32 %v6134_v14, %v6134_v14 }
 0xba4   : > { %2421 = vadd.xlane.f32.xlu1 %v2416_v6 }
 0xc29   : > { %v2418_v47 = vpop.xlane.xlu1 %2417 }
 0xc2a   : > { %v2423_v49 = vmul.f32 0.0078125, %v2418_v47 }
 0xc2b   : > { %v2420_v26 = vpop.xlane.xlu0 %2419 }
 0xc2c   : > { %v2426_v50 = vadd.f32 1e-06, %v2423_v49  ;;  %v2424_v53 = vmul.f32 0.0078125, %v2420_v26 }
 0xc2e   : > { %5321 = vrsqrt.f32 %v2426_v50  ;;  %v2427_v28 = vadd.f32 1e-06, %v2424_v53 }
 0xc30   : > { %5323 = vrsqrt.f32 %v2427_v28 }
 0xc31   : > { %v2422_v45 = vpop.xlane.xlu1 %2421 }
 0xc32   : > { %v2425_v54 = vmul.f32 0.0078125, %v2422_v45 }
 0xc34   : > { %v2428_v55 = vadd.f32 1e-06, %v2425_v54 }
 0xc36   : > { %5325 = vrsqrt.f32 %v2428_v55 }
 0xc38   : > { %v5322_v56 = vpop.eup %5321 }
 0xc39   : > { %v2432_v57 = vmul.f32 %v5322_v56, %v6124_v5  ;;  %v4408_v5 = vld [vmem:[%s6674_s6 + $0x3] sm:$0x7] }
 0xc3a   : > { %v5324_v58 = vpop.eup %5323  ;;  %v2494_v8 = vrot.slane %v4408_v5, %v5659_v35  ;;  %v2498_v9 = vrot.slane %v4408_v5, %v5665_v37  ;;  %v2502_v21 = vrot.slane %v4408_v5, %v5680_v60 }
 0xc3b   : > { %v2441_v27 = vmul.f32 %v4374_v46, %v2432_v57  ;;  %v2433_v61 = vmul.f32 %v5324_v58, %v6127_v7 }
 0xc3d   : > { %v2442_v62 = vmul.f32 %v4374_v46, %v2433_v61  ;;  %v2450_v63 = vadd.f32 %v4375_v29, %v2441_v27 }
 0xc3f   : > { %v2451_v0 = vadd.f32 %v4375_v29, %v2442_v62 }
 0xc40   : > { %v5326_v2 = vpop.eup %5325 }
 0xc41   : > { %v2434_v32 = vmul.f32 %v5326_v2, %v6134_v14  ;;  %v2453_v3 = vpack.c.bf16 %v2451_v0, %v2450_v63 }
 0xc43   : > { %2667 = vmatmul.mubr.bf16.vlgmr.msra.gmra.mrb[36].mxu1 %v2453_v3  ;;  %4913 = vmatprep.mubr.bf16.mxu0 %v2453_v3  ;;  %v2443_v39 = vmul.f32 %v4374_v46, %v2434_v32 }
 0xc44   : > { %2676 = vmatprep.mubr.bf16.mxu1 %v5395_v1 }
 0xc45   : > { %v2452_v4 = vadd.f32 %v4375_v29, %v2443_v39 }
 0xc47   : > { %v2454_v51 = vpack.c.bf16 %v2452_v4, %v2452_v4 }
 0xc49   : > { %4914 = vmatmul.mubr.bf16.vlgmr.msra.gmra.mrb[36].mxu0 %v2454_v51 }
 0xc4b   : > { %2677 = vmatmul.mubr.bf16.gmra.mrb[40].mxu1 %v2454_v51 }
 0xd16   : > { %v2668_v7 = vpop.f32.mrb[36].mxu1 }
 0xd17   : > { %v2670_v10 = vpop.f32.mrb[37].mxu1  ;;  %v2669_v13 = vadd.f32 %v2668_v7, %v2494_v8 }
 0xd18   : > { %v2672_v52 = vpop.f32.mrb[38].mxu1  ;;  %v2671_v15 = vadd.f32 %v2670_v10, %v2498_v9 }
 0xd19   : > { %v2673_v14 = vadd.f32 %v2672_v52, %v2494_v8  ;;  %v2674_v6 = vpop.f32.mrb[39].mxu1 }
 0xd1a   : > { %v2675_v16 = vadd.f32 %v2674_v6, %v2498_v9 }
 0xd1b   : > { %v6210_v17 = vpack.c.bf16 %v2673_v14, %v2669_v13 }
 0xd1c   : > { %v6212_v18 = vpack.c.bf16 %v2675_v16, %v2671_v15  ;;  %v4915_v30 = vpop.f32.mrb[36].mxu0 }
 0xd1d   : > { %v2719_v48 = vpop.f32.mrb[37].mxu0  ;;  %4921 = vmatprep.mubr.msk.bf16.mxu1 %vm670_vm0, %v6210_v17  ;;  %v2728_v26 = vadd.f32 %v4915_v30, %v2502_v21 }
 0xd1e   : > { %v2678_v11 = vpop.f32.mrb[40].mxu1  ;;  %v4916_v20 = vpop.f32.mrb[38].mxu0  ;;  %4975 = vmatprep.subr.msk.bf16.mxu1 %vm670_vm0, %v6212_v18  ;;  %v2744_v36 = vsel %vm670_vm0, %v6212_v18, 0  ;;  %v2720_v24 = vadd.f32 %v2719_v48, %v2502_v21 }
 0xd1f   : > { %v2680_v38 = vpop.f32.mrb[41].mxu1  ;;  %v2722_v23 = vpop.f32.mrb[39].mxu0  ;;  %4918 = vmatpush3.bf16.xpose.msra.mxu1 %v2744_v36  ;;  %v2679_v49 = vadd.f32 %v2678_v11, %v2494_v8  ;;  %v6226_v53 = vpack.c.bf16 %v2728_v26, %v2728_v26 }
 0xd20   : > { %v2681_v40 = vadd.f32 %v2680_v38, %v2498_v9  ;;  %v2723_v41 = vadd.f32 %v2722_v23, %v2502_v21  ;;  %v2682_v42 = vpop.f32.mrb[42].mxu1 }
 0xd21   : > { %v2683_v12 = vpop.f32.mrb[43].mxu1  ;;  %v2734_v50 = vpack.c.bf16 %v2679_v49, %v2679_v49  ;;  %v2847_v28 = vsel %vm1175_vm1, %v6226_v53, 0 }
 0xd22   : > { %v2736_v44 = vpack.c.bf16 %v2681_v40, %v2681_v40  ;;  %v6221_v43 = vpack.c.bf16 %v2723_v41, %v2720_v24 }
 0xd24   : > { %4976 = vmatprep.subr.msk.bf16.mxu1 %vm670_vm0, %v2736_v44  ;;  %v2747_v47 = vsel %vm670_vm0, %v2736_v44, 0 }
 0xd27   : > { %4920 = vmatpush3.bf16.xpose.msra.mxu1 %v2747_v47 }
 0xd28   : > { %4925 = vmatprep.subr.bf16.mxu1 %v6221_v43 }
 0xd2e   : > { %4922 = vmatmul.mubr.msk.bf16.vlgmr.msra.gmra.mrb[44].mxu1 %vm670_vm0, %v2734_v50 }
 0xd2f   : > { %4926 = vmatpush3.bf16.msra.mxu1 %v6221_v43 }
 0xd30   : > { %4977 = vmatprep.subr.msk.bf16.mxu1 %vm1175_vm1, %v6226_v53 }
 0xd33   : > { %4928 = vmatpush3.bf16.msra.mxu1 %v2847_v28 }
 0xe01   : > { %v4923_v45 = vpop.f32.mrb[44].mxu1 }
 0xe02   : > { %v2783_v54 = vpop.f32.mrb[45].mxu1  ;;  %v2799_v55 = vmul.f32 0.125, %v4923_v45 }
 0xe03   : > { %v2797_v56 = vmul.f32 0.125, %v2783_v54  ;;  %v4924_v46 = vpop.f32.mrb[46].mxu1 }
 0xe04   : > { %v2786_v57 = vpop.f32.mrb[47].mxu1  ;;  %v2802_v62 = vadd.f32 %v2799_v55, %v5701_v19 }
 0xe05   : > { %v2798_v58 = vmul.f32 0.125, %v2786_v57  ;;  %v2800_v27 = vadd.f32 %v2797_v56, %v5701_v19 }
 0xe06   : > { %v2809_v0 = vsel %vm1131_vm3, %v2802_v62, -inf }
 0xe07   : > { %v2803_v61 = vsel %vm1131_vm3, %v2800_v27, -inf  ;;  %v2801_v29 = vadd.f32 %v2798_v58, %v5701_v19 }
 0xe08   : > { %2804 = vmax.xlane.f32.xlu0 %v2803_v61 }
 0xe09   : > { %v2806_v63 = vsel %vm1131_vm3, %v2801_v29, -inf }
 0xe0a   : > { %2807 = vmax.xlane.f32.xlu1 %v2806_v63 }
 0xe0c   : > { %2810 = vmax.xlane.f32.xlu0 %v2809_v0 }
 0xe95   : > { %v2805_v2 = vpop.xlane.xlu0 %2804 }
 0xe96   : > { %v2812_v32 = vsub.f32 %v2800_v27, %v2805_v2 }
 0xe97   : > { %v2808_v3 = vpop.xlane.xlu1 %2807 }
 0xe98   : > { %v2815_v39 = vmul.f32 1.442695, %v2812_v32  ;;  %v2813_v4 = vsub.f32 %v2801_v29, %v2808_v3 }
 0xe99   : > { %v2811_v51 = vpop.xlane.xlu0 %2810 }
 0xe9a   : > { %5327 = vpow2.f32 %v2815_v39  ;;  %v2817_v5 = vmul.f32 1.442695, %v2813_v4  ;;  %v2814_v8 = vsub.f32 %v2802_v62, %v2811_v51 }
 0xe9c   : > { %5329 = vpow2.f32 %v2817_v5  ;;  %v2819_v7 = vmul.f32 1.442695, %v2814_v8 }
 0xe9e   : > { %5331 = vpow2.f32 %v2819_v7 }
 0xea4   : > { %v5328_v9 = vpop.eup %5327 }
 0xea5   : > { %v2821_v10 = vsel %vm1131_vm3, %v5328_v9, 0.0 }
 0xea6   : > { %v5330_v52 = vpop.eup %5329  ;;  %2822 = vadd.xlane.f32.xlu1 %v2821_v10 }
 0xea7   : > { %v2824_v13 = vsel %vm1131_vm3, %v5330_v52, 0.0 }
 0xea8   : > { %v5332_v14 = vpop.eup %5331  ;;  %2825 = vadd.xlane.f32.xlu0 %v2824_v13 }
 0xea9   : > { %v2827_v6 = vsel %vm1131_vm3, %v5332_v14, 0.0 }
 0xeaa   : > { %2828 = vadd.xlane.f32.xlu1 %v2827_v6 }
 0xebb   : > { %2907 = vrot.lane.b32.xlu1 %v2736_v44, %s5396_s1 }
 0xebe   : > { %2905 = vrot.lane.b32.xlu0 %v6212_v18, %s5396_s1 }
 0xebf   : > { %2899 = vrot.lane.b32.xlu1 %v6210_v17, %s5396_s1 }
 0xec3   : > { %2901 = vrot.lane.b32.xlu1 %v2734_v50, %s5396_s1 }
 0xf33   : > { %v2823_v15 = vpop.xlane.xlu1 %2822 }
 0xf34   : > { %5333 = vrcp.f32 %v2823_v15 }
 0xf35   : > { %v2826_v16 = vpop.xlane.xlu0 %2825 }
 0xf36   : > { %5335 = vrcp.f32 %v2826_v16 }
 0xf37   : > { %v2829_v21 = vpop.xlane.xlu1 %2828 }
 0xf38   : > { %5337 = vrcp.f32 %v2829_v21 }
 0xf39   : > { %v2906_v30 = vpop.permute.xlu0 %2905 }
 0xf3a   : > { %4978 = vmatprep.subr.msk.bf16.mxu1 %vm670_vm0, %v2906_v30  ;;  %v2916_v40 = vsel %vm670_vm0, %v2906_v30, 0 }
 0xf3b   : > { %v2908_v20 = vpop.permute.xlu1 %2907 }
 0xf3c   : > { %v2919_v42 = vsel %vm670_vm0, %v2908_v20, 0 }
 0xf3e   : > { %v5334_v48 = vpop.eup %5333 }
 0xf3f   : > { %v2833_v36 = vmul.f32 %v5334_v48, %v5328_v9  ;;  %v2900_v41 = vpop.permute.xlu1 %2899 }
 0xf40   : > { %v5336_v11 = vpop.eup %5335 }
 0xf41   : > { %v2834_v38 = vmul.f32 %v5336_v11, %v5330_v52 }
 0xf42   : > { %v5338_v18 = vpop.eup %5337 }
 0xf43   : > { %v2835_v23 = vmul.f32 %v5338_v18, %v5332_v14  ;;  %v2836_v24 = vpack.c.bf16 %v2834_v38, %v2833_v36  ;;  %v2902_v12 = vpop.permute.xlu1 %2901  ;;  %v5173_v18 = vld [vmem:[%s6675_s7 + $0x40] sm:$0xff]  }
 0xf45   : > { %4929 = vmatprep.mubr.msk.bf16.mxu1 %vm1131_vm3, %v2836_v24  ;;  %v2837_v17 = vpack.c.bf16 %v2835_v23, %v2835_v23  ;;  %v5174_v23 = vld [vmem:[%s6675_s7 + $0x48] sm:$0xff]   ;;  %v5175_v24 = vld [vmem:[%s6675_s7 + $0x50] sm:$0xff]  }
 0xf47   : > { %4930 = vmatmul.mubr.msk.bf16.vlgmr.msra.gmra.mrb[48].mxu1 %vm1131_vm3, %v2837_v17  ;;  %v5176_v17 = vld [vmem:[%s6675_s7 + $0x58] sm:$0xff]  }
 0xf48   : > { %4934 = vmatpush3.bf16.xpose.msra.mxu1 %v2916_v40  ;;  %4937 = vmatprep.mubr.msk.bf16.mxu1 %vm670_vm0, %v2900_v41  ;;  %v5177_v40 = vld [vmem:[%s6675_s7 + $0x60] sm:$0xff]   ;;  %v5178_v41 = vld [vmem:[%s6675_s7 + $0x68] sm:$0xff]  }
 0xf49   : > { %4979 = vmatprep.subr.msk.bf16.mxu1 %vm670_vm0, %v2908_v20 }
 0xf50   : > { %4936 = vmatpush3.bf16.xpose.msra.mxu1 %v2919_v42  ;;  %v5179_v42 = vld [vmem:[%s6675_s7 + $0x70] sm:$0xff]  }
 0xf57   : > { %4938 = vmatmul.mubr.msk.bf16.vlgmr.msra.gmra.mrb[52].mxu1 %vm670_vm0, %v2902_v12  ;;  %v5180_v12 = vld [vmem:[%s6675_s7 + $0x78] sm:$0xff]  }
 0xf58   : > { %3523 = vmatprep.mubr.bf16.mxu1 %v5395_v1 }
0x101a   : > { %v6258_v44 = vpop.f32.mrb[48].mxu1 }
0x101b   : > { %v6260_v47 = vpop.f32.mrb[49].mxu1 }
0x101c   : > { %v4932_v49 = vpop.f32.mrb[50].mxu1 }
0x101d   : > { %v6262_v26 = vpop.f32.mrb[51].mxu1 }
0x102a   : > { %v4939_v50 = vpop.f32.mrb[52].mxu1 }
0x102b   : > { %v2955_v28 = vpop.f32.mrb[53].mxu1  ;;  %v2971_v45 = vmul.f32 0.125, %v4939_v50 }
0x102c   : > { %v2969_v54 = vmul.f32 0.125, %v2955_v28  ;;  %v4940_v55 = vpop.f32.mrb[54].mxu1 }
0x102d   : > { %v2958_v56 = vpop.f32.mrb[55].mxu1  ;;  %v2974_v61 = vadd.f32 %v2971_v45, %v5701_v19 }
0x102e   : > { %v2970_v46 = vmul.f32 0.125, %v2958_v56  ;;  %v2972_v57 = vadd.f32 %v2969_v54, %v5701_v19 }
0x102f   : > { %v2981_v62 = vsel %vm1131_vm3, %v2974_v61, -inf }
0x1030   : > { %v2975_v58 = vsel %vm1131_vm3, %v2972_v57, -inf  ;;  %v2973_v27 = vadd.f32 %v2970_v46, %v5701_v19 }
0x1031   : > { %2976 = vmax.xlane.f32.xlu0 %v2975_v58 }
0x1032   : > { %v2978_v29 = vsel %vm1131_vm3, %v2973_v27, -inf }
0x1033   : > { %2979 = vmax.xlane.f32.xlu1 %v2978_v29 }
0x1035   : > { %2982 = vmax.xlane.f32.xlu0 %v2981_v62 }
0x10be   : > { %v2977_v63 = vpop.xlane.xlu0 %2976 }
0x10bf   : > { %v2984_v0 = vsub.f32 %v2972_v57, %v2977_v63 }
0x10c0   : > { %v2980_v2 = vpop.xlane.xlu1 %2979 }
0x10c1   : > { %v2987_v32 = vmul.f32 1.442695, %v2984_v0  ;;  %v2985_v3 = vsub.f32 %v2973_v27, %v2980_v2  ;;  %v4466_v0 = vld [vmem:[%s6676_s8 + $0x1] ss:$0 sm:$0xff] }
0x10c2   : > { %v2983_v39 = vpop.xlane.xlu0 %2982 }
0x10c3   : > { %5339 = vpow2.f32 %v2987_v32  ;;  %v2989_v4 = vmul.f32 1.442695, %v2985_v3  ;;  %v2986_v51 = vsub.f32 %v2974_v61, %v2983_v39 }
0x10c5   : > { %5341 = vpow2.f32 %v2989_v4  ;;  %v2991_v5 = vmul.f32 1.442695, %v2986_v51 }
0x10c7   : > { %5343 = vpow2.f32 %v2991_v5  ;;  %v5186_v5 = vld [vmem:[%s6679_s11 + $0x10c] ss:$16 sps:$4 sm:$0xff]  }
0x10cd   : > { %v5340_v19 = vpop.eup %5339 }
0x10ce   : > { %v2993_v8 = vsel %vm1131_vm3, %v5340_v19, 0.0 }
0x10cf   : > { %v5342_v7 = vpop.eup %5341  ;;  %2994 = vadd.xlane.f32.xlu0 %v2993_v8  ;;  %v5192_v8 = vld [vmem:[%s6679_s11 + $0x12c] ss:$16 sps:$4 sm:$0xff]  }
0x10d0   : > { %v2996_v52 = vsel %vm1131_vm3, %v5342_v7, 0.0 }
0x10d1   : > { %v5344_v9 = vpop.eup %5343 }
0x10d2   : > { %v2999_v10 = vsel %vm1131_vm3, %v5344_v9, 0.0 }
0x10d3   : > { %3000 = vadd.xlane.f32.xlu1 %v2999_v10  ;;  %2997 = vadd.xlane.f32.xlu0 %v2996_v52 }
0x10e4   : > { %3014 = vrot.lane.b32.xlu1 %v6226_v53, %s5396_s1 }
0x10e9   : > { %3012 = vrot.lane.b32.xlu0 %v6221_v43, %s5396_s1 }
0x115c   : > { %v2995_v13 = vpop.xlane.xlu0 %2994 }
0x115d   : > { %5345 = vrcp.f32 %v2995_v13 }
0x1160   : > { %v2998_v14 = vpop.xlane.xlu0 %2997  ;;  %v3001_v6 = vpop.xlane.xlu1 %3000 }
0x1161   : > { %5347 = vrcp.f32 %v2998_v14 }
0x1162   : > { %5349 = vrcp.f32 %v3001_v6 }
0x1164   : > { %v3013_v15 = vpop.permute.xlu0 %3012  ;;  %v3015_v16 = vpop.permute.xlu1 %3014 }
0x1165   : > { %4941 = vmatprep.subr.bf16.mxu0 %v3013_v15  ;;  %v3024_v30 = vsel %vm1175_vm1, %v3015_v16, 0 }
0x1166   : > { %4942 = vmatpush3.bf16.msra.mxu0 %v3013_v15 }
0x1167   : > { %4980 = vmatprep.subr.msk.bf16.mxu0 %vm1175_vm1, %v3015_v16  ;;  %v5346_v21 = vpop.eup %5345 }
0x1168   : > { %v3005_v11 = vmul.f32 %v5346_v21, %v5340_v19  ;;  %v5189_v19 = vld [vmem:[%s6679_s11 + $0x124] ss:$16 sps:$4 sm:$0xff]  }
0x116a   : > { %4944 = vmatpush3.bf16.msra.mxu0 %v3024_v30 }
0x116b   : > { %v5348_v53 = vpop.eup %5347  ;;  %4949 = vmatprep.subr.bf16.mxu0 %v5173_v18 }
0x116c   : > { %v5350_v48 = vpop.eup %5349  ;;  %v3006_v43 = vmul.f32 %v5348_v53, %v5342_v7  ;;  %v5187_v7 = vld [vmem:[%s6679_s11 + $0x120] ss:$16 sps:$4 sm:$0xff]  }
0x116d   : > { %v3007_v20 = vmul.f32 %v5350_v48, %v5344_v9  ;;  %v5190_v9 = vld [vmem:[%s6679_s11 + $0x128] ss:$16 sps:$4 sm:$0xff]  }
0x116e   : > { %v3008_v36 = vpack.c.bf16 %v3006_v43, %v3005_v11  ;;  %v5195_v43 = vld [vmem:[%s6679_s11 + $0x144] ss:$16 sps:$4 sm:$0xff]  }
0x116f   : > { %v3009_v38 = vpack.c.bf16 %v3007_v20, %v3007_v20  ;;  %v5198_v20 = vld [vmem:[%s6679_s11 + $0x14c] ss:$16 sps:$4 sm:$0xff]  }
0x1170   : > { %4945 = vmatprep.mubr.msk.bf16.mxu0 %vm1131_vm3, %v3008_v36  ;;  %v5193_v36 = vld [vmem:[%s6679_s11 + $0x140] ss:$16 sps:$4 sm:$0xff]  }
0x1171   : > { %4946 = vmatmul.mubr.msk.bf16.vlgmr.msra.gmra.mrb[40].mxu0 %vm1131_vm3, %v3009_v38  ;;  %v5196_v38 = vld [vmem:[%s6679_s11 + $0x148] ss:$16 sps:$4 sm:$0xff]  }
0x1172   : > { %4950 = vmatpush3.bf16.msra.mxu0 %v5173_v18  ;;  %v5201_v18 = vld [vmem:[%s6679_s11 + $0x164] ss:$16 sps:$4 sm:$0xff]  }
0x1173   : > { %4951 = vmatprep.subr.bf16.mxu0 %v5174_v23 }
0x1176   : > { %4952 = vmatpush3.bf16.msra.mxu0 %v5174_v23  ;;  %v5204_v23 = vld [vmem:[%s6679_s11 + $0x16c] ss:$16 sps:$4 sm:$0xff]  }
0x1177   : > { %4953 = vmatprep.subr.bf16.mxu0 %v5175_v24 }
0x117a   : > { %4954 = vmatpush3.bf16.msra.mxu0 %v5175_v24  ;;  %v5199_v24 = vld [vmem:[%s6679_s11 + $0x160] ss:$16 sps:$4 sm:$0xff]  }
0x117b   : > { %4955 = vmatprep.subr.bf16.mxu0 %v5176_v17 }
0x117e   : > { %4956 = vmatpush3.bf16.msra.mxu0 %v5176_v17  ;;  %v5202_v17 = vld [vmem:[%s6679_s11 + $0x168] ss:$16 sps:$4 sm:$0xff]  }
0x117f   : > { %4957 = vmatprep.subr.bf16.mxu0 %v5177_v40 }
0x1182   : > { %4958 = vmatpush3.bf16.msra.mxu0 %v5177_v40  ;;  %v5207_v40 = vld [vmem:[%s6679_s11 + $0x184] ss:$16 sps:$4 sm:$0xff]  }
0x1183   : > { %4959 = vmatprep.subr.bf16.mxu0 %v5178_v41 }
0x1186   : > { %4960 = vmatpush3.bf16.msra.mxu0 %v5178_v41  ;;  %v5210_v41 = vld [vmem:[%s6679_s11 + $0x18c] ss:$16 sps:$4 sm:$0xff]  }
0x1187   : > { %4961 = vmatprep.subr.bf16.mxu0 %v5179_v42 }
0x118a   : > { %4962 = vmatpush3.bf16.msra.mxu0 %v5179_v42  ;;  %v5205_v42 = vld [vmem:[%s6679_s11 + $0x180] ss:$16 sps:$4 sm:$0xff]  }
0x118b   : > { %4963 = vmatprep.subr.bf16.mxu0 %v5180_v12 }
0x118e   : > { %4964 = vmatpush3.bf16.msra.mxu0 %v5180_v12  ;;  %v5208_v12 = vld [vmem:[%s6679_s11 + $0x188] ss:$16 sps:$4 sm:$0xff]  }
0x118f   : > { %3542 = vmatprep.subr.bf16.mxu0 %v5186_v5 }
0x1244   : > { %v4947_v49 = vpop.f32.mrb[40].mxu0 }
0x1245   : > { %v3060_v50 = vpop.f32.mrb[41].mxu0 }
0x1246   : > { %v4948_v28 = vpop.f32.mrb[42].mxu0 }
0x1247   : > { %v3063_v45 = vpop.f32.mrb[43].mxu0  ;;  %v5211_v28 = vld [vmem:[%s6679_s11 + $0x1a0] ss:$16 sps:$4 sm:$0xff]  }
0x1248   : > { %v4999_v54 = vpack.i.bf16 %v3063_v45, %v3060_v50  ;;  %v5216_v50 = vld [vmem:[%s6679_s11 + $0x1ac] ss:$16 sps:$4 sm:$0xff]   ;;  %v5214_v45 = vld [vmem:[%s6679_s11 + $0x1a8] ss:$16 sps:$4 sm:$0xff]  }
0x124a   : > { %5000 = vrot.lane.b32.xlu1 %v4999_v54, %s5396_s1  ;;  %v5219_v54 = vld [vmem:[%s6679_s11 + $0x1c4] ss:$16 sps:$4 sm:$0xff]  }
0x124e   : > { %3081 = vrot.lane.b32.xlu1 %v4947_v49, %s5396_s1  ;;  %v5213_v49 = vld [vmem:[%s6679_s11 + $0x1a4] ss:$16 sps:$4 sm:$0xff]  }
0x12bc   : > { %v5001_v55 = vpop.permute.xlu1 %5000 }
0x12bd   : > { %v5003_v56 = vunpack.i.h.bf16 %v5001_v55  ;;  %v5002_v46 = vunpack.i.l.bf16 %v5001_v55  ;;  %v5222_v55 = vld [vmem:[%s6679_s11 + $0x1cc] ss:$16 sps:$4 sm:$0xff]  }
0x12bf   : > { %v3086_v57 = vsel %vm670_vm0, %v6260_v47, %v5002_v46  ;;  %v3087_v58 = vsel %vm670_vm0, %v6262_v26, %v5003_v56  ;;  %v5217_v56 = vld [vmem:[%s6679_s11 + $0x1c0] ss:$16 sps:$4 sm:$0xff]   ;;  %v5220_v46 = vld [vmem:[%s6679_s11 + $0x1c8] ss:$16 sps:$4 sm:$0xff]  }
0x12c0   : > { %v3082_v27 = vpop.permute.xlu1 %3081  ;;  %v3089_v61 = vpack.c.bf16 %v3087_v58, %v3086_v57  ;;  %v5225_v57 = vld [vmem:[%s6679_s11 + $0x1e4] ss:$16 sps:$4 sm:$0xff]   ;;  %v5228_v58 = vld [vmem:[%s6679_s11 + $0x1ec] ss:$16 sps:$4 sm:$0xff]  }
0x12c1   : > { %v3088_v29 = vsel %vm670_vm0, %v6258_v44, %v3082_v27  ;;  %v5223_v27 = vld [vmem:[%s6679_s11 + $0x1e0] ss:$16 sps:$4 sm:$0xff]  }
0x12c2   : > { %v3090_v62 = vpack.c.bf16 %v3088_v29, %v3088_v29  ;;  %4965 = vmatprep.mubr.bf16.mxu0 %v3089_v61  ;;  %v5226_v61 = vld [vmem:[%s6679_s11 + $0x1e8] ss:$16 sps:$4 sm:$0xff]  }
0x12c4   : > { %4966 = vmatmul.mubr.bf16.vlgmr.msra.gmra.mrb[44].mxu0 %v3090_v62 }
0x12c5   : > { %3574 = vmatprep.mubr.bf16.mxu0 %v5395_v1 }
0x1397   : > { %v4967_v63 = vpop.f32.mrb[44].mxu0 }
0x1398   : > { %v3190_v2 = vpop.f32.mrb[45].mxu0  ;;  %v3206_v3 = vadd.f32 %v4967_v63, %v6105_v31  ;;  %v5183_v31 = vld [vmem:[%s6679_s11 + $0x104] ss:$16 sps:$4 sm:$0xff]  }
0x1399   : > { %v3204_v47 = vadd.f32 %v3190_v2, %v6098_v25  ;;  %v4968_v32 = vpop.f32.mrb[46].mxu0  ;;  %v5181_v25 = vld [vmem:[%s6679_s11 + $0x100] ss:$16 sps:$4 sm:$0xff]   ;;  %3491 = vmatprep.subr.bf16.mxu1 %v5183_v31 }
0x139a   : > { %v3193_v26 = vpop.f32.mrb[47].mxu0  ;;  %v6325_v51 = vadd.f32 %v4466_v0, %v3206_v3  ;;  %3492 = vmatpush1.bf16.msra.mxu1 %v5181_v25  ;;  %v4469_v31 = vld [vmem:[%s6677_s9 + $0x1] ss:$0 sm:$0xff] }
0x139b   : > { %v6319_v39 = vadd.f32 %v4466_v0, %v3204_v47  ;;  %v3205_v44 = vadd.f32 %v3193_v26, %v6101_v59  ;;  %v5184_v59 = vld [vmem:[%s6679_s11 + $0x108] ss:$16 sps:$4 sm:$0xff]   ;;  %3493 = vmatprep.subr.bf16.mxu1 %v5189_v19 }
0x139c   : > { %3543 = vmatpush1.bf16.msra.mxu0 %v5184_v59 }
0x139d   : > { %v6322_v4 = vadd.f32 %v4466_v0, %v3205_v44  ;;  %3222 = vadd.xlane.f32.xlu0 %v6319_v39  ;;  %3544 = vmatprep.subr.bf16.mxu0 %v5192_v8 }
0x139e   : > { %3494 = vmatpush1.bf16.msra.mxu1 %v5187_v7  ;;  %v4470_v7 = vld [vmem:[%s6678_s10 + $0x1] ss:$0 sm:$0xff] }
0x139f   : > { %3224 = vadd.xlane.f32.xlu1 %v6322_v4  ;;  %3495 = vmatprep.subr.bf16.mxu1 %v5195_v43  ;;  %v5235_v43 = vld [vmem:[%s6681_s13 + $0x108] sm:$0xff]  }
0x13a0   : > { %3545 = vmatpush1.bf16.msra.mxu0 %v5190_v9 }
0x13a1   : > { %3226 = vadd.xlane.f32.xlu0 %v6325_v51  ;;  %3546 = vmatprep.subr.bf16.mxu0 %v5198_v20  ;;  %v5236_v20 = vld [vmem:[%s6681_s13 + $0x188] sm:$0xff]  }
0x13a2   : > { %3496 = vmatpush1.bf16.msra.mxu1 %v5193_v36  ;;  %v5237_v36 = vld [vmem:[%s6681_s13 + $0x150] sm:$0xff]  }
0x13a3   : > { %3497 = vmatprep.subr.bf16.mxu1 %v5201_v18  ;;  %v5239_v18 = vld [vmem:[%s6681_s13 + $0x110] sm:$0xff]  }
0x13a4   : > { %3547 = vmatpush1.bf16.msra.mxu0 %v5196_v38  ;;  %v5238_v38 = vld [vmem:[%s6681_s13 + $0x1d0] sm:$0xff]  }
0x13a5   : > { %3548 = vmatprep.subr.bf16.mxu0 %v5204_v23  ;;  %v5240_v23 = vld [vmem:[%s6681_s13 + $0x190] sm:$0xff]  }
0x13a6   : > { %3498 = vmatpush1.bf16.msra.mxu1 %v5199_v24  ;;  %v5241_v24 = vld [vmem:[%s6681_s13 + $0x158] sm:$0xff]  }
0x13a7   : > { %3499 = vmatprep.subr.bf16.mxu1 %v5207_v40  ;;  %v5243_v40 = vld [vmem:[%s6681_s13 + $0x118] sm:$0xff]  }
0x13a8   : > { %3549 = vmatpush1.bf16.msra.mxu0 %v5202_v17  ;;  %v5242_v17 = vld [vmem:[%s6681_s13 + $0x1d8] sm:$0xff]  }
0x13a9   : > { %3550 = vmatprep.subr.bf16.mxu0 %v5210_v41  ;;  %v5244_v41 = vld [vmem:[%s6681_s13 + $0x198] sm:$0xff]  }
0x13aa   : > { %3500 = vmatpush1.bf16.msra.mxu1 %v5205_v42  ;;  %v5245_v42 = vld [vmem:[%s6681_s13 + $0x160] sm:$0xff]  }
0x13ab   : > { %3501 = vmatprep.subr.bf16.mxu1 %v5213_v49  ;;  %v5247_v49 = vld [vmem:[%s6681_s13 + $0x120] sm:$0xff]  }
0x13ac   : > { %3551 = vmatpush1.bf16.msra.mxu0 %v5208_v12  ;;  %v5246_v12 = vld [vmem:[%s6681_s13 + $0x1e0] sm:$0xff]  }
0x13ad   : > { %3552 = vmatprep.subr.bf16.mxu0 %v5216_v50  ;;  %v5248_v50 = vld [vmem:[%s6681_s13 + $0x1a0] sm:$0xff]  }
0x13ae   : > { %3502 = vmatpush1.bf16.msra.mxu1 %v5211_v28  ;;  %v5249_v28 = vld [vmem:[%s6681_s13 + $0x168] sm:$0xff]  }
0x13af   : > { %3503 = vmatprep.subr.bf16.mxu1 %v5219_v54  ;;  %v5251_v54 = vld [vmem:[%s6681_s13 + $0x128] sm:$0xff]  }
0x13b0   : > { %3553 = vmatpush1.bf16.msra.mxu0 %v5214_v45  ;;  %v5250_v45 = vld [vmem:[%s6681_s13 + $0x1e8] sm:$0xff]  }
0x13b1   : > { %3554 = vmatprep.subr.bf16.mxu0 %v5222_v55  ;;  %v5252_v55 = vld [vmem:[%s6681_s13 + $0x1a8] sm:$0xff]  }
0x13b2   : > { %3504 = vmatpush1.bf16.msra.mxu1 %v5217_v56  ;;  %v5253_v56 = vld [vmem:[%s6681_s13 + $0x170] sm:$0xff]  }
0x13b3   : > { %3505 = vmatprep.subr.bf16.mxu1 %v5225_v57  ;;  %v5255_v57 = vld [vmem:[%s6681_s13 + $0x130] sm:$0xff]  }
0x13b4   : > { %3555 = vmatpush1.bf16.msra.mxu0 %v5220_v46  ;;  %v5254_v46 = vld [vmem:[%s6681_s13 + $0x1f0] sm:$0xff]  }
0x13b5   : > { %3556 = vmatprep.subr.bf16.mxu0 %v5228_v58  ;;  %v5256_v58 = vld [vmem:[%s6681_s13 + $0x1b0] sm:$0xff]  }
0x13b6   : > { %3506 = vmatpush1.bf16.msra.mxu1 %v5223_v27  ;;  %v5257_v27 = vld [vmem:[%s6681_s13 + $0x178] sm:$0xff]  }
0x13b8   : > { %3557 = vmatpush1.bf16.msra.mxu0 %v5226_v61  ;;  %v5258_v61 = vld [vmem:[%s6681_s13 + $0x1f8] sm:$0xff]  }
0x142a   : > { %v3223_v10 = vpop.xlane.xlu0 %3222 }
0x142b   : > { %v3228_v52 = vmul.f32 0.0078125, %v3223_v10 }
0x142c   : > { %v3225_v13 = vpop.xlane.xlu1 %3224 }
0x142d   : > { %v6354_v14 = vsub.f32 %v6319_v39, %v3228_v52  ;;  %v3229_v6 = vmul.f32 0.0078125, %v3225_v13 }
0x142e   : > { %v3227_v15 = vpop.xlane.xlu0 %3226 }
0x142f   : > { %v6357_v16 = vsub.f32 %v6322_v4, %v3229_v6  ;;  %v3230_v21 = vmul.f32 0.0078125, %v3227_v15  ;;  %v3234_v30 = vmul.f32 %v6354_v14, %v6354_v14 }
0x1431   : > { %v6362_v53 = vsub.f32 %v6325_v51, %v3230_v21  ;;  %3237 = vadd.xlane.f32.xlu0 %v3234_v30  ;;  %v3235_v11 = vmul.f32 %v6357_v16, %v6357_v16  ;;  %v5229_v21 = vld [vmem:[%s6681_s13 + $0x140] sm:$0xff]  }
0x1432   : > { %v5230_v30 = vld [vmem:[%s6681_s13 + $0x1c0] sm:$0xff]   ;;  %4769 = vmatprep.subr.bf16.mxu1 %v5229_v21 }
0x1433   : > { %v3236_v48 = vmul.f32 %v6362_v53, %v6362_v53  ;;  %4797 = vmatprep.subr.bf16.mxu0 %v5230_v30 }
0x1435   : > { %3241 = vadd.xlane.f32.xlu1 %v3236_v48  ;;  %3239 = vadd.xlane.f32.xlu0 %v3235_v11  ;;  %v5233_v48 = vld [vmem:[%s6681_s13 + $0x148] sm:$0xff]  }
0x1436   : > { %v5234_v11 = vld [vmem:[%s6681_s13 + $0x1c8] sm:$0xff]  }
0x14be   : > { %v3238_v29 = vpop.xlane.xlu0 %3237 }
0x14bf   : > { %v3243_v62 = vmul.f32 0.0078125, %v3238_v29  ;;  %v5259_v29 = vld [vmem:[%s6681_s13 + $0x138] sm:$0xff]  }
0x14c1   : > { %v3246_v63 = vadd.f32 1e-06, %v3243_v62  ;;  %v5260_v62 = vld [vmem:[%s6681_s13 + $0x1b8] sm:$0xff]  }
0x14c2   : > { %v3240_v0 = vpop.xlane.xlu0 %3239  ;;  %v3242_v2 = vpop.xlane.xlu1 %3241 }
0x14c3   : > { %5351 = vrsqrt.f32 %v3246_v63  ;;  %v3244_v47 = vmul.f32 0.0078125, %v3240_v0  ;;  %v3245_v32 = vmul.f32 0.0078125, %v3242_v2  ;;  %v4503_v63 = vld [vmem:[%s6680_s12 + $0x4] sm:$0xf] }
0x14c4   : > { %v3314_v0 = vrot.slane %v4503_v63, %v5659_v35  ;;  %v3322_v2 = vrot.slane %v4503_v63, %v5680_v60 }
0x14c5   : > { %v3247_v26 = vadd.f32 1e-06, %v3244_v47  ;;  %v3248_v3 = vadd.f32 1e-06, %v3245_v32  ;;  %v3318_v47 = vrot.slane %v4503_v63, %v5665_v37  ;;  %v6555_v32 = vrot.slane %v4503_v63, %v1649_v22 }
0x14c7   : > { %5353 = vrsqrt.f32 %v3247_v26 }
0x14c8   : > { %5355 = vrsqrt.f32 %v3248_v3 }
0x14cd   : > { %v5352_v44 = vpop.eup %5351 }
0x14ce   : > { %v3252_v25 = vmul.f32 %v5352_v44, %v6354_v14 }
0x14d0   : > { %v3261_v8 = vmul.f32 %v4469_v31, %v3252_v25 }
0x14d1   : > { %v5354_v59 = vpop.eup %5353 }
0x14d2   : > { %v5356_v5 = vpop.eup %5355  ;;  %v3253_v19 = vmul.f32 %v5354_v59, %v6357_v16  ;;  %v3270_v52 = vadd.f32 %v4470_v7, %v3261_v8 }
0x14d3   : > { %v3254_v10 = vmul.f32 %v5356_v5, %v6362_v53  ;;  %v5231_v53 = vld [vmem:[%s6681_s13 + $0x100] sm:$0xff]  }
0x14d4   : > { %v3262_v9 = vmul.f32 %v4469_v31, %v3253_v19 }
0x14d5   : > { %v3263_v14 = vmul.f32 %v4469_v31, %v3254_v10 }
0x14d6   : > { %v3271_v13 = vadd.f32 %v4470_v7, %v3262_v9 }
0x14d7   : > { %v3272_v15 = vadd.f32 %v4470_v7, %v3263_v14 }
0x14d8   : > { %v3273_v6 = vpack.c.bf16 %v3271_v13, %v3270_v52 }
0x14d9   : > { %v3274_v16 = vpack.c.bf16 %v3272_v15, %v3272_v15 }
0x14da   : > { %3524 = vmatmul.mubr.bf16.vlgmr.msra.gmra.mrb[56].mxu1 %v3273_v6  ;;  %3575 = vmatmul.mubr.bf16.vlgmr.msra.gmra.mrb[48].mxu0 %v3273_v6 }
0x14db   : > { %3533 = vmatprep.mubr.bf16.mxu1 %v5395_v1  ;;  %3584 = vmatprep.mubr.bf16.mxu0 %v5395_v1  ;;  %v5232_v1 = vld [vmem:[%s6681_s13 + $0x180] sm:$0xff]  }
0x14dc   : > { %4770 = vmatpush3.bf16.msra.mxu1 %v5231_v53  ;;  %4798 = vmatpush3.bf16.msra.mxu0 %v5232_v1 }
0x14dd   : > { %4771 = vmatprep.subr.bf16.mxu1 %v5233_v48  ;;  %4799 = vmatprep.subr.bf16.mxu0 %v5234_v11 }
0x14e0   : > { %4772 = vmatpush3.bf16.msra.mxu1 %v5235_v43  ;;  %4800 = vmatpush3.bf16.msra.mxu0 %v5236_v20 }
0x14e1   : > { %4773 = vmatprep.subr.bf16.mxu1 %v5237_v36  ;;  %4801 = vmatprep.subr.bf16.mxu0 %v5238_v38 }
0x14e2   : > { %3534 = vmatmul.mubr.bf16.gmra.mrb[60].mxu1 %v3274_v16  ;;  %3585 = vmatmul.mubr.bf16.gmra.mrb[52].mxu0 %v3274_v16 }
0x14e4   : > { %4774 = vmatpush3.bf16.msra.mxu1 %v5239_v18  ;;  %4802 = vmatpush3.bf16.msra.mxu0 %v5240_v23 }
0x14e5   : > { %4775 = vmatprep.subr.bf16.mxu1 %v5241_v24  ;;  %4803 = vmatprep.subr.bf16.mxu0 %v5242_v17 }
0x14e8   : > { %4776 = vmatpush3.bf16.msra.mxu1 %v5243_v40  ;;  %4804 = vmatpush3.bf16.msra.mxu0 %v5244_v41 }
0x14e9   : > { %4777 = vmatprep.subr.bf16.mxu1 %v5245_v42  ;;  %4805 = vmatprep.subr.bf16.mxu0 %v5246_v12 }
0x14ec   : > { %4778 = vmatpush3.bf16.msra.mxu1 %v5247_v49  ;;  %4806 = vmatpush3.bf16.msra.mxu0 %v5248_v50 }
0x14ed   : > { %4779 = vmatprep.subr.bf16.mxu1 %v5249_v28  ;;  %4807 = vmatprep.subr.bf16.mxu0 %v5250_v45 }
0x14f0   : > { %4780 = vmatpush3.bf16.msra.mxu1 %v5251_v54  ;;  %4808 = vmatpush3.bf16.msra.mxu0 %v5252_v55 }
0x14f1   : > { %4781 = vmatprep.subr.bf16.mxu1 %v5253_v56  ;;  %4809 = vmatprep.subr.bf16.mxu0 %v5254_v46 }
0x14f4   : > { %4782 = vmatpush3.bf16.msra.mxu1 %v5255_v57  ;;  %4810 = vmatpush3.bf16.msra.mxu0 %v5256_v58 }
0x14f5   : > { %4783 = vmatprep.subr.bf16.mxu1 %v5257_v27  ;;  %4811 = vmatprep.subr.bf16.mxu0 %v5258_v61 }
0x14f8   : > { %4784 = vmatpush3.bf16.msra.mxu1 %v5259_v29  ;;  %4812 = vmatpush3.bf16.msra.mxu0 %v5260_v62 }
0x15ad   : > { %v3525_v26 = vpop.f32.mrb[56].mxu1  ;;  %v3576_v3 = vpop.f32.mrb[48].mxu0 }
0x15ae   : > { %v6557_v44 = vadd.f32 %v3525_v26, %v3314_v0  ;;  %v6559_v25 = vadd.f32 %v3576_v3, %v3322_v2  ;;  %v3527_v31 = vpop.f32.mrb[57].mxu1  ;;  %v3578_v59 = vpop.f32.mrb[49].mxu0 }
0x15af   : > { %v6561_v5 = vadd.f32 %v3527_v31, %v3318_v47  ;;  %v6564_v35 = vadd.f32 %v3578_v59, %v6555_v32  ;;  %v3529_v60 = vpop.f32.mrb[58].mxu1  ;;  %v3580_v19 = vpop.f32.mrb[50].mxu0 }
0x15b0   : > { %v3605_v37 = vmul.f32 0.044715, %v6557_v44  ;;  %v3607_v22 = vmul.f32 0.044715, %v6559_v25  ;;  %v6570_v9 = vadd.f32 %v3529_v60, %v3314_v0  ;;  %v6572_v10 = vadd.f32 %v3580_v19, %v3322_v2  ;;  %v3531_v52 = vpop.f32.mrb[59].mxu1  ;;  %v3582_v13 = vpop.f32.mrb[51].mxu0 }
0x15b1   : > { %v3606_v8 = vmul.f32 0.044715, %v6561_v5  ;;  %v3608_v7 = vmul.f32 0.044715, %v6564_v35  ;;  %v6576_v15 = vadd.f32 %v3531_v52, %v3318_v47  ;;  %v6579_v16 = vadd.f32 %v3582_v13, %v6555_v32 }
0x15b2   : > { %v3617_v6 = vmul.f32 %v3605_v37, %v6557_v44  ;;  %v3619_v14 = vmul.f32 %v3607_v22, %v6559_v25  ;;  %v3609_v21 = vmul.f32 0.044715, %v6570_v9  ;;  %v3611_v1 = vmul.f32 0.044715, %v6572_v10 }
0x15b3   : > { %v3618_v48 = vmul.f32 %v3606_v8, %v6561_v5  ;;  %v3620_v11 = vmul.f32 %v3608_v7, %v6564_v35  ;;  %v3610_v20 = vmul.f32 0.044715, %v6576_v15  ;;  %v3612_v17 = vmul.f32 0.044715, %v6579_v16 }
0x15b4   : > { %v3629_v30 = vmul.f32 %v3617_v6, %v6557_v44  ;;  %v3631_v53 = vmul.f32 %v3619_v14, %v6559_v25  ;;  %v3621_v43 = vmul.f32 %v3609_v21, %v6570_v9  ;;  %v3623_v24 = vmul.f32 %v3611_v1, %v6572_v10 }
0x15b5   : > { %v3535_v36 = vpop.f32.mrb[60].mxu1  ;;  %v3586_v38 = vpop.f32.mrb[52].mxu0  ;;  %v3622_v12 = vmul.f32 %v3610_v20, %v6576_v15  ;;  %v3624_v46 = vmul.f32 %v3612_v17, %v6579_v16  ;;  %v3630_v27 = vmul.f32 %v3618_v48, %v6561_v5 }
0x15b6   : > { %v3641_v18 = vadd.f32 %v3629_v30, %v6557_v44  ;;  %v3643_v23 = vadd.f32 %v3631_v53, %v6559_v25  ;;  %v3537_v40 = vpop.f32.mrb[61].mxu1  ;;  %v3588_v41 = vpop.f32.mrb[53].mxu0  ;;  %v3633_v42 = vmul.f32 %v3621_v43, %v6570_v9  ;;  %v6595_v49 = vadd.f32 %v3535_v36, %v3314_v0 }
0x15b7   : > { %v6597_v50 = vadd.f32 %v3586_v38, %v3322_v2  ;;  %v3539_v28 = vpop.f32.mrb[62].mxu1  ;;  %v3590_v45 = vpop.f32.mrb[54].mxu0  ;;  %v3635_v56 = vmul.f32 %v3623_v24, %v6572_v10  ;;  %v3634_v29 = vmul.f32 %v3622_v12, %v6576_v15  ;;  %v6606_v0 = vadd.f32 %v3537_v40, %v3318_v47 }
0x15b8   : > { %v3653_v54 = vmul.f32 0.7978846, %v3641_v18  ;;  %v3655_v55 = vmul.f32 0.7978846, %v3643_v23  ;;  %v3540_v57 = vpop.f32.mrb[63].mxu1  ;;  %v3591_v58 = vpop.f32.mrb[55].mxu0  ;;  %v3645_v61 = vadd.f32 %v3633_v42, %v6570_v9  ;;  %v3632_v2 = vmul.f32 %v3620_v11, %v6564_v35 }
0x15b9   : > { %v3647_v62 = vadd.f32 %v3635_v56, %v6572_v10  ;;  %v3613_v63 = vmul.f32 0.044715, %v6595_v49  ;;  %v3615_v3 = vmul.f32 0.044715, %v6597_v50  ;;  %v3636_v59 = vmul.f32 %v3624_v46, %v6579_v16 }
0x15ba   : > { %5357 = vtanh.f32 %v3653_v54  ;;  %v3657_v26 = vmul.f32 0.7978846, %v3645_v61  ;;  %v3614_v60 = vmul.f32 0.044715, %v6606_v0  ;;  %v6613_v19 = vadd.f32 %v3588_v41, %v6555_v32 }
0x15bb   : > { %5359 = vtanh.f32 %v3655_v55  ;;  %v3659_v31 = vmul.f32 0.7978846, %v3647_v62  ;;  %v3642_v37 = vadd.f32 %v3630_v27, %v6561_v5  ;;  %v3646_v47 = vadd.f32 %v3634_v29, %v6576_v15 }
0x15bc   : > { %5361 = vtanh.f32 %v3657_v26  ;;  %v3625_v22 = vmul.f32 %v3613_v63, %v6595_v49  ;;  %v3626_v8 = vmul.f32 %v3614_v60, %v6606_v0  ;;  %v3616_v7 = vmul.f32 0.044715, %v6613_v19 }
0x15bd   : > { %5363 = vtanh.f32 %v3659_v31  ;;  %v3627_v52 = vmul.f32 %v3615_v3, %v6597_v50  ;;  %v3654_v13 = vmul.f32 0.7978846, %v3642_v37  ;;  %v3658_v6 = vmul.f32 0.7978846, %v3646_v47 }
0x15be   : > { %v3644_v14 = vadd.f32 %v3632_v2, %v6564_v35  ;;  %v3628_v32 = vmul.f32 %v3616_v7, %v6613_v19  ;;  %v3648_v21 = vadd.f32 %v3636_v59, %v6579_v16  ;;  %v3638_v30 = vmul.f32 %v3626_v8, %v6606_v0 }
0x15bf   : > { %5365 = vtanh.f32 %v3654_v13  ;;  %v3637_v43 = vmul.f32 %v3625_v22, %v6595_v49  ;;  %v3639_v20 = vmul.f32 %v3627_v52, %v6597_v50  ;;  %v3593_v55 = vmul.f32 0.5, %v6557_v44 }
0x15c0   : > { %v3656_v53 = vmul.f32 0.7978846, %v3644_v14  ;;  %5367 = vtanh.f32 %v3658_v6  ;;  %v3660_v1 = vmul.f32 0.7978846, %v3648_v21  ;;  %v3650_v48 = vadd.f32 %v3638_v30, %v6606_v0 }
0x15c1   : > { %v3640_v11 = vmul.f32 %v3628_v32, %v6613_v19  ;;  %v3649_v24 = vadd.f32 %v3637_v43, %v6595_v49  ;;  %v3651_v17 = vadd.f32 %v3639_v20, %v6597_v50  ;;  %v3597_v56 = vmul.f32 0.5, %v6570_v9 }
0x15c2   : > { %5369 = vtanh.f32 %v3656_v53  ;;  %v3662_v38 = vmul.f32 0.7978846, %v3650_v48  ;;  %v3595_v57 = vmul.f32 0.5, %v6559_v25  ;;  %v3599_v58 = vmul.f32 0.5, %v6572_v10 }
0x15c3   : > { %5371 = vtanh.f32 %v3660_v1  ;;  %v3652_v18 = vadd.f32 %v3640_v11, %v6613_v19  ;;  %v3661_v28 = vmul.f32 0.7978846, %v3649_v24  ;;  %v3663_v45 = vmul.f32 0.7978846, %v3651_v17 }
0x15c4   : > { %v5358_v36 = vpop.eup %5357  ;;  %5373 = vtanh.f32 %v3662_v38  ;;  %v3594_v9 = vmul.f32 0.5, %v6561_v5  ;;  %v3598_v59 = vmul.f32 0.5, %v6576_v15  ;;  %v3596_v10 = vmul.f32 0.5, %v6564_v35 }
0x15c5   : > { %v5360_v23 = vpop.eup %5359  ;;  %v3677_v40 = vadd.f32 1.0, %v5358_v36  ;;  %v3664_v41 = vmul.f32 0.7978846, %v3652_v18  ;;  %v3600_v7 = vmul.f32 0.5, %v6579_v16  ;;  %v3602_v6 = vmul.f32 0.5, %v6606_v0 }
0x15c6   : > { %v5362_v42 = vpop.eup %5361  ;;  %v3679_v12 = vadd.f32 1.0, %v5360_v23  ;;  %v3604_v35 = vmul.f32 0.5, %v6613_v19  ;;  %v3601_v16 = vmul.f32 0.5, %v6595_v49  ;;  %v3603_v18 = vmul.f32 0.5, %v6597_v50 }
0x15c7   : > { %v5364_v54 = vpop.eup %5363  ;;  %v3681_v46 = vadd.f32 1.0, %v5362_v42  ;;  %5375 = vtanh.f32 %v3664_v41  ;;  %v3689_v61 = vmul.f32 %v3677_v40, %v3593_v55 }
0x15c8   : > { %v3683_v27 = vadd.f32 1.0, %v5364_v54  ;;  %5377 = vtanh.f32 %v3661_v28  ;;  %v3691_v63 = vmul.f32 %v3679_v12, %v3595_v57 }
0x15c9   : > { %v3693_v29 = vmul.f32 %v3681_v46, %v3597_v56  ;;  %5379 = vtanh.f32 %v3663_v45  ;;  %v5366_v62 = vpop.eup %5365 }
0x15ca   : > { %v3695_v2 = vmul.f32 %v3683_v27, %v3599_v58  ;;  %v5368_v26 = vpop.eup %5367  ;;  %v3678_v3 = vadd.f32 1.0, %v5366_v62  ;;  %v4633_v58 = vld [vmem:[%s6682_s14 + $0x1] ss:$0 sm:$0xff] }
0x15cb   : > { %v3701_v31 = vpack.c.bf16 %v3693_v29, %v3689_v61  ;;  %v3682_v60 = vadd.f32 1.0, %v5368_v26 }
0x15cc   : > { %v5370_v44 = vpop.eup %5369  ;;  %v3703_v25 = vpack.c.bf16 %v3695_v2, %v3691_v63  ;;  %v3690_v22 = vmul.f32 %v3678_v3, %v3594_v9 }
0x15cd   : > { %v5372_v37 = vpop.eup %5371  ;;  %v3680_v47 = vadd.f32 1.0, %v5370_v44  ;;  %v3694_v8 = vmul.f32 %v3682_v60, %v3598_v59 }
0x15ce   : > { %v3684_v52 = vadd.f32 1.0, %v5372_v37  ;;  %v5374_v13 = vpop.eup %5373 }
0x15cf   : > { %v3702_v14 = vpack.c.bf16 %v3694_v8, %v3690_v22  ;;  %v3692_v32 = vmul.f32 %v3680_v47, %v3596_v10  ;;  %v3686_v5 = vadd.f32 1.0, %v5374_v13 }
0x15d0   : > { %v3696_v21 = vmul.f32 %v3684_v52, %v3600_v7 }
0x15d1   : > { %v5376_v30 = vpop.eup %5375  ;;  %3998 = vmatprep.mubr.bf16.mxu1 %v3702_v14  ;;  %v3698_v1 = vmul.f32 %v3686_v5, %v3602_v6 }
0x15d2   : > { %v5378_v15 = vpop.eup %5377  ;;  %v3704_v53 = vpack.c.bf16 %v3696_v21, %v3692_v32  ;;  %v3688_v48 = vadd.f32 1.0, %v5376_v30  ;;  %3999 = vmatmul.mubr.bf16.vlgmr.msra.gmra.mrb[64].mxu1 %v3701_v31 }
0x15d3   : > { %v5380_v11 = vpop.eup %5379  ;;  %v3685_v43 = vadd.f32 1.0, %v5378_v15  ;;  %v3706_v20 = vpack.c.bf16 %v3698_v1, %v3698_v1 }
0x15d4   : > { %4046 = vmatprep.mubr.bf16.mxu0 %v3704_v53  ;;  %v3700_v0 = vmul.f32 %v3688_v48, %v3604_v35  ;;  %v3687_v36 = vadd.f32 1.0, %v5380_v11 }
0x15d5   : > { %4047 = vmatmul.mubr.bf16.vlgmr.msra.gmra.mrb[56].mxu0 %v3703_v25  ;;  %v3697_v38 = vmul.f32 %v3685_v43, %v3601_v16  ;;  %4006 = vmatprep.mubr.bf16.mxu1 %v3706_v20 }
0x15d6   : > { %v3708_v23 = vpack.c.bf16 %v3700_v0, %v3700_v0  ;;  %v3699_v24 = vmul.f32 %v3687_v36, %v3603_v18  ;;  %v4634_v0 = vld [vmem:[%s6683_s15] ss:$0 sm:$0xff] }
0x15d7   : > { %v3705_v17 = vpack.c.bf16 %v3697_v38, %v3697_v38 }
0x15d8   : > { %4054 = vmatprep.mubr.bf16.mxu0 %v3708_v23  ;;  %v3707_v19 = vpack.c.bf16 %v3699_v24, %v3699_v24  ;;  %v4635_v24 = vld [vmem:[%s6684_s16] ss:$0 sm:$0xff] }
0x15da   : > { %4007 = vmatmul.mubr.bf16.gmra.mrb[68].mxu1 %v3705_v17  ;;  %v4132_v17 = vadd.s32 16, %v5656_v34 }
0x15dc   : > { %vm4138_vm5 = vcmp.lt.s32.totalorder %v4132_v17, 17 }
0x15dd   : > { %4055 = vmatmul.mubr.bf16.gmra.mrb[60].mxu0 %v3707_v19 }
0x16a5   : > { %v4785_v40 = vpop.f32.mrb[64].mxu1 }
0x16a6   : > { %v4786_v41 = vpop.f32.mrb[65].mxu1 }
0x16a7   : > { %v4787_v42 = vadd.f32 %v4786_v41, %v4785_v40  ;;  %v4788_v12 = vpop.f32.mrb[66].mxu1 }
0x16a8   : > { %v4813_v49 = vpop.f32.mrb[56].mxu0  ;;  %v4789_v45 = vpop.f32.mrb[67].mxu1 }
0x16a9   : > { %v4814_v28 = vpop.f32.mrb[57].mxu0  ;;  %v4790_v56 = vadd.f32 %v4789_v45, %v4788_v12 }
0x16aa   : > { %v4815_v54 = vadd.f32 %v4814_v28, %v4813_v49  ;;  %v4816_v55 = vpop.f32.mrb[58].mxu0  ;;  %v5398_v49 = vmov 0.0  }
0x16ab   : > { %v4817_v46 = vpop.f32.mrb[59].mxu0 }
0x16ac   : > { %v4049_v50 = vadd.f32 %v4815_v54, %v4787_v42  ;;  %v4818_v57 = vadd.f32 %v4817_v46, %v4816_v55  ;;  %v4636_v42 = vsel %vm4133_vm4, 1.0, %v5398_v49  ;;  %v4637_v55 = vsel %vm4138_vm5, 1.0, %v5398_v49 }
0x16ad   : > { %v4791_v61 = vpop.f32.mrb[68].mxu1 }
0x16ae   : > { %v4052_v27 = vadd.f32 %v4818_v57, %v4790_v56  ;;  %v4062_v29 = vadd.f32 %v4049_v50, %v6319_v39  ;;  %v4792_v62 = vpop.f32.mrb[69].mxu1 }
0x16af   : > { %v4793_v2 = vadd.f32 %v4792_v62, %v4791_v61  ;;  %v4794_v3 = vpop.f32.mrb[70].mxu1  ;;  %v5399_v61 = vmov 1966171168  }
0x16b0   : > { %v4819_v63 = vpop.f32.mrb[60].mxu0  ;;  %v4073_v26 = vadd.f32 %v4633_v58, %v4062_v29  ;;  %v4063_v31 = vadd.f32 %v4052_v27, %v6322_v4  ;;  %v4795_v9 = vpop.f32.mrb[71].mxu1  ;;  %v4164_v29 = vunpack.c.l.s4 %v5399_v61 }
0x16b1   : > { %v4820_v44 = vpop.f32.mrb[61].mxu0 }
0x16b2   : > { %v4821_v59 = vadd.f32 %v4820_v44, %v4819_v63  ;;  %v4822_v60 = vpop.f32.mrb[62].mxu0  ;;  %4078 = vadd.xlane.f32.xlu0 %v4073_v26  ;;  %v4074_v25 = vadd.f32 %v4633_v58, %v4063_v31 }
0x16b3   : > { %v4823_v37 = vpop.f32.mrb[63].mxu0 }
0x16b4   : > { %v4057_v10 = vadd.f32 %v4821_v59, %v4793_v2  ;;  %4080 = vadd.xlane.f32.xlu1 %v4074_v25  ;;  %v4165_v2 = vunpack.c.0.s8 %v4164_v29 }
0x16b6   : > { %v4064_v47 = vadd.f32 %v4057_v10, %v6325_v51  ;;  %v4168_v31 = vsub.s32 %v4165_v2, %v5656_v34 }
0x16b8   : > { %v4075_v22 = vadd.f32 %v4633_v58, %v4064_v47 }
0x16ba   : > { %4082 = vadd.xlane.f32.xlu0 %v4075_v22 }
0x173f   : > { %v4079_v39 = vpop.xlane.xlu0 %4078 }
0x1740   : > { %v4084_v8 = vmul.f32 0.0078125, %v4079_v39 }
0x1741   : > { %v4081_v7 = vpop.xlane.xlu1 %4080 }
0x1742   : > { %v4087_v52 = vsub.f32 %v4073_v26, %v4084_v8  ;;  %v4085_v13 = vmul.f32 0.0078125, %v4081_v7 }
0x1744   : > { %v4088_v6 = vsub.f32 %v4074_v25, %v4085_v13  ;;  %v4090_v4 = vmul.f32 %v4087_v52, %v4087_v52 }
0x1746   : > { %4093 = vadd.xlane.f32.xlu1 %v4090_v4  ;;  %v4091_v14 = vmul.f32 %v4088_v6, %v4088_v6 }
0x1747   : > { %v4083_v32 = vpop.xlane.xlu0 %4082 }
0x1748   : > { %v4086_v21 = vmul.f32 0.0078125, %v4083_v32  ;;  %4095 = vadd.xlane.f32.xlu0 %v4091_v14 }
0x174a   : > { %v4089_v5 = vsub.f32 %v4075_v22, %v4086_v21 }
0x174c   : > { %v4092_v30 = vmul.f32 %v4089_v5, %v4089_v5 }
0x174e   : > { %4097 = vadd.xlane.f32.xlu1 %v4092_v30 }
0x17d3   : > { %v4094_v15 = vpop.xlane.xlu1 %4093 }
0x17d4   : > { %v4099_v53 = vmul.f32 0.0078125, %v4094_v15 }
0x17d5   : > { %v4096_v51 = vpop.xlane.xlu0 %4095 }
0x17d6   : > { %v4102_v1 = vadd.f32 1e-06, %v4099_v53  ;;  %v4100_v35 = vmul.f32 0.0078125, %v4096_v51 }
0x17d8   : > { %5381 = vrsqrt.f32 %v4102_v1  ;;  %v4103_v48 = vadd.f32 1e-06, %v4100_v35 }
0x17da   : > { %5383 = vrsqrt.f32 %v4103_v48 }
0x17db   : > { %v4098_v11 = vpop.xlane.xlu1 %4097 }
0x17dc   : > { %v4101_v16 = vmul.f32 0.0078125, %v4098_v11 }
0x17de   : > { %v4104_v43 = vadd.f32 1e-06, %v4101_v16 }
0x17e0   : > { %5385 = vrsqrt.f32 %v4104_v43 }
0x17e2   : > { %v5382_v20 = vpop.eup %5381 }
0x17e3   : > { %v4108_v36 = vmul.f32 %v5382_v20, %v4087_v52 }
0x17e4   : > { %v5384_v38 = vpop.eup %5383 }
0x17e5   : > { %v4117_v18 = vmul.f32 %v4634_v0, %v4108_v36  ;;  %v4109_v23 = vmul.f32 %v5384_v38, %v4088_v6 }
0x17e7   : > { %v4126_v19 = vadd.f32 %v4635_v24, %v4117_v18  ;;  %v4118_v40 = vmul.f32 %v4634_v0, %v4109_v23 }
0x17e9   : > { %v4148_v28 = vmul.f32 %v4636_v42, %v4126_v19  ;;  %v4127_v45 = vadd.f32 %v4635_v24, %v4118_v40 }
0x17ea   : > { %v5386_v41 = vpop.eup %5385 }
0x17eb   : > { %v4110_v12 = vmul.f32 %v5386_v41, %v4089_v5  ;;  %v4151_v46 = vadd.f32 %v4148_v28, %v4127_v45 }
0x17ed   : > { %v4119_v54 = vmul.f32 %v4634_v0, %v4110_v12 }
0x17ef   : > { %v4128_v56 = vadd.f32 %v4635_v24, %v4119_v54 }
0x17f1   : > { %v4150_v50 = vmul.f32 %v4637_v55, %v4128_v56 }
0x17f3   : > { %v4152_v57 = vadd.f32 %v4151_v46, %v4150_v50 }
0x17f5   : > { %v4153_v58 = vrot.slane %v4152_v57, 4 }
0x17f7   : > { %v4154_v27 = vadd.f32 %v4153_v58, %v4152_v57 }
0x17f9   : > { %v4155_v62 = vrot.slane %v4154_v27, 2 }
0x17fb   : > { %v4156_v63 = vadd.f32 %v4155_v62, %v4154_v27 }
0x17fd   : > { %v4157_v26 = vrot.slane %v4156_v63, 1 }
0x17ff   : > { %v4158_v3 = vadd.f32 %v4157_v26, %v4156_v63 }
0x1801   : > { %v4159_v44 = vmul.f32 0.0625, %v4158_v3 }
0x1803   : > { %v4162_v9 = vcombine.low %v4126_v19, %v4159_v44 }
0x1805   : > { %v4169_v59 = vrot.slane %v4162_v9, %v4168_v31 }
0x1807   : > { %v4176_v60 = vrot.slane %v4169_v59, %v4168_v31 }
0x1809   : > { %4182 = vst.msk [vmem:[%s551_s23] sm:$0x3] %vm4180_vm6, %v4176_v60 }
0x180a PF: > { %s27_s24 = sadd.s32 1, %s5393_s24  }
0x180b   : > { %p24_p5 = scmp.ge.s32.totalorder %s27_s24, 4  }
0x180d   :  { %26 = sbr.rel (!%p24_p5) target bundleno = 3 (0x3), region = 130 }

</bundles_post_ra>
